<compile_context>
chip_gen: v7x
topology: tpu7x:2x2x1
jax: 0.10.0
libtpu: 0.0.40
codegen_flags: <defaults>
</compile_context>

<pallas_src>
import numpy as np
import jax
import jax.numpy as jnp
from jax.experimental import pallas as pl
from jax.experimental.pallas import tpu as pltpu

MAX_LOG2NUM = 16
LEAKY_SLOPE = 0.05
BN_EPS = 1e-5
HEAD_PAD = 128      # lane-padded width of the 4-action head output
N_ACTIONS = 4


# ----------------------------- Pallas kernel --------------------------------

def _conv_taps(w_ref, cin):
    """Load the 4 per-tap (cin, cout) weight blocks of a 2x2 conv (static, aligned slices)."""
    return [w_ref[t * cin:(t + 1) * cin, :] for t in range(4)]


def _conv2x2(tap_inputs, w_taps, bias):
    """2x2 VALID conv at one output position: 4 accumulated f32 MXU matmuls + bias."""
    h = jnp.dot(tap_inputs[0], w_taps[0], preferred_element_type=jnp.float32)
    for x, w in zip(tap_inputs[1:], w_taps[1:]):
        h = h + jnp.dot(x, w, preferred_element_type=jnp.float32)
    return h + bias


def _qcnn_fused_kernel(board_ref,
                       w1_ref, b1_ref, g1_ref, beta1_ref,
                       w2_ref, b2_ref, g2_ref, beta2_ref,
                       w3_ref, b3_ref,
                       w4_ref, b4_ref,
                       out_ref):
    B = board_ref.shape[0]

    def leaky(h):
        return jnp.where(h >= 0.0, h, LEAKY_SLOPE * h)

    def batchnorm(acts, gamma, beta):
        # Training-mode BN: biased batch statistics over (batch rows, spatial positions).
        n = float(len(acts) * B)
        mean = sum(jnp.sum(a, axis=0, keepdims=True) for a in acts) / n

        def sumsq(a):
            d = a - mean
            return jnp.sum(d * d, axis=0, keepdims=True)

        var = sum(sumsq(a) for a in acts) / n
        scale = gamma * jax.lax.rsqrt(var + BN_EPS)
        shift = beta - mean * scale
        return [a * scale + shift for a in acts]

    # --- preprocess: tile class = floor(log2(1 + v)); lane-dense one-hot per cell
    cls = jnp.floor(jnp.log2(1.0 + board_ref[...])).astype(jnp.int32)          # (B, 16)
    lanes = jax.lax.broadcasted_iota(jnp.int32, (B, MAX_LOG2NUM), 1)
    onehot = [(cls[:, c:c + 1] == lanes).astype(jnp.float32) for c in range(16)]

    # --- Conv1: 16ch 4x4 -> 128ch 3x3, + LeakyReLU + BN1 (unrolled over 3x3 outputs)
    w1t = _conv_taps(w1_ref, MAX_LOG2NUM)
    b1 = b1_ref[...]
    a1 = [leaky(_conv2x2([onehot[4 * i + j], onehot[4 * i + j + 1],
                          onehot[4 * (i + 1) + j], onehot[4 * (i + 1) + j + 1]],
                         w1t, b1))
          for i in range(3) for j in range(3)]                                 # 9 x (B, 128)
    h1 = batchnorm(a1, g1_ref[...], beta1_ref[...])

    # --- Conv2: 128ch 3x3 -> 128ch 2x2, + LeakyReLU + BN2 (unrolled over 2x2 outputs)
    w2t = _conv_taps(w2_ref, 128)
    b2 = b2_ref[...]
    a2 = [leaky(_conv2x2([h1[3 * i + j], h1[3 * i + j + 1],
                          h1[3 * (i + 1) + j], h1[3 * (i + 1) + j + 1]],
                         w2t, b2))
          for i in range(2) for j in range(2)]                                 # 4 x (B, 128)
    h2 = batchnorm(a2, g2_ref[...], beta2_ref[...])

    # --- Conv3: 128ch 2x2 -> 256ch 1x1, + LeakyReLU; flatten is a no-op
    w3t = _conv_taps(w3_ref, 128)
    h3 = leaky(_conv2x2([h2[0], h2[1], h2[2], h2[3]], w3t, b3_ref[...]))       # (B, 256)

    # --- Linear head (lane-padded to 128 cols) + 2**Q - 1
    q = jnp.dot(h3, w4_ref[...], preferred_element_type=jnp.float32) + b4_ref[...]
    out_ref[...] = jnp.exp2(q) - 1.0                                           # (B, 128)


# ------------------------------- wrappers ------------------------------------

def init_params(key):
    """Parameters in native PyTorch layouts."""
    ks = jax.random.split(key, 8)
    return {
        "w1": 0.05 * jax.random.normal(ks[0], (128, MAX_LOG2NUM, 2, 2), jnp.float32),
        "b1": 0.05 * jax.random.normal(ks[1], (128,), jnp.float32),
        "w2": 0.05 * jax.random.normal(ks[2], (128, 128, 2, 2), jnp.float32),
        "b2": 0.05 * jax.random.normal(ks[3], (128,), jnp.float32),
        "w3": 0.05 * jax.random.normal(ks[4], (256, 128, 2, 2), jnp.float32),
        "b3": 0.05 * jax.random.normal(ks[5], (256,), jnp.float32),
        "w4": 0.05 * jax.random.normal(ks[6], (N_ACTIONS, 256), jnp.float32),  # PyTorch Linear
        "b4": 0.05 * jax.random.normal(ks[7], (N_ACTIONS,), jnp.float32),
        # BatchNorm affine params at PyTorch defaults
        "g1": jnp.ones((128,), jnp.float32), "beta1": jnp.zeros((128,), jnp.float32),
        "g2": jnp.ones((128,), jnp.float32), "beta2": jnp.zeros((128,), jnp.float32),
    }


def prepare_params(p):
    """One-time layout transforms, hoisted out of the hot path."""
    def conv_w(w_pt):
        # (C_out, C_in, kh, kw) -> (kh*kw*C_in, C_out): tap-major, C_in-minor rows
        cout, cin, kh, kw = w_pt.shape
        return jnp.transpose(w_pt, (2, 3, 1, 0)).reshape(kh * kw * cin, cout)

    row = lambda v: v.reshape(1, -1)
    w4p = jnp.zeros((256, HEAD_PAD), jnp.float32).at[:, :N_ACTIONS].set(p["w4"].T)
    b4p = jnp.zeros((1, HEAD_PAD), jnp.float32).at[:, :N_ACTIONS].set(p["b4"])
    return {
        "w1": conv_w(p["w1"]), "b1": row(p["b1"]), "g1": row(p["g1"]), "beta1": row(p["beta1"]),
        "w2": conv_w(p["w2"]), "b2": row(p["b2"]), "g2": row(p["g2"]), "beta2": row(p["beta2"]),
        "w3": conv_w(p["w3"]), "b3": row(p["b3"]),
        "w4": w4p, "b4": b4p,
    }


def q_cnn_forward(stateseq, fp):
    """stateseq: (B, 4, 4) raw tile values; fp: prepare_params(...) output."""
    B = stateseq.shape[0]
    board = stateseq.reshape(B, 16).astype(jnp.float32)            # lane-dense (B, 16)

    args = (board,
            fp["w1"], fp["b1"], fp["g1"], fp["beta1"],
            fp["w2"], fp["b2"], fp["g2"], fp["beta2"],
            fp["w3"], fp["b3"],
            fp["w4"], fp["b4"])

    out_pad = pl.pallas_call(
        _qcnn_fused_kernel,
        out_shape=jax.ShapeDtypeStruct((B, HEAD_PAD), jnp.float32),
        in_specs=[pl.BlockSpec(memory_space=pltpu.MemorySpace.VMEM) for _ in args],
        out_specs=pl.BlockSpec(memory_space=pltpu.MemorySpace.VMEM),
    )(*args)
    return out_pad[:, :N_ACTIONS]


# ------------------------- pure-JAX reference check --------------------------

def reference_forward(stateseq, p):
    B = stateseq.shape[0]
    lg = jnp.floor(jnp.log2(1.0 + stateseq.astype(jnp.float32)))
    x = jax.nn.one_hot(lg.astype(jnp.int32), MAX_LOG2NUM, dtype=jnp.float32)   # NHWC

    def conv(h, w_pt, b):
        w = jnp.transpose(w_pt, (2, 3, 1, 0))   # HWIO
        y = jax.lax.conv_general_dilated(
            h, w, window_strides=(1, 1), padding="VALID",
            dimension_numbers=("NHWC", "HWIO", "NHWC"),
            precision=jax.lax.Precision.HIGHEST)
        return y + b

    def bn(h, g, beta):
        m = jnp.mean(h, axis=(0, 1, 2), keepdims=True)
        v = jnp.mean((h - m) ** 2, axis=(0, 1, 2), keepdims=True)
        return g * (h - m) * jax.lax.rsqrt(v + BN_EPS) + beta

    leaky = lambda h: jnp.where(h >= 0.0, h, LEAKY_SLOPE * h)

    h1 = bn(leaky(conv(x, p["w1"], p["b1"])), p["g1"], p["beta1"])
    h2 = bn(leaky(conv(h1, p["w2"], p["b2"])), p["g2"], p["beta2"])
    h3 = leaky(conv(h2, p["w3"], p["b3"])).reshape(B, 256)
    q = jnp.dot(h3, p["w4"].T, precision=jax.lax.Precision.HIGHEST) + p["b4"]
    return jnp.exp2(q) - 1.0


if __name__ == "__main__":
    key = jax.random.PRNGKey(0)
    pkey, xkey = jax.random.split(key)
    params = init_params(pkey)
    fused_params = prepare_params(params)      # layout transforms done once, off the hot path

    # 2048-style boards: batch of 2 boards of 4x4 tiles with values 0 or 2**k
    exps = jax.random.randint(xkey, (2, 4, 4), 0, 12)
    stateseq = jnp.where(exps == 0, 0, 2 ** exps).astype(jnp.float32)

    out = jax.jit(q_cnn_forward)(stateseq, fused_params)
    out = jax.block_until_ready(out)

    ref = reference_forward(stateseq, params)
    np.testing.assert_allclose(np.asarray(out), np.asarray(ref), rtol=5e-3, atol=5e-3)

    print("KERNEL_OK")
</pallas_src>

<mosaic_0001>
module attributes {stable_mosaic.version = 11 : i64} {
  func.func @_qcnn_fused_kernel(%arg0: memref<2x16xf32, #tpu.memory_space<vmem>>, %arg1: memref<64x128xf32, #tpu.memory_space<vmem>>, %arg2: memref<1x128xf32, #tpu.memory_space<vmem>>, %arg3: memref<1x128xf32, #tpu.memory_space<vmem>>, %arg4: memref<1x128xf32, #tpu.memory_space<vmem>>, %arg5: memref<512x128xf32, #tpu.memory_space<vmem>>, %arg6: memref<1x128xf32, #tpu.memory_space<vmem>>, %arg7: memref<1x128xf32, #tpu.memory_space<vmem>>, %arg8: memref<1x128xf32, #tpu.memory_space<vmem>>, %arg9: memref<512x256xf32, #tpu.memory_space<vmem>>, %arg10: memref<1x256xf32, #tpu.memory_space<vmem>>, %arg11: memref<256x128xf32, #tpu.memory_space<vmem>>, %arg12: memref<1x128xf32, #tpu.memory_space<vmem>>, %arg13: memref<2x128xf32, #tpu.memory_space<vmem>>) attributes {dimension_semantics = [], scalar_prefetch = 0 : i64, scratch_operands = 0 : i64, tpu.core_type = #tpu.core_type<tc>} {
    %c0 = arith.constant 0 : index
    %c0_0 = arith.constant 0 : index
    %0 = vector.load %arg0[%c0, %c0_0] : memref<2x16xf32, #tpu.memory_space<vmem>>, vector<2x16xf32>
    %cst = arith.constant 1.000000e+00 : f32
    %1 = vector.broadcast %cst : f32 to vector<2x16xf32>
    %2 = arith.addf %1, %0 : vector<2x16xf32>
    %3 = math.log %2 : vector<2x16xf32>
    %cst_1 = arith.constant 2.000000e+00 : f32
    %4 = math.log %cst_1 : f32
    %5 = vector.broadcast %4 : f32 to vector<2x16xf32>
    %6 = arith.divf %3, %5 : vector<2x16xf32>
    %7 = math.floor %6 : vector<2x16xf32>
    %8 = arith.fptosi %7 : vector<2x16xf32> to vector<2x16xi32>
    %9 = tpu.iota {dimensions = array<i32: 1>} : vector<2x16xi32>
    %10 = vector.extract_strided_slice %8 {offsets = [0, 0], sizes = [2, 1], strides = [1, 1]} : vector<2x16xi32> to vector<2x1xi32>
    %11 = vector.broadcast %10 : vector<2x1xi32> to vector<2x16xi32>
    %12 = arith.cmpi eq, %11, %9 : vector<2x16xi32>
    %13 = arith.extui %12 : vector<2x16xi1> to vector<2x16xi32>
    %14 = arith.sitofp %13 : vector<2x16xi32> to vector<2x16xf32>
    %15 = vector.extract_strided_slice %8 {offsets = [0, 1], sizes = [2, 1], strides = [1, 1]} : vector<2x16xi32> to vector<2x1xi32>
    %16 = vector.broadcast %15 : vector<2x1xi32> to vector<2x16xi32>
    %17 = arith.cmpi eq, %16, %9 : vector<2x16xi32>
    %18 = arith.extui %17 : vector<2x16xi1> to vector<2x16xi32>
    %19 = arith.sitofp %18 : vector<2x16xi32> to vector<2x16xf32>
    %20 = vector.extract_strided_slice %8 {offsets = [0, 2], sizes = [2, 1], strides = [1, 1]} : vector<2x16xi32> to vector<2x1xi32>
    %21 = vector.broadcast %20 : vector<2x1xi32> to vector<2x16xi32>
    %22 = arith.cmpi eq, %21, %9 : vector<2x16xi32>
    %23 = arith.extui %22 : vector<2x16xi1> to vector<2x16xi32>
    %24 = arith.sitofp %23 : vector<2x16xi32> to vector<2x16xf32>
    %25 = vector.extract_strided_slice %8 {offsets = [0, 3], sizes = [2, 1], strides = [1, 1]} : vector<2x16xi32> to vector<2x1xi32>
    %26 = vector.broadcast %25 : vector<2x1xi32> to vector<2x16xi32>
    %27 = arith.cmpi eq, %26, %9 : vector<2x16xi32>
    %28 = arith.extui %27 : vector<2x16xi1> to vector<2x16xi32>
    %29 = arith.sitofp %28 : vector<2x16xi32> to vector<2x16xf32>
    %30 = vector.extract_strided_slice %8 {offsets = [0, 4], sizes = [2, 1], strides = [1, 1]} : vector<2x16xi32> to vector<2x1xi32>
    %31 = vector.broadcast %30 : vector<2x1xi32> to vector<2x16xi32>
    %32 = arith.cmpi eq, %31, %9 : vector<2x16xi32>
    %33 = arith.extui %32 : vector<2x16xi1> to vector<2x16xi32>
    %34 = arith.sitofp %33 : vector<2x16xi32> to vector<2x16xf32>
    %35 = vector.extract_strided_slice %8 {offsets = [0, 5], sizes = [2, 1], strides = [1, 1]} : vector<2x16xi32> to vector<2x1xi32>
    %36 = vector.broadcast %35 : vector<2x1xi32> to vector<2x16xi32>
    %37 = arith.cmpi eq, %36, %9 : vector<2x16xi32>
    %38 = arith.extui %37 : vector<2x16xi1> to vector<2x16xi32>
    %39 = arith.sitofp %38 : vector<2x16xi32> to vector<2x16xf32>
    %40 = vector.extract_strided_slice %8 {offsets = [0, 6], sizes = [2, 1], strides = [1, 1]} : vector<2x16xi32> to vector<2x1xi32>
    %41 = vector.broadcast %40 : vector<2x1xi32> to vector<2x16xi32>
    %42 = arith.cmpi eq, %41, %9 : vector<2x16xi32>
    %43 = arith.extui %42 : vector<2x16xi1> to vector<2x16xi32>
    %44 = arith.sitofp %43 : vector<2x16xi32> to vector<2x16xf32>
    %45 = vector.extract_strided_slice %8 {offsets = [0, 7], sizes = [2, 1], strides = [1, 1]} : vector<2x16xi32> to vector<2x1xi32>
    %46 = vector.broadcast %45 : vector<2x1xi32> to vector<2x16xi32>
    %47 = arith.cmpi eq, %46, %9 : vector<2x16xi32>
    %48 = arith.extui %47 : vector<2x16xi1> to vector<2x16xi32>
    %49 = arith.sitofp %48 : vector<2x16xi32> to vector<2x16xf32>
    %50 = vector.extract_strided_slice %8 {offsets = [0, 8], sizes = [2, 1], strides = [1, 1]} : vector<2x16xi32> to vector<2x1xi32>
    %51 = vector.broadcast %50 : vector<2x1xi32> to vector<2x16xi32>
    %52 = arith.cmpi eq, %51, %9 : vector<2x16xi32>
    %53 = arith.extui %52 : vector<2x16xi1> to vector<2x16xi32>
    %54 = arith.sitofp %53 : vector<2x16xi32> to vector<2x16xf32>
    %55 = vector.extract_strided_slice %8 {offsets = [0, 9], sizes = [2, 1], strides = [1, 1]} : vector<2x16xi32> to vector<2x1xi32>
    %56 = vector.broadcast %55 : vector<2x1xi32> to vector<2x16xi32>
    %57 = arith.cmpi eq, %56, %9 : vector<2x16xi32>
    %58 = arith.extui %57 : vector<2x16xi1> to vector<2x16xi32>
    %59 = arith.sitofp %58 : vector<2x16xi32> to vector<2x16xf32>
    %60 = vector.extract_strided_slice %8 {offsets = [0, 10], sizes = [2, 1], strides = [1, 1]} : vector<2x16xi32> to vector<2x1xi32>
    %61 = vector.broadcast %60 : vector<2x1xi32> to vector<2x16xi32>
    %62 = arith.cmpi eq, %61, %9 : vector<2x16xi32>
    %63 = arith.extui %62 : vector<2x16xi1> to vector<2x16xi32>
    %64 = arith.sitofp %63 : vector<2x16xi32> to vector<2x16xf32>
    %65 = vector.extract_strided_slice %8 {offsets = [0, 11], sizes = [2, 1], strides = [1, 1]} : vector<2x16xi32> to vector<2x1xi32>
    %66 = vector.broadcast %65 : vector<2x1xi32> to vector<2x16xi32>
    %67 = arith.cmpi eq, %66, %9 : vector<2x16xi32>
    %68 = arith.extui %67 : vector<2x16xi1> to vector<2x16xi32>
    %69 = arith.sitofp %68 : vector<2x16xi32> to vector<2x16xf32>
    %70 = vector.extract_strided_slice %8 {offsets = [0, 12], sizes = [2, 1], strides = [1, 1]} : vector<2x16xi32> to vector<2x1xi32>
    %71 = vector.broadcast %70 : vector<2x1xi32> to vector<2x16xi32>
    %72 = arith.cmpi eq, %71, %9 : vector<2x16xi32>
    %73 = arith.extui %72 : vector<2x16xi1> to vector<2x16xi32>
    %74 = arith.sitofp %73 : vector<2x16xi32> to vector<2x16xf32>
    %75 = vector.extract_strided_slice %8 {offsets = [0, 13], sizes = [2, 1], strides = [1, 1]} : vector<2x16xi32> to vector<2x1xi32>
    %76 = vector.broadcast %75 : vector<2x1xi32> to vector<2x16xi32>
    %77 = arith.cmpi eq, %76, %9 : vector<2x16xi32>
    %78 = arith.extui %77 : vector<2x16xi1> to vector<2x16xi32>
    %79 = arith.sitofp %78 : vector<2x16xi32> to vector<2x16xf32>
    %80 = vector.extract_strided_slice %8 {offsets = [0, 14], sizes = [2, 1], strides = [1, 1]} : vector<2x16xi32> to vector<2x1xi32>
    %81 = vector.broadcast %80 : vector<2x1xi32> to vector<2x16xi32>
    %82 = arith.cmpi eq, %81, %9 : vector<2x16xi32>
    %83 = arith.extui %82 : vector<2x16xi1> to vector<2x16xi32>
    %84 = arith.sitofp %83 : vector<2x16xi32> to vector<2x16xf32>
    %85 = vector.extract_strided_slice %8 {offsets = [0, 15], sizes = [2, 1], strides = [1, 1]} : vector<2x16xi32> to vector<2x1xi32>
    %86 = vector.broadcast %85 : vector<2x1xi32> to vector<2x16xi32>
    %87 = arith.cmpi eq, %86, %9 : vector<2x16xi32>
    %88 = arith.extui %87 : vector<2x16xi1> to vector<2x16xi32>
    %89 = arith.sitofp %88 : vector<2x16xi32> to vector<2x16xf32>
    %c0_2 = arith.constant 0 : index
    %c0_3 = arith.constant 0 : index
    %90 = vector.load %arg1[%c0_2, %c0_3] : memref<64x128xf32, #tpu.memory_space<vmem>>, vector<16x128xf32>
    %c16 = arith.constant 16 : index
    %c0_4 = arith.constant 0 : index
    %91 = vector.load %arg1[%c16, %c0_4] : memref<64x128xf32, #tpu.memory_space<vmem>>, vector<16x128xf32>
    %c32 = arith.constant 32 : index
    %c0_5 = arith.constant 0 : index
    %92 = vector.load %arg1[%c32, %c0_5] : memref<64x128xf32, #tpu.memory_space<vmem>>, vector<16x128xf32>
    %c48 = arith.constant 48 : index
    %c0_6 = arith.constant 0 : index
    %93 = vector.load %arg1[%c48, %c0_6] : memref<64x128xf32, #tpu.memory_space<vmem>>, vector<16x128xf32>
    %c0_7 = arith.constant 0 : index
    %c0_8 = arith.constant 0 : index
    %94 = vector.load %arg2[%c0_7, %c0_8] : memref<1x128xf32, #tpu.memory_space<vmem>>, vector<1x128xf32>
    %cst_9 = arith.constant dense<0.000000e+00> : vector<2x128xf32>
    %95 = tpu.matmul %14, %90, %cst_9 {dimension_numbers = #tpu.dot_dimension_numbers<[1], [0], [0], [1], [0, 0, 1, 1], [], []>} : vector<2x16xf32>, vector<16x128xf32>, vector<2x128xf32> -> vector<2x128xf32>
    %cst_10 = arith.constant dense<0.000000e+00> : vector<2x128xf32>
    %96 = tpu.matmul %19, %91, %cst_10 {dimension_numbers = #tpu.dot_dimension_numbers<[1], [0], [0], [1], [0, 0, 1, 1], [], []>} : vector<2x16xf32>, vector<16x128xf32>, vector<2x128xf32> -> vector<2x128xf32>
    %97 = arith.addf %95, %96 : vector<2x128xf32>
    %cst_11 = arith.constant dense<0.000000e+00> : vector<2x128xf32>
    %98 = tpu.matmul %34, %92, %cst_11 {dimension_numbers = #tpu.dot_dimension_numbers<[1], [0], [0], [1], [0, 0, 1, 1], [], []>} : vector<2x16xf32>, vector<16x128xf32>, vector<2x128xf32> -> vector<2x128xf32>
    %99 = arith.addf %97, %98 : vector<2x128xf32>
    %cst_12 = arith.constant dense<0.000000e+00> : vector<2x128xf32>
    %100 = tpu.matmul %39, %93, %cst_12 {dimension_numbers = #tpu.dot_dimension_numbers<[1], [0], [0], [1], [0, 0, 1, 1], [], []>} : vector<2x16xf32>, vector<16x128xf32>, vector<2x128xf32> -> vector<2x128xf32>
    %101 = arith.addf %99, %100 : vector<2x128xf32>
    %102 = vector.broadcast %94 : vector<1x128xf32> to vector<2x128xf32>
    %103 = arith.addf %101, %102 : vector<2x128xf32>
    %cst_13 = arith.constant 0.000000e+00 : f32
    %104 = vector.broadcast %cst_13 : f32 to vector<2x128xf32>
    %105 = arith.cmpf oge, %103, %104 : vector<2x128xf32>
    %cst_14 = arith.constant 5.000000e-02 : f32
    %106 = vector.broadcast %cst_14 : f32 to vector<2x128xf32>
    %107 = arith.mulf %106, %103 : vector<2x128xf32>
    %108 = arith.select %105, %103, %107 : vector<2x128xi1>, vector<2x128xf32>
    %cst_15 = arith.constant dense<0.000000e+00> : vector<2x128xf32>
    %109 = tpu.matmul %19, %90, %cst_15 {dimension_numbers = #tpu.dot_dimension_numbers<[1], [0], [0], [1], [0, 0, 1, 1], [], []>} : vector<2x16xf32>, vector<16x128xf32>, vector<2x128xf32> -> vector<2x128xf32>
    %cst_16 = arith.constant dense<0.000000e+00> : vector<2x128xf32>
    %110 = tpu.matmul %24, %91, %cst_16 {dimension_numbers = #tpu.dot_dimension_numbers<[1], [0], [0], [1], [0, 0, 1, 1], [], []>} : vector<2x16xf32>, vector<16x128xf32>, vector<2x128xf32> -> vector<2x128xf32>
    %111 = arith.addf %109, %110 : vector<2x128xf32>
    %cst_17 = arith.constant dense<0.000000e+00> : vector<2x128xf32>
    %112 = tpu.matmul %39, %92, %cst_17 {dimension_numbers = #tpu.dot_dimension_numbers<[1], [0], [0], [1], [0, 0, 1, 1], [], []>} : vector<2x16xf32>, vector<16x128xf32>, vector<2x128xf32> -> vector<2x128xf32>
    %113 = arith.addf %111, %112 : vector<2x128xf32>
    %cst_18 = arith.constant dense<0.000000e+00> : vector<2x128xf32>
    %114 = tpu.matmul %44, %93, %cst_18 {dimension_numbers = #tpu.dot_dimension_numbers<[1], [0], [0], [1], [0, 0, 1, 1], [], []>} : vector<2x16xf32>, vector<16x128xf32>, vector<2x128xf32> -> vector<2x128xf32>
    %115 = arith.addf %113, %114 : vector<2x128xf32>
    %116 = vector.broadcast %94 : vector<1x128xf32> to vector<2x128xf32>
    %117 = arith.addf %115, %116 : vector<2x128xf32>
    %cst_19 = arith.constant 0.000000e+00 : f32
    %118 = vector.broadcast %cst_19 : f32 to vector<2x128xf32>
    %119 = arith.cmpf oge, %117, %118 : vector<2x128xf32>
    %cst_20 = arith.constant 5.000000e-02 : f32
    %120 = vector.broadcast %cst_20 : f32 to vector<2x128xf32>
    %121 = arith.mulf %120, %117 : vector<2x128xf32>
    %122 = arith.select %119, %117, %121 : vector<2x128xi1>, vector<2x128xf32>
    %cst_21 = arith.constant dense<0.000000e+00> : vector<2x128xf32>
    %123 = tpu.matmul %24, %90, %cst_21 {dimension_numbers = #tpu.dot_dimension_numbers<[1], [0], [0], [1], [0, 0, 1, 1], [], []>} : vector<2x16xf32>, vector<16x128xf32>, vector<2x128xf32> -> vector<2x128xf32>
    %cst_22 = arith.constant dense<0.000000e+00> : vector<2x128xf32>
    %124 = tpu.matmul %29, %91, %cst_22 {dimension_numbers = #tpu.dot_dimension_numbers<[1], [0], [0], [1], [0, 0, 1, 1], [], []>} : vector<2x16xf32>, vector<16x128xf32>, vector<2x128xf32> -> vector<2x128xf32>
    %125 = arith.addf %123, %124 : vector<2x128xf32>
    %cst_23 = arith.constant dense<0.000000e+00> : vector<2x128xf32>
    %126 = tpu.matmul %44, %92, %cst_23 {dimension_numbers = #tpu.dot_dimension_numbers<[1], [0], [0], [1], [0, 0, 1, 1], [], []>} : vector<2x16xf32>, vector<16x128xf32>, vector<2x128xf32> -> vector<2x128xf32>
    %127 = arith.addf %125, %126 : vector<2x128xf32>
    %cst_24 = arith.constant dense<0.000000e+00> : vector<2x128xf32>
    %128 = tpu.matmul %49, %93, %cst_24 {dimension_numbers = #tpu.dot_dimension_numbers<[1], [0], [0], [1], [0, 0, 1, 1], [], []>} : vector<2x16xf32>, vector<16x128xf32>, vector<2x128xf32> -> vector<2x128xf32>
    %129 = arith.addf %127, %128 : vector<2x128xf32>
    %130 = vector.broadcast %94 : vector<1x128xf32> to vector<2x128xf32>
    %131 = arith.addf %129, %130 : vector<2x128xf32>
    %cst_25 = arith.constant 0.000000e+00 : f32
    %132 = vector.broadcast %cst_25 : f32 to vector<2x128xf32>
    %133 = arith.cmpf oge, %131, %132 : vector<2x128xf32>
    %cst_26 = arith.constant 5.000000e-02 : f32
    %134 = vector.broadcast %cst_26 : f32 to vector<2x128xf32>
    %135 = arith.mulf %134, %131 : vector<2x128xf32>
    %136 = arith.select %133, %131, %135 : vector<2x128xi1>, vector<2x128xf32>
    %cst_27 = arith.constant dense<0.000000e+00> : vector<2x128xf32>
    %137 = tpu.matmul %34, %90, %cst_27 {dimension_numbers = #tpu.dot_dimension_numbers<[1], [0], [0], [1], [0, 0, 1, 1], [], []>} : vector<2x16xf32>, vector<16x128xf32>, vector<2x128xf32> -> vector<2x128xf32>
    %cst_28 = arith.constant dense<0.000000e+00> : vector<2x128xf32>
    %138 = tpu.matmul %39, %91, %cst_28 {dimension_numbers = #tpu.dot_dimension_numbers<[1], [0], [0], [1], [0, 0, 1, 1], [], []>} : vector<2x16xf32>, vector<16x128xf32>, vector<2x128xf32> -> vector<2x128xf32>
    %139 = arith.addf %137, %138 : vector<2x128xf32>
    %cst_29 = arith.constant dense<0.000000e+00> : vector<2x128xf32>
    %140 = tpu.matmul %54, %92, %cst_29 {dimension_numbers = #tpu.dot_dimension_numbers<[1], [0], [0], [1], [0, 0, 1, 1], [], []>} : vector<2x16xf32>, vector<16x128xf32>, vector<2x128xf32> -> vector<2x128xf32>
    %141 = arith.addf %139, %140 : vector<2x128xf32>
    %cst_30 = arith.constant dense<0.000000e+00> : vector<2x128xf32>
    %142 = tpu.matmul %59, %93, %cst_30 {dimension_numbers = #tpu.dot_dimension_numbers<[1], [0], [0], [1], [0, 0, 1, 1], [], []>} : vector<2x16xf32>, vector<16x128xf32>, vector<2x128xf32> -> vector<2x128xf32>
    %143 = arith.addf %141, %142 : vector<2x128xf32>
    %144 = vector.broadcast %94 : vector<1x128xf32> to vector<2x128xf32>
    %145 = arith.addf %143, %144 : vector<2x128xf32>
    %cst_31 = arith.constant 0.000000e+00 : f32
    %146 = vector.broadcast %cst_31 : f32 to vector<2x128xf32>
    %147 = arith.cmpf oge, %145, %146 : vector<2x128xf32>
    %cst_32 = arith.constant 5.000000e-02 : f32
    %148 = vector.broadcast %cst_32 : f32 to vector<2x128xf32>
    %149 = arith.mulf %148, %145 : vector<2x128xf32>
    %150 = arith.select %147, %145, %149 : vector<2x128xi1>, vector<2x128xf32>
    %cst_33 = arith.constant dense<0.000000e+00> : vector<2x128xf32>
    %151 = tpu.matmul %39, %90, %cst_33 {dimension_numbers = #tpu.dot_dimension_numbers<[1], [0], [0], [1], [0, 0, 1, 1], [], []>} : vector<2x16xf32>, vector<16x128xf32>, vector<2x128xf32> -> vector<2x128xf32>
    %cst_34 = arith.constant dense<0.000000e+00> : vector<2x128xf32>
    %152 = tpu.matmul %44, %91, %cst_34 {dimension_numbers = #tpu.dot_dimension_numbers<[1], [0], [0], [1], [0, 0, 1, 1], [], []>} : vector<2x16xf32>, vector<16x128xf32>, vector<2x128xf32> -> vector<2x128xf32>
    %153 = arith.addf %151, %152 : vector<2x128xf32>
    %cst_35 = arith.constant dense<0.000000e+00> : vector<2x128xf32>
    %154 = tpu.matmul %59, %92, %cst_35 {dimension_numbers = #tpu.dot_dimension_numbers<[1], [0], [0], [1], [0, 0, 1, 1], [], []>} : vector<2x16xf32>, vector<16x128xf32>, vector<2x128xf32> -> vector<2x128xf32>
    %155 = arith.addf %153, %154 : vector<2x128xf32>
    %cst_36 = arith.constant dense<0.000000e+00> : vector<2x128xf32>
    %156 = tpu.matmul %64, %93, %cst_36 {dimension_numbers = #tpu.dot_dimension_numbers<[1], [0], [0], [1], [0, 0, 1, 1], [], []>} : vector<2x16xf32>, vector<16x128xf32>, vector<2x128xf32> -> vector<2x128xf32>
    %157 = arith.addf %155, %156 : vector<2x128xf32>
    %158 = vector.broadcast %94 : vector<1x128xf32> to vector<2x128xf32>
    %159 = arith.addf %157, %158 : vector<2x128xf32>
    %cst_37 = arith.constant 0.000000e+00 : f32
    %160 = vector.broadcast %cst_37 : f32 to vector<2x128xf32>
    %161 = arith.cmpf oge, %159, %160 : vector<2x128xf32>
    %cst_38 = arith.constant 5.000000e-02 : f32
    %162 = vector.broadcast %cst_38 : f32 to vector<2x128xf32>
    %163 = arith.mulf %162, %159 : vector<2x128xf32>
    %164 = arith.select %161, %159, %163 : vector<2x128xi1>, vector<2x128xf32>
    %cst_39 = arith.constant dense<0.000000e+00> : vector<2x128xf32>
    %165 = tpu.matmul %44, %90, %cst_39 {dimension_numbers = #tpu.dot_dimension_numbers<[1], [0], [0], [1], [0, 0, 1, 1], [], []>} : vector<2x16xf32>, vector<16x128xf32>, vector<2x128xf32> -> vector<2x128xf32>
    %cst_40 = arith.constant dense<0.000000e+00> : vector<2x128xf32>
    %166 = tpu.matmul %49, %91, %cst_40 {dimension_numbers = #tpu.dot_dimension_numbers<[1], [0], [0], [1], [0, 0, 1, 1], [], []>} : vector<2x16xf32>, vector<16x128xf32>, vector<2x128xf32> -> vector<2x128xf32>
    %167 = arith.addf %165, %166 : vector<2x128xf32>
    %cst_41 = arith.constant dense<0.000000e+00> : vector<2x128xf32>
    %168 = tpu.matmul %64, %92, %cst_41 {dimension_numbers = #tpu.dot_dimension_numbers<[1], [0], [0], [1], [0, 0, 1, 1], [], []>} : vector<2x16xf32>, vector<16x128xf32>, vector<2x128xf32> -> vector<2x128xf32>
    %169 = arith.addf %167, %168 : vector<2x128xf32>
    %cst_42 = arith.constant dense<0.000000e+00> : vector<2x128xf32>
    %170 = tpu.matmul %69, %93, %cst_42 {dimension_numbers = #tpu.dot_dimension_numbers<[1], [0], [0], [1], [0, 0, 1, 1], [], []>} : vector<2x16xf32>, vector<16x128xf32>, vector<2x128xf32> -> vector<2x128xf32>
    %171 = arith.addf %169, %170 : vector<2x128xf32>
    %172 = vector.broadcast %94 : vector<1x128xf32> to vector<2x128xf32>
    %173 = arith.addf %171, %172 : vector<2x128xf32>
    %cst_43 = arith.constant 0.000000e+00 : f32
    %174 = vector.broadcast %cst_43 : f32 to vector<2x128xf32>
    %175 = arith.cmpf oge, %173, %174 : vector<2x128xf32>
    %cst_44 = arith.constant 5.000000e-02 : f32
    %176 = vector.broadcast %cst_44 : f32 to vector<2x128xf32>
    %177 = arith.mulf %176, %173 : vector<2x128xf32>
    %178 = arith.select %175, %173, %177 : vector<2x128xi1>, vector<2x128xf32>
    %cst_45 = arith.constant dense<0.000000e+00> : vector<2x128xf32>
    %179 = tpu.matmul %54, %90, %cst_45 {dimension_numbers = #tpu.dot_dimension_numbers<[1], [0], [0], [1], [0, 0, 1, 1], [], []>} : vector<2x16xf32>, vector<16x128xf32>, vector<2x128xf32> -> vector<2x128xf32>
    %cst_46 = arith.constant dense<0.000000e+00> : vector<2x128xf32>
    %180 = tpu.matmul %59, %91, %cst_46 {dimension_numbers = #tpu.dot_dimension_numbers<[1], [0], [0], [1], [0, 0, 1, 1], [], []>} : vector<2x16xf32>, vector<16x128xf32>, vector<2x128xf32> -> vector<2x128xf32>
    %181 = arith.addf %179, %180 : vector<2x128xf32>
    %cst_47 = arith.constant dense<0.000000e+00> : vector<2x128xf32>
    %182 = tpu.matmul %74, %92, %cst_47 {dimension_numbers = #tpu.dot_dimension_numbers<[1], [0], [0], [1], [0, 0, 1, 1], [], []>} : vector<2x16xf32>, vector<16x128xf32>, vector<2x128xf32> -> vector<2x128xf32>
    %183 = arith.addf %181, %182 : vector<2x128xf32>
    %cst_48 = arith.constant dense<0.000000e+00> : vector<2x128xf32>
    %184 = tpu.matmul %79, %93, %cst_48 {dimension_numbers = #tpu.dot_dimension_numbers<[1], [0], [0], [1], [0, 0, 1, 1], [], []>} : vector<2x16xf32>, vector<16x128xf32>, vector<2x128xf32> -> vector<2x128xf32>
    %185 = arith.addf %183, %184 : vector<2x128xf32>
    %186 = vector.broadcast %94 : vector<1x128xf32> to vector<2x128xf32>
    %187 = arith.addf %185, %186 : vector<2x128xf32>
    %cst_49 = arith.constant 0.000000e+00 : f32
    %188 = vector.broadcast %cst_49 : f32 to vector<2x128xf32>
    %189 = arith.cmpf oge, %187, %188 : vector<2x128xf32>
    %cst_50 = arith.constant 5.000000e-02 : f32
    %190 = vector.broadcast %cst_50 : f32 to vector<2x128xf32>
    %191 = arith.mulf %190, %187 : vector<2x128xf32>
    %192 = arith.select %189, %187, %191 : vector<2x128xi1>, vector<2x128xf32>
    %cst_51 = arith.constant dense<0.000000e+00> : vector<2x128xf32>
    %193 = tpu.matmul %59, %90, %cst_51 {dimension_numbers = #tpu.dot_dimension_numbers<[1], [0], [0], [1], [0, 0, 1, 1], [], []>} : vector<2x16xf32>, vector<16x128xf32>, vector<2x128xf32> -> vector<2x128xf32>
    %cst_52 = arith.constant dense<0.000000e+00> : vector<2x128xf32>
    %194 = tpu.matmul %64, %91, %cst_52 {dimension_numbers = #tpu.dot_dimension_numbers<[1], [0], [0], [1], [0, 0, 1, 1], [], []>} : vector<2x16xf32>, vector<16x128xf32>, vector<2x128xf32> -> vector<2x128xf32>
    %195 = arith.addf %193, %194 : vector<2x128xf32>
    %cst_53 = arith.constant dense<0.000000e+00> : vector<2x128xf32>
    %196 = tpu.matmul %79, %92, %cst_53 {dimension_numbers = #tpu.dot_dimension_numbers<[1], [0], [0], [1], [0, 0, 1, 1], [], []>} : vector<2x16xf32>, vector<16x128xf32>, vector<2x128xf32> -> vector<2x128xf32>
    %197 = arith.addf %195, %196 : vector<2x128xf32>
    %cst_54 = arith.constant dense<0.000000e+00> : vector<2x128xf32>
    %198 = tpu.matmul %84, %93, %cst_54 {dimension_numbers = #tpu.dot_dimension_numbers<[1], [0], [0], [1], [0, 0, 1, 1], [], []>} : vector<2x16xf32>, vector<16x128xf32>, vector<2x128xf32> -> vector<2x128xf32>
    %199 = arith.addf %197, %198 : vector<2x128xf32>
    %200 = vector.broadcast %94 : vector<1x128xf32> to vector<2x128xf32>
    %201 = arith.addf %199, %200 : vector<2x128xf32>
    %cst_55 = arith.constant 0.000000e+00 : f32
    %202 = vector.broadcast %cst_55 : f32 to vector<2x128xf32>
    %203 = arith.cmpf oge, %201, %202 : vector<2x128xf32>
    %cst_56 = arith.constant 5.000000e-02 : f32
    %204 = vector.broadcast %cst_56 : f32 to vector<2x128xf32>
    %205 = arith.mulf %204, %201 : vector<2x128xf32>
    %206 = arith.select %203, %201, %205 : vector<2x128xi1>, vector<2x128xf32>
    %cst_57 = arith.constant dense<0.000000e+00> : vector<2x128xf32>
    %207 = tpu.matmul %64, %90, %cst_57 {dimension_numbers = #tpu.dot_dimension_numbers<[1], [0], [0], [1], [0, 0, 1, 1], [], []>} : vector<2x16xf32>, vector<16x128xf32>, vector<2x128xf32> -> vector<2x128xf32>
    %cst_58 = arith.constant dense<0.000000e+00> : vector<2x128xf32>
    %208 = tpu.matmul %69, %91, %cst_58 {dimension_numbers = #tpu.dot_dimension_numbers<[1], [0], [0], [1], [0, 0, 1, 1], [], []>} : vector<2x16xf32>, vector<16x128xf32>, vector<2x128xf32> -> vector<2x128xf32>
    %209 = arith.addf %207, %208 : vector<2x128xf32>
    %cst_59 = arith.constant dense<0.000000e+00> : vector<2x128xf32>
    %210 = tpu.matmul %84, %92, %cst_59 {dimension_numbers = #tpu.dot_dimension_numbers<[1], [0], [0], [1], [0, 0, 1, 1], [], []>} : vector<2x16xf32>, vector<16x128xf32>, vector<2x128xf32> -> vector<2x128xf32>
    %211 = arith.addf %209, %210 : vector<2x128xf32>
    %cst_60 = arith.constant dense<0.000000e+00> : vector<2x128xf32>
    %212 = tpu.matmul %89, %93, %cst_60 {dimension_numbers = #tpu.dot_dimension_numbers<[1], [0], [0], [1], [0, 0, 1, 1], [], []>} : vector<2x16xf32>, vector<16x128xf32>, vector<2x128xf32> -> vector<2x128xf32>
    %213 = arith.addf %211, %212 : vector<2x128xf32>
    %214 = vector.broadcast %94 : vector<1x128xf32> to vector<2x128xf32>
    %215 = arith.addf %213, %214 : vector<2x128xf32>
    %cst_61 = arith.constant 0.000000e+00 : f32
    %216 = vector.broadcast %cst_61 : f32 to vector<2x128xf32>
    %217 = arith.cmpf oge, %215, %216 : vector<2x128xf32>
    %cst_62 = arith.constant 5.000000e-02 : f32
    %218 = vector.broadcast %cst_62 : f32 to vector<2x128xf32>
    %219 = arith.mulf %218, %215 : vector<2x128xf32>
    %220 = arith.select %217, %215, %219 : vector<2x128xi1>, vector<2x128xf32>
    %c0_63 = arith.constant 0 : index
    %c0_64 = arith.constant 0 : index
    %221 = vector.load %arg3[%c0_63, %c0_64] : memref<1x128xf32, #tpu.memory_space<vmem>>, vector<1x128xf32>
    %c0_65 = arith.constant 0 : index
    %c0_66 = arith.constant 0 : index
    %222 = vector.load %arg4[%c0_65, %c0_66] : memref<1x128xf32, #tpu.memory_space<vmem>>, vector<1x128xf32>
    %cst_67 = arith.constant dense<0.000000e+00> : vector<128xf32>
    %223 = vector.multi_reduction <add>, %108, %cst_67 [0] : vector<2x128xf32> to vector<128xf32>
    %224 = vector.shape_cast %223 : vector<128xf32> to vector<1x128xf32>
    %cst_68 = arith.constant 0.000000e+00 : f32
    %225 = vector.broadcast %cst_68 : f32 to vector<1x128xf32>
    %226 = arith.addf %225, %224 : vector<1x128xf32>
    %cst_69 = arith.constant dense<0.000000e+00> : vector<128xf32>
    %227 = vector.multi_reduction <add>, %122, %cst_69 [0] : vector<2x128xf32> to vector<128xf32>
    %228 = vector.shape_cast %227 : vector<128xf32> to vector<1x128xf32>
    %229 = arith.addf %226, %228 : vector<1x128xf32>
    %cst_70 = arith.constant dense<0.000000e+00> : vector<128xf32>
    %230 = vector.multi_reduction <add>, %136, %cst_70 [0] : vector<2x128xf32> to vector<128xf32>
    %231 = vector.shape_cast %230 : vector<128xf32> to vector<1x128xf32>
    %232 = arith.addf %229, %231 : vector<1x128xf32>
    %cst_71 = arith.constant dense<0.000000e+00> : vector<128xf32>
    %233 = vector.multi_reduction <add>, %150, %cst_71 [0] : vector<2x128xf32> to vector<128xf32>
    %234 = vector.shape_cast %233 : vector<128xf32> to vector<1x128xf32>
    %235 = arith.addf %232, %234 : vector<1x128xf32>
    %cst_72 = arith.constant dense<0.000000e+00> : vector<128xf32>
    %236 = vector.multi_reduction <add>, %164, %cst_72 [0] : vector<2x128xf32> to vector<128xf32>
    %237 = vector.shape_cast %236 : vector<128xf32> to vector<1x128xf32>
    %238 = arith.addf %235, %237 : vector<1x128xf32>
    %cst_73 = arith.constant dense<0.000000e+00> : vector<128xf32>
    %239 = vector.multi_reduction <add>, %178, %cst_73 [0] : vector<2x128xf32> to vector<128xf32>
    %240 = vector.shape_cast %239 : vector<128xf32> to vector<1x128xf32>
    %241 = arith.addf %238, %240 : vector<1x128xf32>
    %cst_74 = arith.constant dense<0.000000e+00> : vector<128xf32>
    %242 = vector.multi_reduction <add>, %192, %cst_74 [0] : vector<2x128xf32> to vector<128xf32>
    %243 = vector.shape_cast %242 : vector<128xf32> to vector<1x128xf32>
    %244 = arith.addf %241, %243 : vector<1x128xf32>
    %cst_75 = arith.constant dense<0.000000e+00> : vector<128xf32>
    %245 = vector.multi_reduction <add>, %206, %cst_75 [0] : vector<2x128xf32> to vector<128xf32>
    %246 = vector.shape_cast %245 : vector<128xf32> to vector<1x128xf32>
    %247 = arith.addf %244, %246 : vector<1x128xf32>
    %cst_76 = arith.constant dense<0.000000e+00> : vector<128xf32>
    %248 = vector.multi_reduction <add>, %220, %cst_76 [0] : vector<2x128xf32> to vector<128xf32>
    %249 = vector.shape_cast %248 : vector<128xf32> to vector<1x128xf32>
    %250 = arith.addf %247, %249 : vector<1x128xf32>
    %cst_77 = arith.constant 1.800000e+01 : f32
    %251 = vector.broadcast %cst_77 : f32 to vector<1x128xf32>
    %252 = arith.divf %250, %251 : vector<1x128xf32>
    %253 = vector.broadcast %252 : vector<1x128xf32> to vector<2x128xf32>
    %254 = arith.subf %108, %253 : vector<2x128xf32>
    %255 = arith.mulf %254, %254 : vector<2x128xf32>
    %cst_78 = arith.constant dense<0.000000e+00> : vector<128xf32>
    %256 = vector.multi_reduction <add>, %255, %cst_78 [0] : vector<2x128xf32> to vector<128xf32>
    %257 = vector.shape_cast %256 : vector<128xf32> to vector<1x128xf32>
    %cst_79 = arith.constant 0.000000e+00 : f32
    %258 = vector.broadcast %cst_79 : f32 to vector<1x128xf32>
    %259 = arith.addf %258, %257 : vector<1x128xf32>
    %260 = vector.broadcast %252 : vector<1x128xf32> to vector<2x128xf32>
    %261 = arith.subf %122, %260 : vector<2x128xf32>
    %262 = arith.mulf %261, %261 : vector<2x128xf32>
    %cst_80 = arith.constant dense<0.000000e+00> : vector<128xf32>
    %263 = vector.multi_reduction <add>, %262, %cst_80 [0] : vector<2x128xf32> to vector<128xf32>
    %264 = vector.shape_cast %263 : vector<128xf32> to vector<1x128xf32>
    %265 = arith.addf %259, %264 : vector<1x128xf32>
    %266 = vector.broadcast %252 : vector<1x128xf32> to vector<2x128xf32>
    %267 = arith.subf %136, %266 : vector<2x128xf32>
    %268 = arith.mulf %267, %267 : vector<2x128xf32>
    %cst_81 = arith.constant dense<0.000000e+00> : vector<128xf32>
    %269 = vector.multi_reduction <add>, %268, %cst_81 [0] : vector<2x128xf32> to vector<128xf32>
    %270 = vector.shape_cast %269 : vector<128xf32> to vector<1x128xf32>
    %271 = arith.addf %265, %270 : vector<1x128xf32>
    %272 = vector.broadcast %252 : vector<1x128xf32> to vector<2x128xf32>
    %273 = arith.subf %150, %272 : vector<2x128xf32>
    %274 = arith.mulf %273, %273 : vector<2x128xf32>
    %cst_82 = arith.constant dense<0.000000e+00> : vector<128xf32>
    %275 = vector.multi_reduction <add>, %274, %cst_82 [0] : vector<2x128xf32> to vector<128xf32>
    %276 = vector.shape_cast %275 : vector<128xf32> to vector<1x128xf32>
    %277 = arith.addf %271, %276 : vector<1x128xf32>
    %278 = vector.broadcast %252 : vector<1x128xf32> to vector<2x128xf32>
    %279 = arith.subf %164, %278 : vector<2x128xf32>
    %280 = arith.mulf %279, %279 : vector<2x128xf32>
    %cst_83 = arith.constant dense<0.000000e+00> : vector<128xf32>
    %281 = vector.multi_reduction <add>, %280, %cst_83 [0] : vector<2x128xf32> to vector<128xf32>
    %282 = vector.shape_cast %281 : vector<128xf32> to vector<1x128xf32>
    %283 = arith.addf %277, %282 : vector<1x128xf32>
    %284 = vector.broadcast %252 : vector<1x128xf32> to vector<2x128xf32>
    %285 = arith.subf %178, %284 : vector<2x128xf32>
    %286 = arith.mulf %285, %285 : vector<2x128xf32>
    %cst_84 = arith.constant dense<0.000000e+00> : vector<128xf32>
    %287 = vector.multi_reduction <add>, %286, %cst_84 [0] : vector<2x128xf32> to vector<128xf32>
    %288 = vector.shape_cast %287 : vector<128xf32> to vector<1x128xf32>
    %289 = arith.addf %283, %288 : vector<1x128xf32>
    %290 = vector.broadcast %252 : vector<1x128xf32> to vector<2x128xf32>
    %291 = arith.subf %192, %290 : vector<2x128xf32>
    %292 = arith.mulf %291, %291 : vector<2x128xf32>
    %cst_85 = arith.constant dense<0.000000e+00> : vector<128xf32>
    %293 = vector.multi_reduction <add>, %292, %cst_85 [0] : vector<2x128xf32> to vector<128xf32>
    %294 = vector.shape_cast %293 : vector<128xf32> to vector<1x128xf32>
    %295 = arith.addf %289, %294 : vector<1x128xf32>
    %296 = vector.broadcast %252 : vector<1x128xf32> to vector<2x128xf32>
    %297 = arith.subf %206, %296 : vector<2x128xf32>
    %298 = arith.mulf %297, %297 : vector<2x128xf32>
    %cst_86 = arith.constant dense<0.000000e+00> : vector<128xf32>
    %299 = vector.multi_reduction <add>, %298, %cst_86 [0] : vector<2x128xf32> to vector<128xf32>
    %300 = vector.shape_cast %299 : vector<128xf32> to vector<1x128xf32>
    %301 = arith.addf %295, %300 : vector<1x128xf32>
    %302 = vector.broadcast %252 : vector<1x128xf32> to vector<2x128xf32>
    %303 = arith.subf %220, %302 : vector<2x128xf32>
    %304 = arith.mulf %303, %303 : vector<2x128xf32>
    %cst_87 = arith.constant dense<0.000000e+00> : vector<128xf32>
    %305 = vector.multi_reduction <add>, %304, %cst_87 [0] : vector<2x128xf32> to vector<128xf32>
    %306 = vector.shape_cast %305 : vector<128xf32> to vector<1x128xf32>
    %307 = arith.addf %301, %306 : vector<1x128xf32>
    %cst_88 = arith.constant 1.800000e+01 : f32
    %308 = vector.broadcast %cst_88 : f32 to vector<1x128xf32>
    %309 = arith.divf %307, %308 : vector<1x128xf32>
    %cst_89 = arith.constant 9.99999974E-6 : f32
    %310 = vector.broadcast %cst_89 : f32 to vector<1x128xf32>
    %311 = arith.addf %309, %310 : vector<1x128xf32>
    %312 = math.rsqrt %311 : vector<1x128xf32>
    %313 = arith.mulf %221, %312 : vector<1x128xf32>
    %314 = arith.mulf %252, %313 : vector<1x128xf32>
    %315 = arith.subf %222, %314 : vector<1x128xf32>
    %316 = vector.broadcast %313 : vector<1x128xf32> to vector<2x128xf32>
    %317 = arith.mulf %108, %316 : vector<2x128xf32>
    %318 = vector.broadcast %315 : vector<1x128xf32> to vector<2x128xf32>
    %319 = arith.addf %317, %318 : vector<2x128xf32>
    %320 = vector.broadcast %313 : vector<1x128xf32> to vector<2x128xf32>
    %321 = arith.mulf %122, %320 : vector<2x128xf32>
    %322 = vector.broadcast %315 : vector<1x128xf32> to vector<2x128xf32>
    %323 = arith.addf %321, %322 : vector<2x128xf32>
    %324 = vector.broadcast %313 : vector<1x128xf32> to vector<2x128xf32>
    %325 = arith.mulf %136, %324 : vector<2x128xf32>
    %326 = vector.broadcast %315 : vector<1x128xf32> to vector<2x128xf32>
    %327 = arith.addf %325, %326 : vector<2x128xf32>
    %328 = vector.broadcast %313 : vector<1x128xf32> to vector<2x128xf32>
    %329 = arith.mulf %150, %328 : vector<2x128xf32>
    %330 = vector.broadcast %315 : vector<1x128xf32> to vector<2x128xf32>
    %331 = arith.addf %329, %330 : vector<2x128xf32>
    %332 = vector.broadcast %313 : vector<1x128xf32> to vector<2x128xf32>
    %333 = arith.mulf %164, %332 : vector<2x128xf32>
    %334 = vector.broadcast %315 : vector<1x128xf32> to vector<2x128xf32>
    %335 = arith.addf %333, %334 : vector<2x128xf32>
    %336 = vector.broadcast %313 : vector<1x128xf32> to vector<2x128xf32>
    %337 = arith.mulf %178, %336 : vector<2x128xf32>
    %338 = vector.broadcast %315 : vector<1x128xf32> to vector<2x128xf32>
    %339 = arith.addf %337, %338 : vector<2x128xf32>
    %340 = vector.broadcast %313 : vector<1x128xf32> to vector<2x128xf32>
    %341 = arith.mulf %192, %340 : vector<2x128xf32>
    %342 = vector.broadcast %315 : vector<1x128xf32> to vector<2x128xf32>
    %343 = arith.addf %341, %342 : vector<2x128xf32>
    %344 = vector.broadcast %313 : vector<1x128xf32> to vector<2x128xf32>
    %345 = arith.mulf %206, %344 : vector<2x128xf32>
    %346 = vector.broadcast %315 : vector<1x128xf32> to vector<2x128xf32>
    %347 = arith.addf %345, %346 : vector<2x128xf32>
    %348 = vector.broadcast %313 : vector<1x128xf32> to vector<2x128xf32>
    %349 = arith.mulf %220, %348 : vector<2x128xf32>
    %350 = vector.broadcast %315 : vector<1x128xf32> to vector<2x128xf32>
    %351 = arith.addf %349, %350 : vector<2x128xf32>
    %c0_90 = arith.constant 0 : index
    %c0_91 = arith.constant 0 : index
    %352 = vector.load %arg5[%c0_90, %c0_91] : memref<512x128xf32, #tpu.memory_space<vmem>>, vector<128x128xf32>
    %c128 = arith.constant 128 : index
    %c0_92 = arith.constant 0 : index
    %353 = vector.load %arg5[%c128, %c0_92] : memref<512x128xf32, #tpu.memory_space<vmem>>, vector<128x128xf32>
    %c256 = arith.constant 256 : index
    %c0_93 = arith.constant 0 : index
    %354 = vector.load %arg5[%c256, %c0_93] : memref<512x128xf32, #tpu.memory_space<vmem>>, vector<128x128xf32>
    %c384 = arith.constant 384 : index
    %c0_94 = arith.constant 0 : index
    %355 = vector.load %arg5[%c384, %c0_94] : memref<512x128xf32, #tpu.memory_space<vmem>>, vector<128x128xf32>
    %c0_95 = arith.constant 0 : index
    %c0_96 = arith.constant 0 : index
    %356 = vector.load %arg6[%c0_95, %c0_96] : memref<1x128xf32, #tpu.memory_space<vmem>>, vector<1x128xf32>
    %cst_97 = arith.constant dense<0.000000e+00> : vector<2x128xf32>
    %357 = tpu.matmul %319, %352, %cst_97 {dimension_numbers = #tpu.dot_dimension_numbers<[1], [0], [0], [1], [0, 0, 1, 1], [], []>} : vector<2x128xf32>, vector<128x128xf32>, vector<2x128xf32> -> vector<2x128xf32>
    %cst_98 = arith.constant dense<0.000000e+00> : vector<2x128xf32>
    %358 = tpu.matmul %323, %353, %cst_98 {dimension_numbers = #tpu.dot_dimension_numbers<[1], [0], [0], [1], [0, 0, 1, 1], [], []>} : vector<2x128xf32>, vector<128x128xf32>, vector<2x128xf32> -> vector<2x128xf32>
    %359 = arith.addf %357, %358 : vector<2x128xf32>
    %cst_99 = arith.constant dense<0.000000e+00> : vector<2x128xf32>
    %360 = tpu.matmul %331, %354, %cst_99 {dimension_numbers = #tpu.dot_dimension_numbers<[1], [0], [0], [1], [0, 0, 1, 1], [], []>} : vector<2x128xf32>, vector<128x128xf32>, vector<2x128xf32> -> vector<2x128xf32>
    %361 = arith.addf %359, %360 : vector<2x128xf32>
    %cst_100 = arith.constant dense<0.000000e+00> : vector<2x128xf32>
    %362 = tpu.matmul %335, %355, %cst_100 {dimension_numbers = #tpu.dot_dimension_numbers<[1], [0], [0], [1], [0, 0, 1, 1], [], []>} : vector<2x128xf32>, vector<128x128xf32>, vector<2x128xf32> -> vector<2x128xf32>
    %363 = arith.addf %361, %362 : vector<2x128xf32>
    %364 = vector.broadcast %356 : vector<1x128xf32> to vector<2x128xf32>
    %365 = arith.addf %363, %364 : vector<2x128xf32>
    %cst_101 = arith.constant 0.000000e+00 : f32
    %366 = vector.broadcast %cst_101 : f32 to vector<2x128xf32>
    %367 = arith.cmpf oge, %365, %366 : vector<2x128xf32>
    %cst_102 = arith.constant 5.000000e-02 : f32
    %368 = vector.broadcast %cst_102 : f32 to vector<2x128xf32>
    %369 = arith.mulf %368, %365 : vector<2x128xf32>
    %370 = arith.select %367, %365, %369 : vector<2x128xi1>, vector<2x128xf32>
    %cst_103 = arith.constant dense<0.000000e+00> : vector<2x128xf32>
    %371 = tpu.matmul %323, %352, %cst_103 {dimension_numbers = #tpu.dot_dimension_numbers<[1], [0], [0], [1], [0, 0, 1, 1], [], []>} : vector<2x128xf32>, vector<128x128xf32>, vector<2x128xf32> -> vector<2x128xf32>
    %cst_104 = arith.constant dense<0.000000e+00> : vector<2x128xf32>
    %372 = tpu.matmul %327, %353, %cst_104 {dimension_numbers = #tpu.dot_dimension_numbers<[1], [0], [0], [1], [0, 0, 1, 1], [], []>} : vector<2x128xf32>, vector<128x128xf32>, vector<2x128xf32> -> vector<2x128xf32>
    %373 = arith.addf %371, %372 : vector<2x128xf32>
    %cst_105 = arith.constant dense<0.000000e+00> : vector<2x128xf32>
    %374 = tpu.matmul %335, %354, %cst_105 {dimension_numbers = #tpu.dot_dimension_numbers<[1], [0], [0], [1], [0, 0, 1, 1], [], []>} : vector<2x128xf32>, vector<128x128xf32>, vector<2x128xf32> -> vector<2x128xf32>
    %375 = arith.addf %373, %374 : vector<2x128xf32>
    %cst_106 = arith.constant dense<0.000000e+00> : vector<2x128xf32>
    %376 = tpu.matmul %339, %355, %cst_106 {dimension_numbers = #tpu.dot_dimension_numbers<[1], [0], [0], [1], [0, 0, 1, 1], [], []>} : vector<2x128xf32>, vector<128x128xf32>, vector<2x128xf32> -> vector<2x128xf32>
    %377 = arith.addf %375, %376 : vector<2x128xf32>
    %378 = vector.broadcast %356 : vector<1x128xf32> to vector<2x128xf32>
    %379 = arith.addf %377, %378 : vector<2x128xf32>
    %cst_107 = arith.constant 0.000000e+00 : f32
    %380 = vector.broadcast %cst_107 : f32 to vector<2x128xf32>
    %381 = arith.cmpf oge, %379, %380 : vector<2x128xf32>
    %cst_108 = arith.constant 5.000000e-02 : f32
    %382 = vector.broadcast %cst_108 : f32 to vector<2x128xf32>
    %383 = arith.mulf %382, %379 : vector<2x128xf32>
    %384 = arith.select %381, %379, %383 : vector<2x128xi1>, vector<2x128xf32>
    %cst_109 = arith.constant dense<0.000000e+00> : vector<2x128xf32>
    %385 = tpu.matmul %331, %352, %cst_109 {dimension_numbers = #tpu.dot_dimension_numbers<[1], [0], [0], [1], [0, 0, 1, 1], [], []>} : vector<2x128xf32>, vector<128x128xf32>, vector<2x128xf32> -> vector<2x128xf32>
    %cst_110 = arith.constant dense<0.000000e+00> : vector<2x128xf32>
    %386 = tpu.matmul %335, %353, %cst_110 {dimension_numbers = #tpu.dot_dimension_numbers<[1], [0], [0], [1], [0, 0, 1, 1], [], []>} : vector<2x128xf32>, vector<128x128xf32>, vector<2x128xf32> -> vector<2x128xf32>
    %387 = arith.addf %385, %386 : vector<2x128xf32>
    %cst_111 = arith.constant dense<0.000000e+00> : vector<2x128xf32>
    %388 = tpu.matmul %343, %354, %cst_111 {dimension_numbers = #tpu.dot_dimension_numbers<[1], [0], [0], [1], [0, 0, 1, 1], [], []>} : vector<2x128xf32>, vector<128x128xf32>, vector<2x128xf32> -> vector<2x128xf32>
    %389 = arith.addf %387, %388 : vector<2x128xf32>
    %cst_112 = arith.constant dense<0.000000e+00> : vector<2x128xf32>
    %390 = tpu.matmul %347, %355, %cst_112 {dimension_numbers = #tpu.dot_dimension_numbers<[1], [0], [0], [1], [0, 0, 1, 1], [], []>} : vector<2x128xf32>, vector<128x128xf32>, vector<2x128xf32> -> vector<2x128xf32>
    %391 = arith.addf %389, %390 : vector<2x128xf32>
    %392 = vector.broadcast %356 : vector<1x128xf32> to vector<2x128xf32>
    %393 = arith.addf %391, %392 : vector<2x128xf32>
    %cst_113 = arith.constant 0.000000e+00 : f32
    %394 = vector.broadcast %cst_113 : f32 to vector<2x128xf32>
    %395 = arith.cmpf oge, %393, %394 : vector<2x128xf32>
    %cst_114 = arith.constant 5.000000e-02 : f32
    %396 = vector.broadcast %cst_114 : f32 to vector<2x128xf32>
    %397 = arith.mulf %396, %393 : vector<2x128xf32>
    %398 = arith.select %395, %393, %397 : vector<2x128xi1>, vector<2x128xf32>
    %cst_115 = arith.constant dense<0.000000e+00> : vector<2x128xf32>
    %399 = tpu.matmul %335, %352, %cst_115 {dimension_numbers = #tpu.dot_dimension_numbers<[1], [0], [0], [1], [0, 0, 1, 1], [], []>} : vector<2x128xf32>, vector<128x128xf32>, vector<2x128xf32> -> vector<2x128xf32>
    %cst_116 = arith.constant dense<0.000000e+00> : vector<2x128xf32>
    %400 = tpu.matmul %339, %353, %cst_116 {dimension_numbers = #tpu.dot_dimension_numbers<[1], [0], [0], [1], [0, 0, 1, 1], [], []>} : vector<2x128xf32>, vector<128x128xf32>, vector<2x128xf32> -> vector<2x128xf32>
    %401 = arith.addf %399, %400 : vector<2x128xf32>
    %cst_117 = arith.constant dense<0.000000e+00> : vector<2x128xf32>
    %402 = tpu.matmul %347, %354, %cst_117 {dimension_numbers = #tpu.dot_dimension_numbers<[1], [0], [0], [1], [0, 0, 1, 1], [], []>} : vector<2x128xf32>, vector<128x128xf32>, vector<2x128xf32> -> vector<2x128xf32>
    %403 = arith.addf %401, %402 : vector<2x128xf32>
    %cst_118 = arith.constant dense<0.000000e+00> : vector<2x128xf32>
    %404 = tpu.matmul %351, %355, %cst_118 {dimension_numbers = #tpu.dot_dimension_numbers<[1], [0], [0], [1], [0, 0, 1, 1], [], []>} : vector<2x128xf32>, vector<128x128xf32>, vector<2x128xf32> -> vector<2x128xf32>
    %405 = arith.addf %403, %404 : vector<2x128xf32>
    %406 = vector.broadcast %356 : vector<1x128xf32> to vector<2x128xf32>
    %407 = arith.addf %405, %406 : vector<2x128xf32>
    %cst_119 = arith.constant 0.000000e+00 : f32
    %408 = vector.broadcast %cst_119 : f32 to vector<2x128xf32>
    %409 = arith.cmpf oge, %407, %408 : vector<2x128xf32>
    %cst_120 = arith.constant 5.000000e-02 : f32
    %410 = vector.broadcast %cst_120 : f32 to vector<2x128xf32>
    %411 = arith.mulf %410, %407 : vector<2x128xf32>
    %412 = arith.select %409, %407, %411 : vector<2x128xi1>, vector<2x128xf32>
    %c0_121 = arith.constant 0 : index
    %c0_122 = arith.constant 0 : index
    %413 = vector.load %arg7[%c0_121, %c0_122] : memref<1x128xf32, #tpu.memory_space<vmem>>, vector<1x128xf32>
    %c0_123 = arith.constant 0 : index
    %c0_124 = arith.constant 0 : index
    %414 = vector.load %arg8[%c0_123, %c0_124] : memref<1x128xf32, #tpu.memory_space<vmem>>, vector<1x128xf32>
    %cst_125 = arith.constant dense<0.000000e+00> : vector<128xf32>
    %415 = vector.multi_reduction <add>, %370, %cst_125 [0] : vector<2x128xf32> to vector<128xf32>
    %416 = vector.shape_cast %415 : vector<128xf32> to vector<1x128xf32>
    %cst_126 = arith.constant 0.000000e+00 : f32
    %417 = vector.broadcast %cst_126 : f32 to vector<1x128xf32>
    %418 = arith.addf %417, %416 : vector<1x128xf32>
    %cst_127 = arith.constant dense<0.000000e+00> : vector<128xf32>
    %419 = vector.multi_reduction <add>, %384, %cst_127 [0] : vector<2x128xf32> to vector<128xf32>
    %420 = vector.shape_cast %419 : vector<128xf32> to vector<1x128xf32>
    %421 = arith.addf %418, %420 : vector<1x128xf32>
    %cst_128 = arith.constant dense<0.000000e+00> : vector<128xf32>
    %422 = vector.multi_reduction <add>, %398, %cst_128 [0] : vector<2x128xf32> to vector<128xf32>
    %423 = vector.shape_cast %422 : vector<128xf32> to vector<1x128xf32>
    %424 = arith.addf %421, %423 : vector<1x128xf32>
    %cst_129 = arith.constant dense<0.000000e+00> : vector<128xf32>
    %425 = vector.multi_reduction <add>, %412, %cst_129 [0] : vector<2x128xf32> to vector<128xf32>
    %426 = vector.shape_cast %425 : vector<128xf32> to vector<1x128xf32>
    %427 = arith.addf %424, %426 : vector<1x128xf32>
    %cst_130 = arith.constant 8.000000e+00 : f32
    %428 = vector.broadcast %cst_130 : f32 to vector<1x128xf32>
    %429 = arith.divf %427, %428 : vector<1x128xf32>
    %430 = vector.broadcast %429 : vector<1x128xf32> to vector<2x128xf32>
    %431 = arith.subf %370, %430 : vector<2x128xf32>
    %432 = arith.mulf %431, %431 : vector<2x128xf32>
    %cst_131 = arith.constant dense<0.000000e+00> : vector<128xf32>
    %433 = vector.multi_reduction <add>, %432, %cst_131 [0] : vector<2x128xf32> to vector<128xf32>
    %434 = vector.shape_cast %433 : vector<128xf32> to vector<1x128xf32>
    %cst_132 = arith.constant 0.000000e+00 : f32
    %435 = vector.broadcast %cst_132 : f32 to vector<1x128xf32>
    %436 = arith.addf %435, %434 : vector<1x128xf32>
    %437 = vector.broadcast %429 : vector<1x128xf32> to vector<2x128xf32>
    %438 = arith.subf %384, %437 : vector<2x128xf32>
    %439 = arith.mulf %438, %438 : vector<2x128xf32>
    %cst_133 = arith.constant dense<0.000000e+00> : vector<128xf32>
    %440 = vector.multi_reduction <add>, %439, %cst_133 [0] : vector<2x128xf32> to vector<128xf32>
    %441 = vector.shape_cast %440 : vector<128xf32> to vector<1x128xf32>
    %442 = arith.addf %436, %441 : vector<1x128xf32>
    %443 = vector.broadcast %429 : vector<1x128xf32> to vector<2x128xf32>
    %444 = arith.subf %398, %443 : vector<2x128xf32>
    %445 = arith.mulf %444, %444 : vector<2x128xf32>
    %cst_134 = arith.constant dense<0.000000e+00> : vector<128xf32>
    %446 = vector.multi_reduction <add>, %445, %cst_134 [0] : vector<2x128xf32> to vector<128xf32>
    %447 = vector.shape_cast %446 : vector<128xf32> to vector<1x128xf32>
    %448 = arith.addf %442, %447 : vector<1x128xf32>
    %449 = vector.broadcast %429 : vector<1x128xf32> to vector<2x128xf32>
    %450 = arith.subf %412, %449 : vector<2x128xf32>
    %451 = arith.mulf %450, %450 : vector<2x128xf32>
    %cst_135 = arith.constant dense<0.000000e+00> : vector<128xf32>
    %452 = vector.multi_reduction <add>, %451, %cst_135 [0] : vector<2x128xf32> to vector<128xf32>
    %453 = vector.shape_cast %452 : vector<128xf32> to vector<1x128xf32>
    %454 = arith.addf %448, %453 : vector<1x128xf32>
    %cst_136 = arith.constant 8.000000e+00 : f32
    %455 = vector.broadcast %cst_136 : f32 to vector<1x128xf32>
    %456 = arith.divf %454, %455 : vector<1x128xf32>
    %cst_137 = arith.constant 9.99999974E-6 : f32
    %457 = vector.broadcast %cst_137 : f32 to vector<1x128xf32>
    %458 = arith.addf %456, %457 : vector<1x128xf32>
    %459 = math.rsqrt %458 : vector<1x128xf32>
    %460 = arith.mulf %413, %459 : vector<1x128xf32>
    %461 = arith.mulf %429, %460 : vector<1x128xf32>
    %462 = arith.subf %414, %461 : vector<1x128xf32>
    %463 = vector.broadcast %460 : vector<1x128xf32> to vector<2x128xf32>
    %464 = arith.mulf %370, %463 : vector<2x128xf32>
    %465 = vector.broadcast %462 : vector<1x128xf32> to vector<2x128xf32>
    %466 = arith.addf %464, %465 : vector<2x128xf32>
    %467 = vector.broadcast %460 : vector<1x128xf32> to vector<2x128xf32>
    %468 = arith.mulf %384, %467 : vector<2x128xf32>
    %469 = vector.broadcast %462 : vector<1x128xf32> to vector<2x128xf32>
    %470 = arith.addf %468, %469 : vector<2x128xf32>
    %471 = vector.broadcast %460 : vector<1x128xf32> to vector<2x128xf32>
    %472 = arith.mulf %398, %471 : vector<2x128xf32>
    %473 = vector.broadcast %462 : vector<1x128xf32> to vector<2x128xf32>
    %474 = arith.addf %472, %473 : vector<2x128xf32>
    %475 = vector.broadcast %460 : vector<1x128xf32> to vector<2x128xf32>
    %476 = arith.mulf %412, %475 : vector<2x128xf32>
    %477 = vector.broadcast %462 : vector<1x128xf32> to vector<2x128xf32>
    %478 = arith.addf %476, %477 : vector<2x128xf32>
    %c0_138 = arith.constant 0 : index
    %c0_139 = arith.constant 0 : index
    %479 = vector.load %arg9[%c0_138, %c0_139] : memref<512x256xf32, #tpu.memory_space<vmem>>, vector<128x256xf32>
    %c128_140 = arith.constant 128 : index
    %c0_141 = arith.constant 0 : index
    %480 = vector.load %arg9[%c128_140, %c0_141] : memref<512x256xf32, #tpu.memory_space<vmem>>, vector<128x256xf32>
    %c256_142 = arith.constant 256 : index
    %c0_143 = arith.constant 0 : index
    %481 = vector.load %arg9[%c256_142, %c0_143] : memref<512x256xf32, #tpu.memory_space<vmem>>, vector<128x256xf32>
    %c384_144 = arith.constant 384 : index
    %c0_145 = arith.constant 0 : index
    %482 = vector.load %arg9[%c384_144, %c0_145] : memref<512x256xf32, #tpu.memory_space<vmem>>, vector<128x256xf32>
    %c0_146 = arith.constant 0 : index
    %c0_147 = arith.constant 0 : index
    %483 = vector.load %arg10[%c0_146, %c0_147] : memref<1x256xf32, #tpu.memory_space<vmem>>, vector<1x256xf32>
    %cst_148 = arith.constant dense<0.000000e+00> : vector<2x256xf32>
    %484 = tpu.matmul %466, %479, %cst_148 {dimension_numbers = #tpu.dot_dimension_numbers<[1], [0], [0], [1], [0, 0, 1, 1], [], []>} : vector<2x128xf32>, vector<128x256xf32>, vector<2x256xf32> -> vector<2x256xf32>
    %cst_149 = arith.constant dense<0.000000e+00> : vector<2x256xf32>
    %485 = tpu.matmul %470, %480, %cst_149 {dimension_numbers = #tpu.dot_dimension_numbers<[1], [0], [0], [1], [0, 0, 1, 1], [], []>} : vector<2x128xf32>, vector<128x256xf32>, vector<2x256xf32> -> vector<2x256xf32>
    %486 = arith.addf %484, %485 : vector<2x256xf32>
    %cst_150 = arith.constant dense<0.000000e+00> : vector<2x256xf32>
    %487 = tpu.matmul %474, %481, %cst_150 {dimension_numbers = #tpu.dot_dimension_numbers<[1], [0], [0], [1], [0, 0, 1, 1], [], []>} : vector<2x128xf32>, vector<128x256xf32>, vector<2x256xf32> -> vector<2x256xf32>
    %488 = arith.addf %486, %487 : vector<2x256xf32>
    %cst_151 = arith.constant dense<0.000000e+00> : vector<2x256xf32>
    %489 = tpu.matmul %478, %482, %cst_151 {dimension_numbers = #tpu.dot_dimension_numbers<[1], [0], [0], [1], [0, 0, 1, 1], [], []>} : vector<2x128xf32>, vector<128x256xf32>, vector<2x256xf32> -> vector<2x256xf32>
    %490 = arith.addf %488, %489 : vector<2x256xf32>
    %491 = vector.broadcast %483 : vector<1x256xf32> to vector<2x256xf32>
    %492 = arith.addf %490, %491 : vector<2x256xf32>
    %cst_152 = arith.constant 0.000000e+00 : f32
    %493 = vector.broadcast %cst_152 : f32 to vector<2x256xf32>
    %494 = arith.cmpf oge, %492, %493 : vector<2x256xf32>
    %cst_153 = arith.constant 5.000000e-02 : f32
    %495 = vector.broadcast %cst_153 : f32 to vector<2x256xf32>
    %496 = arith.mulf %495, %492 : vector<2x256xf32>
    %497 = arith.select %494, %492, %496 : vector<2x256xi1>, vector<2x256xf32>
    %c0_154 = arith.constant 0 : index
    %c0_155 = arith.constant 0 : index
    %498 = vector.load %arg11[%c0_154, %c0_155] : memref<256x128xf32, #tpu.memory_space<vmem>>, vector<256x128xf32>
    %cst_156 = arith.constant dense<0.000000e+00> : vector<2x128xf32>
    %499 = tpu.matmul %497, %498, %cst_156 {dimension_numbers = #tpu.dot_dimension_numbers<[1], [0], [0], [1], [0, 0, 1, 1], [], []>} : vector<2x256xf32>, vector<256x128xf32>, vector<2x128xf32> -> vector<2x128xf32>
    %c0_157 = arith.constant 0 : index
    %c0_158 = arith.constant 0 : index
    %500 = vector.load %arg12[%c0_157, %c0_158] : memref<1x128xf32, #tpu.memory_space<vmem>>, vector<1x128xf32>
    %501 = vector.broadcast %500 : vector<1x128xf32> to vector<2x128xf32>
    %502 = arith.addf %499, %501 : vector<2x128xf32>
    %503 = math.exp2 %502 : vector<2x128xf32>
    %cst_159 = arith.constant 1.000000e+00 : f32
    %504 = vector.broadcast %cst_159 : f32 to vector<2x128xf32>
    %505 = arith.subf %503, %504 : vector<2x128xf32>
    %c0_160 = arith.constant 0 : index
    %c0_161 = arith.constant 0 : index
    %506 = vector.load %arg13[%c0_160, %c0_161] : memref<2x128xf32, #tpu.memory_space<vmem>>, vector<2x128xf32>
    tpu.vector_store %arg13[%c0_160, %c0_161], %505 {strides = array<i32>} : memref<2x128xf32, #tpu.memory_space<vmem>>, vector<2x128xf32>,
    return
  }
}

</mosaic_0001>

<bundles_post_ra>
// kernel: q_cnn_forward.1
= control target key start
LH: loop header
LB: loop body
LE: loop exit
PB: predicated region body
PF: predicated region fallthrough
CT: control target
= control target key end

     0   :  { %18 = vsyncpa [#allocation3], 0  ;;  %s8098_s0 = inlined_call_operand.vmem [shape: f32[2,16], index: 0, kind: input, shape index: {}]   ;;  %s8099_s1 = inlined_call_operand.hbm [shape: f32[64,128], index: 1, kind: input, shape index: {}]   ;;  %s8100_s2 = inlined_call_operand.vmem [shape: f32[1,128], index: 2, kind: input, shape index: {}]   ;;  %s8101_s3 = inlined_call_operand.vmem [shape: f32[1,128], index: 3, kind: input, shape index: {}]   ;;  %s8102_s4 = inlined_call_operand.vmem [shape: f32[1,128], index: 4, kind: input, shape index: {}]   ;;  %s8103_s5 = inlined_call_operand.hbm [shape: f32[512,128], index: 5, kind: input, shape index: {}]   ;;  %s8104_s6 = inlined_call_operand.vmem [shape: f32[1,128], index: 6, kind: input, shape index: {}]   ;;  %s8105_s7 = inlined_call_operand.vmem [shape: f32[1,128], index: 7, kind: input, shape index: {}]   ;;  %s8106_s8 = inlined_call_operand.vmem [shape: f32[1,128], index: 8, kind: input, shape index: {}]   ;;  %s8107_s9 = inlined_call_operand.hbm [shape: f32[512,256], index: 9, kind: input, shape index: {}]   ;;  %s8108_s10 = inlined_call_operand.vmem [shape: f32[1,256], index: 10, kind: input, shape index: {}]   ;;  %s8109_s11 = inlined_call_operand.hbm [shape: f32[256,128], index: 11, kind: input, shape index: {}]   ;;  %s8110_s12 = inlined_call_operand.vmem [shape: f32[1,128], index: 12, kind: input, shape index: {}]   ;;  %s8111_s13 = inlined_call_operand.hbm [shape: f32[2,128], index: 13, kind: output, shape index: {}]  }
   0x1   :  { %19 = vsyncpa [#allocation6], 0 }
   0x2   :  { %20 = vsyncpa [#allocation9], 0 }
   0x3   :  { %21 = vsyncpa [#allocation4], 0  ;;  %s7043_s25 = smov [#allocation5]   ;;  %s7044_s27 = smov [#allocation2]  }
   0x4   :  { %s47_s26 = sshll.u32 %s7043_s25, 4  ;;  %s29_s28 = sshll.u32 %s7044_s27, 4  ;;  %s48_s26 = int_to_ptr.vmem [resolvable:$true] %s47_s26  ;;  %s7141_s28 = int_to_ptr.vmem [resolvable:$true] %s29_s28 }
   0x5   :  { %s6925_s14 = scalar_lea.hbm %s8103_s5, 8192 }
   0x6   :  { %p6926_p0 = scmp.ne.s32.totalorder %s8103_s5, %s6925_s14  ;;  %p6929_p1 = scmp.lt.u32.totalorder %s6925_s14, %s8103_s5 }
   0x8   :  { %p6931_p2 = pnand %p6929_p1, %p6926_p0 }
   0xa   :  { %6934 = shalt.err (!%p6931_p2)
}
   0xb   :  { %s6935_s19 = scalar_lea.vmem %s48_s26, 8192  ;;  %p6940_p4 = scmp.lt.s32.totalorder %s48_s26, %s48_s26 }
   0xc   :  { %p6936_p3 = scmp.ne.s32.totalorder %s48_s26, %s6935_s19  ;;  %p6941_p5 = scmp.lt.s32.totalorder %s6935_s19, %s6935_s19 }
   0xe   :  { %p6942_p6 = por %p6941_p5, %p6940_p4 }
  0x10   :  { %p6943_p7 = pnand %p6942_p6, %p6936_p3 }
  0x12   :  { %6946 = shalt.err (!%p6943_p7)
}
  0x13   :  { %s7045_s20 = smov 128   ;;  %s7046_s21 = smov 8  }
  0x14   :  { %53 = dma.hbm_to_vmem [thread:$0]  %s8103_s5, 8192, %s48_s26, [#allocation6], %s7045_s20, %s7045_s20, %s7046_s21  }
  0x15   :  { %s6947_s27 = scalar_lea.hbm %s8099_s1, 1024 }
  0x16   :  { %p6948_p8 = scmp.ne.s32.totalorder %s8099_s1, %s6947_s27  ;;  %p6951_p9 = scmp.lt.u32.totalorder %s6947_s27, %s8099_s1 }
  0x18   :  { %p6953_p10 = pnand %p6951_p9, %p6948_p8 }
  0x1a   :  { %6956 = shalt.err (!%p6953_p10)
}
  0x1b   :  { %s6957_s16 = scalar_lea.vmem %s7141_s28, 1024  ;;  %p6962_p12 = scmp.lt.s32.totalorder %s7141_s28, %s7141_s28 }
  0x1c   :  { %p6958_p11 = scmp.ne.s32.totalorder %s7141_s28, %s6957_s16  ;;  %p6963_p13 = scmp.lt.s32.totalorder %s6957_s16, %s6957_s16 }
  0x1e   :  { %p6964_p0 = por %p6963_p13, %p6962_p12 }
  0x20   :  { %p6965_p1 = pnand %p6964_p0, %p6958_p11 }
  0x22   :  { %6968 = shalt.err (!%p6965_p1)
}
  0x23   :  { %35 = dma.hbm_to_vmem [thread:$0]  %s8099_s1, 1024, %s7141_s28, [#allocation3], %s7045_s20, %s7045_s20, %s7046_s21  }
  0x24   :  { %s7047_s17 = smov [#allocation7]   ;;  %s6969_s23 = scalar_lea.hbm %s8107_s9, 16384 }
  0x25   :  { %s65_s18 = sshll.u32 %s7047_s17, 4  ;;  %p6970_p2 = scmp.ne.s32.totalorder %s8107_s9, %s6969_s23  ;;  %s66_s18 = int_to_ptr.vmem [resolvable:$true] %s65_s18 }
  0x26   :  { %p6973_p3 = scmp.lt.u32.totalorder %s6969_s23, %s8107_s9 }
  0x28   :  { %p6975_p4 = pnand %p6973_p3, %p6970_p2 }
  0x2a   :  { %6978 = shalt.err (!%p6975_p4)
}
  0x2b   :  { %s6979_s30 = scalar_lea.vmem %s66_s18, 16384  ;;  %p6984_p6 = scmp.lt.s32.totalorder %s66_s18, %s66_s18 }
  0x2c   :  { %p6980_p5 = scmp.ne.s32.totalorder %s66_s18, %s6979_s30  ;;  %p6985_p7 = scmp.lt.s32.totalorder %s6979_s30, %s6979_s30 }
  0x2e   :  { %p6986_p8 = por %p6985_p7, %p6984_p6 }
  0x30   :  { %p6987_p9 = pnand %p6986_p8, %p6980_p5 }
  0x32   :  { %6990 = shalt.err (!%p6987_p9)
}
  0x33   :  { %s7048_s1 = smov 256   ;;  %s7049_s28 = smov 16  }
  0x34   :  { %71 = dma.hbm_to_vmem [thread:$0]  %s8107_s9, 16384, %s66_s18, [#allocation6], %s7048_s1, %s7048_s1, %s7049_s28  }
  0x35   :  { %s7050_s16 = smov [#allocation8]   ;;  %s6991_s19 = scalar_lea.hbm %s8109_s11, 4096 }
  0x36   :  { %s79_s5 = sshll.u32 %s7050_s16, 4  ;;  %p6992_p10 = scmp.ne.s32.totalorder %s8109_s11, %s6991_s19  ;;  %s80_s5 = int_to_ptr.vmem [resolvable:$true] %s79_s5 }
  0x37   :  { %p6995_p11 = scmp.lt.u32.totalorder %s6991_s19, %s8109_s11 }
  0x39   :  { %p6997_p12 = pnand %p6995_p11, %p6992_p10 }
  0x3b   :  { %7000 = shalt.err (!%p6997_p12)
}
  0x3c   :  { %s7001_s27 = scalar_lea.vmem %s80_s5, 4096  ;;  %p7006_p0 = scmp.lt.s32.totalorder %s80_s5, %s80_s5 }
  0x3d   :  { %p7002_p13 = scmp.ne.s32.totalorder %s80_s5, %s7001_s27  ;;  %p7007_p1 = scmp.lt.s32.totalorder %s7001_s27, %s7001_s27 }
  0x3f   :  { %p7008_p2 = por %p7007_p1, %p7006_p0 }
  0x41   :  { %p7009_p3 = pnand %p7008_p2, %p7002_p13 }
  0x43   :  { %7012 = shalt.err (!%p7009_p3)
}
  0x44   :  { %85 = dma.hbm_to_vmem [thread:$0]  %s8109_s11, 4096, %s80_s5, [#allocation9], %s7045_s20, %s7045_s20, %s7046_s21  }
  0x45   :  { %7035 = dma.done.wait [#allocation3], 1024  }
  0x46   :  { %7036 = vsyncadd [#allocation3], 4294966272 }
  0x47   :  { %7037 = dma.done.wait [#allocation6], 24576  }
  0x48   :  { %7038 = vsyncadd [#allocation6], 4294942720 }
  0x49   :  { %7039 = dma.done.wait [#allocation9], 4096  }
  0x4a   :  { %7040 = vsyncadd [#allocation9], 4294963200  ;;  %v7051_v0 = vmov 4   ;;  %v7052_v1 = vmov 1   ;;  %v7053_v2 = vmov 0.0|0.0   ;;  %v208_v4 = vld [vmem:[#allocation2 + $0x10] sm:$0xff]  ;;  %v108_v29 = vlaneseq }
  0x4b   :  { %6902 = vset.pattern.permute.xlu1 %v7051_v0  ;;  %6900 = vset.pattern.permute.xlu0 %v7052_v1  ;;  %v100_v3 = vld [vmem:[%s8098_s0] sm:$0x3]  ;;  %vm7054_vm0 = vmmov 0   ;;  %v8112_v14 = vmov 0.0   ;;  %v7056_v15 = vmov 5   ;;  %v7057_v16 = vmov 0  }
  0x4c   :  { %6212 = vmatprep.subr.bf16.mxu1 %v7053_v2  ;;  %6236 = vmatprep.subr.bf16.mxu0 %v7053_v2  ;;  %v209_v5 = vld [vmem:[#allocation2 + $0x18] sm:$0xff]  ;;  %v101_v6 = vadd.f32 1.0, %v100_v3  ;;  %v7058_v17 = vmov 2   ;;  %v7059_v18 = vmov 6   ;;  %v7060_v19 = vmov 3   ;;  %v206_v31 = vld [vmem:[#allocation2] sm:$0xff] }
  0x4d   :  { %v7210_v7 = vpack.c.bf16 %v209_v5, %v208_v4  ;;  %5404 = vmatprep.mubr.msk.f32.mxu1 %vm7054_vm0, %v8112_v14  ;;  %5460 = vmatprep.mubr.msk.f32.mxu0 %vm7054_vm0, %v8112_v14  ;;  %v7061_v20 = vmov 8   ;;  %v7062_v21 = vmov 7   ;;  %v7063_v22 = vmov 11   ;;  %v207_v32 = vld [vmem:[#allocation2 + $0x8] sm:$0xff]  ;;  %v210_v37 = vld [vmem:[#allocation2 + $0x20] sm:$0xff]  ;;  %v212_v42 = vld [vmem:[#allocation2 + $0x30] sm:$0xff] }
  0x4e   :  { %6917 = vlog2.f32 %v101_v6  ;;  %v7064_v23 = vmov 9   ;;  %v7065_v24 = vmov 14   ;;  %v7066_v25 = vmov 10   ;;  %v211_v38 = vld [vmem:[#allocation2 + $0x28] sm:$0xff]  ;;  %v213_v43 = vld [vmem:[#allocation2 + $0x38] sm:$0xff]  ;;  %s7070_s5 = smov [#allocation10]  }
  0x4f   :  { %6214 = vmatpush3.bf16.msra.mxu1 %v7210_v7  ;;  %6238 = vmatpush3.bf16.msra.mxu0 %v7210_v7  ;;  %v7067_v26 = vmov 15   ;;  %v7068_v27 = vmov 12   ;;  %v7069_v28 = vmov 13   ;;  %v7221_v30 = vand.u32 127, %v108_v29  ;;  %s4918_s26 = sshll.u32 %s7070_s5, 4  ;;  %s4919_s26 = int_to_ptr.vmem [resolvable:$true] %s4918_s26 }
  0x50   :  { %6215 = vmatprep.subr.bf16.mxu1 %v7053_v2  ;;  %6242 = vmatprep.subr.bf16.mxu0 %v7053_v2  ;;  %vm215_vm1 = vcmask 130048   ;;  %v7223_v35 = vpack.c.bf16 %v207_v32, %v206_v31  ;;  %v7232_v41 = vpack.c.bf16 %v211_v38, %v210_v37  ;;  %v7241_v45 = vpack.c.bf16 %v213_v43, %v212_v42  ;;  %v3063_v32 = vld [vmem:[#allocation5 + $0x80] sm:$0xff]  ;;  %v3080_v37 = vld [vmem:[#allocation5 + $0x108] sm:$0xff]  ;;  %v3065_v43 = vld [vmem:[#allocation5 + $0x90] sm:$0xff]  ;;  %s7013_s17 = scalar_lea.vmem %s4919_s26, 32  ;;  %p7018_p5 = scmp.lt.s32.totalorder %s4919_s26, %s4919_s26 }
  0x51   :  { %p7014_p4 = scmp.ne.s32.totalorder %s4919_s26, %s7013_s17  ;;  %p7019_p6 = scmp.lt.s32.totalorder %s7013_s17, %s7013_s17 }
  0x53   :  { %p7020_p7 = por %p7019_p6, %p7018_p5 }
  0x55   :  { %p7021_p8 = pnand %p7020_p7, %p7014_p4 }
  0x58   :  { %v6918_v8 = vpop.eup %6917 }
  0x59   :  { %v103_v9 = vmul.f32 0.6931472, %v6918_v8 }
  0x5b   :  { %v105_v10 = vmul.f32 1.442695, %v103_v9 }
  0x5d   :  { %v106_v11 = vfloor.f32 %v105_v10 }
  0x5f   :  { %v6870_v12 = vtrunc.f32 %v106_v11 }
  0x61   :  { %v6871_v13 = vcvt.f32.s32 %v6870_v12 }
  0x63   :  { %135 = vperm.xlu1 %6902, %v6871_v13   ;;  %117 = vperm.xlu0 %6900, %v6871_v13  }
  0x67   :  { %6903 = vset.pattern.permute.xlu1 %v7056_v15  ;;  %6901 = vset.pattern.permute.xlu0 %v7057_v16 }
  0x68   :  { %141 = vperm.xlu1 %6903, %v6871_v13   ;;  %111 = vperm.xlu0 %6901, %v6871_v13  }
  0x6c   :  { %6904 = vset.pattern.permute.xlu1 %v7058_v17  ;;  %6905 = vset.pattern.permute.xlu0 %v7059_v18 }
  0x6d   :  { %123 = vperm.xlu1 %6904, %v6871_v13   ;;  %147 = vperm.xlu0 %6905, %v6871_v13  }
  0x71   :  { %6906 = vset.pattern.permute.xlu1 %v7060_v19  ;;  %6908 = vset.pattern.permute.xlu0 %v7061_v20 }
  0x72   :  { %129 = vperm.xlu1 %6906, %v6871_v13   ;;  %159 = vperm.xlu0 %6908, %v6871_v13  }
  0x76   :  { %6907 = vset.pattern.permute.xlu1 %v7062_v21  ;;  %6911 = vset.pattern.permute.xlu0 %v7063_v22 }
  0x77   :  { %153 = vperm.xlu1 %6907, %v6871_v13   ;;  %177 = vperm.xlu0 %6911, %v6871_v13  }
  0x7b   :  { %6909 = vset.pattern.permute.xlu1 %v7064_v23  ;;  %6914 = vset.pattern.permute.xlu0 %v7065_v24 }
  0x7c   :  { %165 = vperm.xlu1 %6909, %v6871_v13   ;;  %195 = vperm.xlu0 %6914, %v6871_v13  }
  0x80   :  { %6910 = vset.pattern.permute.xlu1 %v7066_v25  ;;  %6916 = vset.pattern.permute.xlu0 %v7067_v26 }
  0x81   :  { %171 = vperm.xlu1 %6910, %v6871_v13  }
  0x85   :  { %6912 = vset.pattern.permute.xlu1 %v7068_v27 }
  0x86   :  { %183 = vperm.xlu1 %6912, %v6871_v13  }
  0x8a   :  { %6913 = vset.pattern.permute.xlu1 %v7069_v28 }
  0x8b   :  { %189 = vperm.xlu1 %6913, %v6871_v13  }
  0x8f   :  { %6915 = vset.pattern.permute.xlu1 %v7067_v26 }
  0x90   :  { %201 = vperm.xlu1 %6915, %v6871_v13  }
  0xe2   :  { %v118_v33 = vpop.permute.xlu0 %117  ;;  %v136_v34 = vpop.permute.xlu1 %135 }
  0xe3   :  { %vm119_vm2 = vcmp.eq.s32.totalorder %v118_v33, %v7221_v30  ;;  %vm137_vm4 = vcmp.eq.s32.totalorder %v136_v34, %v7221_v30  ;;  %v3064_v33 = vld [vmem:[#allocation5 + $0x88] sm:$0xff]  ;;  %v3079_v34 = vld [vmem:[#allocation5 + $0x100] sm:$0xff] }
  0xe4   :  { %v4930_v36 = vsel %vm119_vm2, 1.0, %v8112_v14  ;;  %v7246_v47 = vsel %vm137_vm4, 1.0, %v8112_v14 }
  0xe5   :  { %5405 = vmatmul.mubr.msk.f32.vlgmr.msra.gmra.mrb[0].mxu1 %vm215_vm1, %v4930_v36 }
  0xe6   :  { %6217 = vmatpush3.bf16.msra.mxu1 %v7223_v35  ;;  %5411 = vmatprep.mubr.msk.f32.mxu1 %vm7054_vm0, %v8112_v14 }
  0xe7   :  { %v112_v39 = vpop.permute.xlu0 %111  ;;  %v142_v40 = vpop.permute.xlu1 %141  ;;  %6218 = vmatprep.subr.bf16.mxu1 %v7053_v2 }
  0xe8   :  { %vm113_vm3 = vcmp.eq.s32.totalorder %v112_v39, %v7221_v30  ;;  %vm143_vm5 = vcmp.eq.s32.totalorder %v142_v40, %v7221_v30  ;;  %v7475_v39 = vpack.c.bf16 %v3080_v37, %v3079_v34  ;;  %v3076_v37 = vld [vmem:[#allocation5 + $0xe8] sm:$0xff] }
  0xe9   :  { %v4929_v44 = vsel %vm113_vm3, 1.0, %v8112_v14  ;;  %v7251_v48 = vsel %vm143_vm5, 1.0, %v8112_v14 }
  0xea   :  { %5412 = vmatmul.mubr.msk.f32.vlgmr.msra.gmra.mrb[2].mxu1 %vm215_vm1, %v4929_v44  ;;  %v3066_v44 = vld [vmem:[#allocation5 + $0x98] sm:$0xff] }
  0xeb   :  { %6220 = vmatpush3.bf16.msra.mxu1 %v7232_v41  ;;  %5418 = vmatprep.mubr.msk.f32.mxu1 %vm7054_vm0, %v8112_v14 }
  0xec   :  { %v124_v46 = vpop.permute.xlu1 %123  ;;  %6221 = vmatprep.subr.bf16.mxu1 %v7053_v2  ;;  %v148_v49 = vpop.permute.xlu0 %147 }
  0xed   :  { %vm125_vm6 = vcmp.eq.s32.totalorder %v124_v46, %v7221_v30  ;;  %vm149_vm8 = vcmp.eq.s32.totalorder %v148_v49, %v7221_v30 }
  0xee   :  { %5419 = vmatmul.mubr.msk.f32.vlgmr.msra.gmra.mrb[4].mxu1 %vm215_vm1, %v7246_v47  ;;  %v4931_v51 = vsel %vm125_vm6, 1.0, %v8112_v14  ;;  %v7271_v53 = vsel %vm149_vm8, 1.0, %v8112_v14  ;;  %vm2846_vm6 = vcmask 1041408  }
  0xef   :  { %6223 = vmatpush3.bf16.msra.mxu1 %v7241_v45  ;;  %5425 = vmatprep.mubr.msk.f32.mxu1 %vm7054_vm0, %v8112_v14 }
  0xf0   :  { %6224 = vmatprep.subr.bf16.mxu1 %v7053_v2 }
  0xf1   :  { %v130_v50 = vpop.permute.xlu1 %129  ;;  %v160_v54 = vpop.permute.xlu0 %159 }
  0xf2   :  { %vm131_vm7 = vcmp.eq.s32.totalorder %v130_v50, %v7221_v30  ;;  %5426 = vmatmul.mubr.msk.f32.vlgmr.msra.gmra.mrb[6].mxu1 %vm215_vm1, %v7251_v48  ;;  %vm161_vm9 = vcmp.eq.s32.totalorder %v160_v54, %v7221_v30  ;;  %v3067_v54 = vld [vmem:[#allocation5 + $0xa0] sm:$0xff] }
  0xf3   :  { %v4932_v52 = vsel %vm131_vm7, 1.0, %v8112_v14  ;;  %6226 = vmatpush3.bf16.msra.mxu1 %v7210_v7  ;;  %5432 = vmatprep.mubr.msk.f32.mxu1 %vm7054_vm0, %v8112_v14  ;;  %v7297_v56 = vsel %vm161_vm9, 1.0, %v8112_v14 }
  0xf4   :  { %5461 = vmatmul.mubr.msk.f32.vlgmr.msra.gmra.mrb[0].mxu0 %vm215_vm1, %v4932_v52  ;;  %6227 = vmatprep.subr.bf16.mxu1 %v7053_v2 }
  0xf5   :  { %6244 = vmatpush3.bf16.msra.mxu0 %v7232_v41  ;;  %5474 = vmatprep.mubr.msk.f32.mxu0 %vm7054_vm0, %v8112_v14 }
  0xf6   :  { %5433 = vmatmul.mubr.msk.f32.vlgmr.msra.gmra.mrb[8].mxu1 %vm215_vm1, %v4931_v51  ;;  %6248 = vmatprep.subr.bf16.mxu0 %v7053_v2  ;;  %v154_v55 = vpop.permute.xlu1 %153  ;;  %v178_v1 = vpop.permute.xlu0 %177 }
  0xf7   :  { %6229 = vmatpush3.bf16.msra.mxu1 %v7223_v35  ;;  %5439 = vmatprep.mubr.msk.f32.mxu1 %vm7054_vm0, %v8112_v14  ;;  %vm155_vm11 = vcmp.eq.s32.totalorder %v154_v55, %v7221_v30  ;;  %vm179_vm15 = vcmp.eq.s32.totalorder %v178_v1, %v7221_v30  ;;  %v3068_v55 = vld [vmem:[#allocation5 + $0xa8] sm:$0xff]  ;;  %v3069_v1 = vld [vmem:[#allocation5 + $0xb0] sm:$0xff] }
  0xf8   :  { %5475 = vmatmul.mubr.msk.f32.vlgmr.msra.gmra.mrb[2].mxu0 %vm215_vm1, %v7271_v53  ;;  %6230 = vmatprep.subr.bf16.mxu1 %v7053_v2  ;;  %v4936_v59 = vsel %vm155_vm11, 1.0, %v8112_v14  ;;  %v4940_v4 = vsel %vm179_vm15, 1.0, %v8112_v14 }
  0xf9   :  { %6250 = vmatpush3.bf16.msra.mxu0 %v7210_v7  ;;  %5488 = vmatprep.mubr.msk.f32.mxu0 %vm7054_vm0, %v8112_v14 }
  0xfa   :  { %5440 = vmatmul.mubr.msk.f32.vlgmr.msra.gmra.mrb[10].mxu1 %vm215_vm1, %v4930_v36  ;;  %6254 = vmatprep.subr.bf16.mxu0 %v7053_v2  ;;  %v7473_v36 = vpack.c.bf16 %v3064_v33, %v3063_v32 }
  0xfb   :  { %6232 = vmatpush3.bf16.msra.mxu1 %v7232_v41  ;;  %5446 = vmatprep.mubr.msk.f32.mxu1 %vm7054_vm0, %v8112_v14  ;;  %v166_v57 = vpop.permute.xlu1 %165  ;;  %v196_v5 = vpop.permute.xlu0 %195 }
  0xfc   :  { %5489 = vmatmul.mubr.msk.f32.vlgmr.msra.gmra.mrb[4].mxu0 %vm215_vm1, %v7251_v48  ;;  %6233 = vmatprep.subr.bf16.mxu1 %v7053_v2  ;;  %vm167_vm10 = vcmp.eq.s32.totalorder %v166_v57, %v7221_v30  ;;  %vm197_vm2 = vcmp.eq.s32.totalorder %v196_v5, %v7221_v30 }
  0xfd   :  { %6256 = vmatpush3.bf16.msra.mxu0 %v7232_v41  ;;  %5502 = vmatprep.mubr.msk.f32.mxu0 %vm7054_vm0, %v8112_v14  ;;  %v7325_v58 = vsel %vm167_vm10, 1.0, %v8112_v14  ;;  %v4943_v6 = vsel %vm197_vm2, 1.0, %v8112_v14 }
  0xfe   :  { %5447 = vmatmul.mubr.msk.f32.vlgmr.msra.gmra.mrb[12].mxu1 %vm215_vm1, %v7251_v48  ;;  %6260 = vmatprep.subr.bf16.mxu0 %v7053_v2 }
  0xff   :  { %6235 = vmatpush3.bf16.msra.mxu1 %v7241_v45  ;;  %5453 = vmatprep.mubr.msk.f32.mxu1 %vm7054_vm0, %v8112_v14 }
 0x100   :  { %5503 = vmatmul.mubr.msk.f32.vlgmr.msra.gmra.mrb[6].mxu0 %vm215_vm1, %v7297_v56  ;;  %6239 = vmatprep.subr.bf16.mxu1 %v7053_v2  ;;  %v172_v60 = vpop.permute.xlu1 %171 }
 0x101   :  { %6262 = vmatpush3.bf16.msra.mxu0 %v7210_v7  ;;  %5516 = vmatprep.mubr.msk.f32.mxu0 %vm7054_vm0, %v8112_v14  ;;  %vm173_vm12 = vcmp.eq.s32.totalorder %v172_v60, %v7221_v30 }
 0x102   :  { %5454 = vmatmul.mubr.msk.f32.vlgmr.msra.gmra.mrb[14].mxu1 %vm215_vm1, %v7271_v53  ;;  %6266 = vmatprep.subr.bf16.mxu0 %v7053_v2  ;;  %v7351_v61 = vsel %vm173_vm12, 1.0, %v8112_v14 }
 0x103   :  { %6241 = vmatpush3.bf16.msra.mxu1 %v7223_v35  ;;  %5467 = vmatprep.mubr.msk.f32.mxu1 %vm7054_vm0, %v8112_v14 }
 0x104   :  { %5517 = vmatmul.mubr.msk.f32.vlgmr.msra.gmra.mrb[8].mxu0 %vm215_vm1, %v7271_v53  ;;  %6245 = vmatprep.subr.bf16.mxu1 %v7053_v2 }
 0x105   :  { %6268 = vmatpush3.bf16.msra.mxu0 %v7232_v41  ;;  %5530 = vmatprep.mubr.msk.f32.mxu0 %vm7054_vm0, %v8112_v14  ;;  %v184_v62 = vpop.permute.xlu1 %183 }
 0x106   :  { %5468 = vmatmul.mubr.msk.f32.vlgmr.msra.gmra.mrb[16].mxu1 %vm215_vm1, %v4931_v51  ;;  %6272 = vmatprep.subr.bf16.mxu0 %v7053_v2  ;;  %vm185_vm13 = vcmp.eq.s32.totalorder %v184_v62, %v7221_v30 }
 0x107   :  { %6247 = vmatpush3.bf16.msra.mxu1 %v7241_v45  ;;  %5481 = vmatprep.mubr.msk.f32.mxu1 %vm7054_vm0, %v8112_v14  ;;  %v4941_v63 = vsel %vm185_vm13, 1.0, %v8112_v14 }
 0x108   :  { %5531 = vmatmul.mubr.msk.f32.vlgmr.msra.gmra.mrb[10].mxu0 %vm215_vm1, %v7325_v58  ;;  %6251 = vmatprep.subr.bf16.mxu1 %v7053_v2 }
 0x109   :  { %6274 = vmatpush3.bf16.msra.mxu0 %v7210_v7  ;;  %5544 = vmatprep.mubr.msk.f32.mxu0 %vm7054_vm0, %v8112_v14 }
 0x10a   :  { %5482 = vmatmul.mubr.msk.f32.vlgmr.msra.gmra.mrb[18].mxu1 %vm215_vm1, %v4936_v59  ;;  %6278 = vmatprep.subr.bf16.mxu0 %v7053_v2  ;;  %v190_v0 = vpop.permute.xlu1 %189 }
 0x10b   :  { %6253 = vmatpush3.bf16.msra.mxu1 %v7223_v35  ;;  %5495 = vmatprep.mubr.msk.f32.mxu1 %vm7054_vm0, %v8112_v14  ;;  %vm191_vm14 = vcmp.eq.s32.totalorder %v190_v0, %v7221_v30 }
 0x10c   :  { %5545 = vmatmul.mubr.msk.f32.vlgmr.msra.gmra.mrb[12].mxu0 %vm215_vm1, %v4936_v59  ;;  %6257 = vmatprep.subr.bf16.mxu1 %v7053_v2  ;;  %v4942_v3 = vsel %vm191_vm14, 1.0, %v8112_v14  ;;  %v3084_v59 = vld [vmem:[#allocation5 + $0x128] sm:$0xff] }
 0x10d   :  { %6280 = vmatpush3.bf16.msra.mxu0 %v7232_v41  ;;  %5558 = vmatprep.mubr.msk.f32.mxu0 %vm7054_vm0, %v8112_v14 }
 0x10e   :  { %5496 = vmatmul.mubr.msk.f32.vlgmr.msra.gmra.mrb[20].mxu1 %vm215_vm1, %v7246_v47  ;;  %6284 = vmatprep.subr.bf16.mxu0 %v7053_v2  ;;  %v7483_v47 = vpack.c.bf16 %v3066_v44, %v3065_v43 }
 0x10f   :  { %6259 = vmatpush3.bf16.msra.mxu1 %v7241_v45  ;;  %5509 = vmatprep.mubr.msk.f32.mxu1 %vm7054_vm0, %v8112_v14 }
 0x110   :  { %5559 = vmatmul.mubr.msk.f32.vlgmr.msra.gmra.mrb[14].mxu0 %vm215_vm1, %v7351_v61  ;;  %6263 = vmatprep.subr.bf16.mxu1 %v7053_v2 }
 0x111   :  { %6286 = vmatpush3.bf16.msra.mxu0 %v7210_v7  ;;  %5572 = vmatprep.mubr.msk.f32.mxu0 %vm7054_vm0, %v8112_v14 }
 0x112   :  { %5510 = vmatmul.mubr.msk.f32.vlgmr.msra.gmra.mrb[22].mxu1 %vm215_vm1, %v7325_v58  ;;  %6290 = vmatprep.subr.bf16.mxu0 %v7053_v2 }
 0x113   :  { %6265 = vmatpush3.bf16.msra.mxu1 %v7223_v35  ;;  %5523 = vmatprep.mubr.msk.f32.mxu1 %vm7054_vm0, %v8112_v14 }
 0x114   :  { %5573 = vmatmul.mubr.msk.f32.vlgmr.msra.gmra.mrb[16].mxu0 %vm215_vm1, %v7325_v58  ;;  %6269 = vmatprep.subr.bf16.mxu1 %v7053_v2 }
 0x115   :  { %6292 = vmatpush3.bf16.msra.mxu0 %v7232_v41  ;;  %5586 = vmatprep.mubr.msk.f32.mxu0 %vm7054_vm0, %v8112_v14 }
 0x116   :  { %5524 = vmatmul.mubr.msk.f32.vlgmr.msra.gmra.mrb[24].mxu1 %vm215_vm1, %v7251_v48  ;;  %6296 = vmatprep.subr.bf16.mxu0 %v7053_v2  ;;  %v3082_v48 = vld [vmem:[#allocation5 + $0x118] sm:$0xff] }
 0x117   :  { %6271 = vmatpush3.bf16.msra.mxu1 %v7241_v45  ;;  %5537 = vmatprep.mubr.msk.f32.mxu1 %vm7054_vm0, %v8112_v14 }
 0x118   :  { %5587 = vmatmul.mubr.msk.f32.vlgmr.msra.gmra.mrb[18].mxu0 %vm215_vm1, %v4941_v63  ;;  %6275 = vmatprep.subr.bf16.mxu1 %v7053_v2 }
 0x119   :  { %6298 = vmatpush3.bf16.msra.mxu0 %v7210_v7  ;;  %5600 = vmatprep.mubr.msk.f32.mxu0 %vm7054_vm0, %v8112_v14 }
 0x11a   :  { %5538 = vmatmul.mubr.msk.f32.vlgmr.msra.gmra.mrb[26].mxu1 %vm215_vm1, %v7351_v61  ;;  %6302 = vmatprep.subr.bf16.mxu0 %v7053_v2 }
 0x11b   :  { %6277 = vmatpush3.bf16.msra.mxu1 %v7223_v35  ;;  %5551 = vmatprep.mubr.msk.f32.mxu1 %vm7054_vm0, %v8112_v14 }
 0x11c   :  { %5601 = vmatmul.mubr.msk.f32.vlgmr.msra.gmra.mrb[20].mxu0 %vm215_vm1, %v7351_v61  ;;  %6281 = vmatprep.subr.bf16.mxu1 %v7053_v2 }
 0x11d   :  { %6304 = vmatpush3.bf16.msra.mxu0 %v7232_v41  ;;  %5614 = vmatprep.mubr.msk.f32.mxu0 %vm7054_vm0, %v8112_v14 }
 0x11e   :  { %5552 = vmatmul.mubr.msk.f32.vlgmr.msra.gmra.mrb[28].mxu1 %vm215_vm1, %v7271_v53  ;;  %6308 = vmatprep.subr.bf16.mxu0 %v7053_v2 }
 0x11f   :  { %6283 = vmatpush3.bf16.msra.mxu1 %v7241_v45  ;;  %5565 = vmatprep.mubr.msk.f32.mxu1 %vm7054_vm0, %v8112_v14 }
 0x120   :  { %5615 = vmatmul.mubr.msk.f32.vlgmr.msra.gmra.mrb[22].mxu0 %vm215_vm1, %v4942_v3  ;;  %6287 = vmatprep.subr.bf16.mxu1 %v7053_v2 }
 0x121   :  { %6310 = vmatpush3.bf16.msra.mxu0 %v7210_v7  ;;  %5628 = vmatprep.mubr.msk.f32.mxu0 %vm7054_vm0, %v8112_v14  ;;  %v202_v7 = vpop.permute.xlu1 %201 }
 0x122   :  { %5566 = vmatmul.mubr.msk.f32.vlgmr.msra.gmra.mrb[30].mxu1 %vm215_vm1, %v4940_v4  ;;  %6314 = vmatprep.subr.bf16.mxu0 %v7053_v2  ;;  %vm203_vm3 = vcmp.eq.s32.totalorder %v202_v7, %v7221_v30 }
 0x123   :  { %6289 = vmatpush3.bf16.msra.mxu1 %v7223_v35  ;;  %5579 = vmatprep.mubr.msk.f32.mxu1 %vm7054_vm0, %v8112_v14  ;;  %v4944_v8 = vsel %vm203_vm3, 1.0, %v8112_v14 }
 0x124   :  { %5629 = vmatmul.mubr.msk.f32.vlgmr.msra.gmra.mrb[24].mxu0 %vm215_vm1, %v4940_v4  ;;  %6293 = vmatprep.subr.bf16.mxu1 %v7053_v2  ;;  %v3085_v4 = vld [vmem:[#allocation5 + $0x130] sm:$0xff] }
 0x125   :  { %6316 = vmatpush3.bf16.msra.mxu0 %v7232_v41  ;;  %5642 = vmatprep.mubr.msk.f32.mxu0 %vm7054_vm0, %v8112_v14 }
 0x126   :  { %5580 = vmatmul.mubr.msk.f32.vlgmr.msra.gmra.mrb[32].mxu1 %vm215_vm1, %v7297_v56  ;;  %6368 = vmatprep.subr.bf16.mxu0 %v7053_v2  ;;  %v3083_v56 = vld [vmem:[#allocation5 + $0x120] sm:$0xff] }
 0x127   :  { %6295 = vmatpush3.bf16.msra.mxu1 %v7241_v45  ;;  %5593 = vmatprep.mubr.msk.f32.mxu1 %vm7054_vm0, %v8112_v14 }
 0x128   :  { %6299 = vmatprep.subr.bf16.mxu1 %v7053_v2  ;;  %5643 = vmatmul.mubr.msk.f32.vlgmr.msra.gmra.mrb[26].mxu0 %vm215_vm1, %v4943_v6 }
 0x129   :  { %5754 = vmatprep.mubr.msk.f32.mxu0 %vm7054_vm0, %v8112_v14  ;;  %6370 = vmatpush3.bf16.msra.mxu0 %v7475_v39 }
 0x12a   :  { %5594 = vmatmul.mubr.msk.f32.vlgmr.msra.gmra.mrb[34].mxu1 %vm215_vm1, %v4942_v3  ;;  %6371 = vmatprep.subr.bf16.mxu0 %v7053_v2  ;;  %v3070_v3 = vld [vmem:[#allocation5 + $0xb8] sm:$0xff] }
 0x12b   :  { %6301 = vmatpush3.bf16.msra.mxu1 %v7223_v35  ;;  %5607 = vmatprep.mubr.msk.f32.mxu1 %vm7054_vm0, %v8112_v14  ;;  %v7505_v7 = vpack.c.bf16 %v3070_v3, %v3069_v1  ;;  %v7552_v3 = vld [vmem:[%s8100_s2] ss:$0 sm:$0xff] }
 0x12c   :  { %6305 = vmatprep.subr.bf16.mxu1 %v7053_v2 }
 0x12e   :  { %5608 = vmatmul.mubr.msk.f32.vlgmr.msra.gmra.mrb[36].mxu1 %vm215_vm1, %v7325_v58  ;;  %v7495_v58 = vpack.c.bf16 %v3068_v55, %v3067_v54  ;;  %v3093_v55 = vld [vmem:[#allocation5 + $0x170] sm:$0xff] }
 0x12f   :  { %6307 = vmatpush3.bf16.msra.mxu1 %v7241_v45  ;;  %5621 = vmatprep.mubr.msk.f32.mxu1 %vm7054_vm0, %v8112_v14 }
 0x130   :  { %6311 = vmatprep.subr.bf16.mxu1 %v7053_v2 }
 0x132   :  { %5622 = vmatmul.mubr.msk.f32.vlgmr.msra.gmra.mrb[38].mxu1 %vm215_vm1, %v4943_v6 }
 0x133   :  { %6313 = vmatpush3.bf16.msra.mxu1 %v7223_v35  ;;  %5635 = vmatprep.mubr.msk.f32.mxu1 %vm7054_vm0, %v8112_v14 }
 0x134   :  { %6317 = vmatprep.subr.bf16.mxu1 %v7053_v2 }
 0x136   :  { %5636 = vmatmul.mubr.msk.f32.vlgmr.msra.gmra.mrb[40].mxu1 %vm215_vm1, %v7351_v61  ;;  %v7497_v61 = vpack.c.bf16 %v3084_v59, %v3083_v56  ;;  %v3094_v56 = vld [vmem:[#allocation5 + $0x178] sm:$0xff] }
 0x137   :  { %6319 = vmatpush3.bf16.msra.mxu1 %v7241_v45  ;;  %5649 = vmatprep.mubr.msk.f32.mxu1 %vm7054_vm0, %v8112_v14  ;;  %v3081_v45 = vld [vmem:[#allocation5 + $0x110] sm:$0xff]  ;;  %v7547_v1 = vpack.c.bf16 %v3094_v56, %v3093_v55 }
 0x138   :  { %6320 = vmatprep.subr.bf16.mxu1 %v7053_v2  ;;  %v7485_v50 = vpack.c.bf16 %v3082_v48, %v3081_v45 }
 0x13a   :  { %5650 = vmatmul.mubr.msk.f32.vlgmr.msra.gmra.mrb[42].mxu1 %vm215_vm1, %v4944_v8  ;;  %6373 = vmatpush3.bf16.msra.mxu0 %v7485_v50  ;;  %v3086_v8 = vld [vmem:[#allocation5 + $0x138] sm:$0xff] }
 0x13b   :  { %5684 = vmatprep.mubr.msk.f32.mxu1 %vm7054_vm0, %v8112_v14  ;;  %6322 = vmatpush3.bf16.msra.mxu1 %v7473_v36 }
 0x13c   :  { %6323 = vmatprep.subr.bf16.mxu1 %v7053_v2  ;;  %6374 = vmatprep.subr.bf16.mxu0 %v7053_v2 }
 0x13e   :  { %6376 = vmatpush3.bf16.msra.mxu0 %v7497_v61 }
 0x13f   :  { %6325 = vmatpush3.bf16.msra.mxu1 %v7483_v47  ;;  %6377 = vmatprep.subr.bf16.mxu0 %v7053_v2 }
 0x140   :  { %6326 = vmatprep.subr.bf16.mxu1 %v7053_v2 }
 0x143   :  { %6328 = vmatpush3.bf16.msra.mxu1 %v7495_v58 }
 0x144   :  { %6329 = vmatprep.subr.bf16.mxu1 %v7053_v2 }
 0x147   :  { %6331 = vmatpush3.bf16.msra.mxu1 %v7505_v7 }
 0x148   :  { %6332 = vmatprep.subr.bf16.mxu1 %v7053_v2 }
 0x1b8   :  { %v285_v9 = vpop.f32.mrb[0].mxu1 }
 0x1b9   :  { %v5406_v10 = vpop.f32.mrb[1].mxu1 }
 0x1ba   :  { %v7507_v10 = vpack.c.bf16 %v3086_v8, %v3085_v4 }
 0x1bc   :  { %6379 = vmatpush3.bf16.msra.mxu0 %v7507_v10 }
 0x1bd   :  { %v358_v11 = vpop.f32.mrb[2].mxu1  ;;  %6380 = vmatprep.subr.bf16.mxu0 %v7053_v2 }
 0x1be   :  { %v359_v12 = vadd.f32 %v358_v11, %v285_v9  ;;  %v5413_v13 = vpop.f32.mrb[3].mxu1 }
 0x1c1   :  { %v431_v15 = vpop.f32.mrb[4].mxu1 }
 0x1c2   :  { %v435_v16 = vadd.f32 %v431_v15, %v359_v12  ;;  %v5420_v17 = vpop.f32.mrb[5].mxu1  ;;  %v3071_v15 = vld [vmem:[#allocation5 + $0xc0] sm:$0xff] }
 0x1c3   :  { %v3087_v17 = vld [vmem:[#allocation5 + $0x140] sm:$0xff] }
 0x1c5   :  { %v505_v18 = vpop.f32.mrb[6].mxu1 }
 0x1c6   :  { %v7469_v19 = vadd.f32 %v505_v18, %v435_v16  ;;  %v5427_v20 = vpop.f32.mrb[7].mxu1  ;;  %v3072_v16 = vld [vmem:[#allocation5 + $0xc8] sm:$0xff] }
 0x1c7   :  { %v881_v21 = vpop.f32.mrb[0].mxu0  ;;  %v7517_v20 = vpack.c.bf16 %v3072_v16, %v3071_v15 }
 0x1c8   :  { %v5462_v22 = vpop.f32.mrb[1].mxu0 }
 0x1c9   :  { %v589_v23 = vpop.f32.mrb[8].mxu1  ;;  %v3073_v22 = vld [vmem:[#allocation5 + $0xd0] sm:$0xff]  ;;  %6334 = vmatpush3.bf16.msra.mxu1 %v7517_v20 }
 0x1ca   :  { %v5434_v24 = vpop.f32.mrb[9].mxu1  ;;  %6335 = vmatprep.subr.bf16.mxu1 %v7053_v2 }
 0x1cb   :  { %v1021_v25 = vpop.f32.mrb[2].mxu0 }
 0x1cc   :  { %v5476_v26 = vpop.f32.mrb[3].mxu0 }
 0x1cd   :  { %v659_v27 = vpop.f32.mrb[10].mxu1  ;;  %v3089_v26 = vld [vmem:[#allocation5 + $0x150] sm:$0xff] }
 0x1ce   :  { %v660_v28 = vadd.f32 %v659_v27, %v589_v23  ;;  %v5441_v30 = vpop.f32.mrb[11].mxu1  ;;  %v3074_v23 = vld [vmem:[#allocation5 + $0xd8] sm:$0xff] }
 0x1cf   :  { %v7471_v31 = vpop.f32.mrb[4].mxu0  ;;  %v3090_v27 = vld [vmem:[#allocation5 + $0x158] sm:$0xff]  ;;  %v7523_v32 = vpack.c.bf16 %v3074_v23, %v3073_v22 }
 0x1d0   :  { %v5490_v35 = vpop.f32.mrb[5].mxu0  ;;  %v7527_v34 = vpack.c.bf16 %v3090_v27, %v3089_v26 }
 0x1d1   :  { %v729_v38 = vpop.f32.mrb[12].mxu1  ;;  %v3075_v35 = vld [vmem:[#allocation5 + $0xe0] sm:$0xff]  ;;  %6337 = vmatpush3.bf16.msra.mxu1 %v7523_v32 }
 0x1d2   :  { %v733_v40 = vadd.f32 %v729_v38, %v660_v28  ;;  %v5448_v41 = vpop.f32.mrb[13].mxu1  ;;  %6338 = vmatprep.subr.bf16.mxu1 %v7053_v2 }
 0x1d3   :  { %v7478_v42 = vpop.f32.mrb[6].mxu0  ;;  %v3092_v41 = vld [vmem:[#allocation5 + $0x168] sm:$0xff] }
 0x1d4   :  { %v5504_v46 = vpop.f32.mrb[7].mxu0 }
 0x1d5   :  { %v803_v49 = vpop.f32.mrb[14].mxu1  ;;  %v7532_v46 = vpack.c.bf16 %v3076_v37, %v3075_v35 }
 0x1d6   :  { %v7487_v51 = vadd.f32 %v803_v49, %v733_v40  ;;  %v5455_v52 = vpop.f32.mrb[15].mxu1 }
 0x1d7   :  { %v7490_v53 = vpop.f32.mrb[8].mxu0  ;;  %v3078_v52 = vld [vmem:[#allocation5 + $0xf8] sm:$0xff]  ;;  %6340 = vmatpush3.bf16.msra.mxu1 %v7532_v46 }
 0x1d8   :  { %v5518_v57 = vpop.f32.mrb[9].mxu0  ;;  %6341 = vmatprep.subr.bf16.mxu1 %v7053_v2 }
 0x1d9   :  { %v951_v60 = vpop.f32.mrb[16].mxu1 }
 0x1da   :  { %v952_v62 = vadd.f32 %v951_v60, %v881_v21  ;;  %v5469_v63 = vpop.f32.mrb[17].mxu1  ;;  %v3088_v21 = vld [vmem:[#allocation5 + $0x148] sm:$0xff] }
 0x1db   :  { %v7500_v0 = vpop.f32.mrb[10].mxu0 }
 0x1dc   :  { %v1025_v5 = vadd.f32 %v1021_v25, %v952_v62  ;;  %v5532_v6 = vpop.f32.mrb[11].mxu0  ;;  %v7519_v25 = vpack.c.bf16 %v3088_v21, %v3087_v17 }
 0x1dd   :  { %v1095_v9 = vpop.f32.mrb[18].mxu1 }
 0x1de   :  { %v7509_v11 = vadd.f32 %v1095_v9, %v1025_v5  ;;  %v5483_v12 = vpop.f32.mrb[19].mxu1  ;;  %6382 = vmatpush3.bf16.msra.mxu0 %v7519_v25  ;;  %v516_v9 = vadd.f32 %v7552_v3, %v7469_v19 }
 0x1df   :  { %v7512_v13 = vpop.f32.mrb[12].mxu0  ;;  %6383 = vmatprep.subr.bf16.mxu0 %v7053_v2 }
 0x1e0   :  { %v5546_v18 = vpop.f32.mrb[13].mxu0  ;;  %v1100_v12 = vadd.f32 %v7552_v3, %v7509_v11  ;;  %v518_v22 = vmul.f32 0.05, %v516_v9  ;;  %vm517_vm4 = vcmp.ge.f32.partialorder %v516_v9, 0.0 }
 0x1e1   :  { %v1240_v24 = vpop.f32.mrb[20].mxu1 }
 0x1e2   :  { %v1241_v28 = vadd.f32 %v1240_v24, %v7471_v31  ;;  %v5497_v30 = vpop.f32.mrb[21].mxu1  ;;  %v3091_v31 = vld [vmem:[#allocation5 + $0x160] sm:$0xff]  ;;  %6385 = vmatpush3.bf16.msra.mxu0 %v7527_v34  ;;  %v1102_v19 = vmul.f32 0.05, %v1100_v12  ;;  %vm1101_vm5 = vcmp.ge.f32.partialorder %v1100_v12, 0.0 }
 0x1e3   :  { %v1891_v33 = vpop.f32.mrb[14].mxu0  ;;  %v7538_v49 = vpack.c.bf16 %v3092_v41, %v3091_v31  ;;  %6386 = vmatprep.subr.bf16.mxu0 %v7053_v2 }
 0x1e4   :  { %v1317_v38 = vadd.f32 %v7478_v42, %v1241_v28  ;;  %v5560_v40 = vpop.f32.mrb[15].mxu0  ;;  %v3077_v42 = vld [vmem:[#allocation5 + $0xf0] sm:$0xff] }
 0x1e5   :  { %v1387_v43 = vpop.f32.mrb[22].mxu1  ;;  %v7542_v60 = vpack.c.bf16 %v3078_v52, %v3077_v42 }
 0x1e6   :  { %v1391_v44 = vadd.f32 %v1387_v43, %v1317_v38  ;;  %v5511_v45 = vpop.f32.mrb[23].mxu1  ;;  %6388 = vmatpush3.bf16.msra.mxu0 %v7538_v49  ;;  %v7573_v38 = vsel %vm517_vm4, %v516_v9, %v518_v22 }
 0x1e7   :  { %v7534_v48 = vpop.f32.mrb[16].mxu0  ;;  %6389 = vmatprep.subr.bf16.mxu0 %v7053_v2  ;;  %6343 = vmatpush3.bf16.msra.mxu1 %v7542_v60  ;;  %v2847_v42 = vsel %vm2846_vm6, %v7573_v38, 0.0 }
 0x1e8   :  { %v5574_v54 = vpop.f32.mrb[17].mxu0  ;;  %6344 = vmatprep.subr.bf16.mxu1 %v7053_v2  ;;  %v1392_v11 = vadd.f32 %v7552_v3, %v1391_v44 }
 0x1e9   :  { %v1532_v57 = vpop.f32.mrb[24].mxu1 }
 0x1ea   :  { %v5525_v59 = vpop.f32.mrb[25].mxu1  ;;  %v1533_v62 = vadd.f32 %v1532_v57, %v7490_v53  ;;  %v808_v53 = vadd.f32 %v7552_v3, %v7487_v51  ;;  %6391 = vmatpush3.bf16.msra.mxu0 %v7547_v1  ;;  %v1394_v40 = vmul.f32 0.05, %v1392_v11  ;;  %vm1393_vm7 = vcmp.ge.f32.partialorder %v1392_v11, 0.0 }
 0x1eb   :  { %v2183_v63 = vpop.f32.mrb[18].mxu0  ;;  %6416 = vmatprep.subr.bf16.mxu0 %v7053_v2 }
 0x1ec   :  { %v5588_v4 = vpop.f32.mrb[19].mxu0  ;;  %v1606_v5 = vadd.f32 %v7500_v0, %v1533_v62  ;;  %v810_v17 = vmul.f32 0.05, %v808_v53  ;;  %vm809_vm1 = vcmp.ge.f32.partialorder %v808_v53, 0.0  ;;  %v7587_v56 = vsel %vm1393_vm7, %v1392_v11, %v1394_v40 }
 0x1ed   :  { %v1676_v6 = vpop.f32.mrb[26].mxu1 }
 0x1ee   :  { %v5539_v8 = vpop.f32.mrb[27].mxu1  ;;  %v1680_v15 = vadd.f32 %v1676_v6, %v1606_v5  ;;  %v7571_v30 = vsel %vm809_vm1, %v808_v53, %v810_v17  ;;  %v2848_v6 = vrot.slane %v2847_v42, 4 }
 0x1ef   :  { %v7563_v16 = vpop.f32.mrb[20].mxu0  ;;  %v2855_v43 = vsel %vm2846_vm6, %v7571_v30, 0.0 }
 0x1f0   :  { %v5602_v0 = vpop.f32.mrb[21].mxu0  ;;  %v1681_v27 = vadd.f32 %v7552_v3, %v1680_v15  ;;  %v2856_v62 = vrot.slane %v2855_v43, 4 }
 0x1f1   :  { %v1821_v51 = vpop.f32.mrb[28].mxu1 }
 0x1f2   :  { %v1822_v18 = vadd.f32 %v1821_v51, %v7512_v13  ;;  %v5553_v21 = vpop.f32.mrb[29].mxu1  ;;  %v7575_v13 = vsel %vm1101_vm5, %v1100_v12, %v1102_v19  ;;  %v1683_v44 = vmul.f32 0.05, %v1681_v27  ;;  %vm1682_vm8 = vcmp.ge.f32.partialorder %v1681_v27, 0.0 }
 0x1f3   :  { %v2472_v23 = vpop.f32.mrb[22].mxu0  ;;  %v2863_v52 = vsel %vm2846_vm6, %v7575_v13, 0.0  ;;  %v2871_v12 = vsel %vm2846_vm6, %v7587_v56, 0.0  ;;  %v2857_v51 = vadd.f32 %v2856_v62, %v2855_v43 }
 0x1f4   :  { %v1895_v24 = vadd.f32 %v1891_v33, %v1822_v18  ;;  %v5616_v26 = vpop.f32.mrb[23].mxu0  ;;  %v2864_v53 = vrot.slane %v2863_v52, 4  ;;  %v7589_v8 = vsel %vm1682_vm8, %v1681_v27, %v1683_v44  ;;  %v2872_v22 = vrot.slane %v2871_v12, 4 }
 0x1f5   :  { %v1965_v28 = vpop.f32.mrb[30].mxu1  ;;  %v2879_v17 = vsel %vm2846_vm6, %v7589_v8, 0.0 }
 0x1f6   :  { %v1969_v35 = vadd.f32 %v1965_v28, %v1895_v24  ;;  %v5567_v37 = vpop.f32.mrb[31].mxu1  ;;  %v2865_v21 = vadd.f32 %v2864_v53, %v2863_v52  ;;  %v2880_v28 = vrot.slane %v2879_v17, 4 }
 0x1f7   :  { %v7577_v31 = vpop.f32.mrb[24].mxu0 }
 0x1f8   :  { %v1970_v41 = vadd.f32 %v7552_v3, %v1969_v35  ;;  %v5630_v33 = vpop.f32.mrb[25].mxu0  ;;  %v2858_v35 = vrot.slane %v2857_v51, 2 }
 0x1f9   :  { %v2110_v45 = vpop.f32.mrb[32].mxu1 }
 0x1fa   :  { %v2111_v54 = vadd.f32 %v2110_v45, %v7534_v48  ;;  %v5581_v55 = vpop.f32.mrb[33].mxu1  ;;  %v1972_v57 = vmul.f32 0.05, %v1970_v41  ;;  %vm1971_vm9 = vcmp.ge.f32.partialorder %v1970_v41, 0.0  ;;  %v2859_v62 = vadd.f32 %v2858_v35, %v2857_v51 }
 0x1fb   :  { %v2761_v59 = vpop.f32.mrb[26].mxu0  ;;  %v2881_v55 = vadd.f32 %v2880_v28, %v2879_v17 }
 0x1fc   :  { %v2187_v4 = vadd.f32 %v2183_v63, %v2111_v54  ;;  %v5644_v5 = vpop.f32.mrb[27].mxu0  ;;  %v7593_v48 = vsel %vm1971_vm9, %v1970_v41, %v1972_v57  ;;  %v2849_v63 = vadd.f32 %v2848_v6, %v2847_v42  ;;  %v2873_v41 = vadd.f32 %v2872_v22, %v2871_v12 }
 0x1fd   :  { %v2257_v9 = vpop.f32.mrb[34].mxu1  ;;  %v2887_v11 = vsel %vm2846_vm6, %v7593_v48, 0.0  ;;  %v2866_v42 = vrot.slane %v2865_v21, 2  ;;  %v2860_v22 = vrot.slane %v2859_v62, 1 }
 0x1fe   :  { %v2261_v15 = vadd.f32 %v2257_v9, %v2187_v4  ;;  %v5595_v0 = vpop.f32.mrb[35].mxu1  ;;  %v2888_v33 = vrot.slane %v2887_v11, 4  ;;  %v2850_v45 = vrot.slane %v2849_v63, 2  ;;  %v2874_v4 = vrot.slane %v2873_v41, 2 }
 0x200   :  { %v2262_v18 = vadd.f32 %v7552_v3, %v2261_v15  ;;  %v2889_v5 = vadd.f32 %v2888_v33, %v2887_v11  ;;  %v2851_v53 = vadd.f32 %v2850_v45, %v2849_v63  ;;  %v2882_v15 = vrot.slane %v2881_v55, 2 }
 0x201   :  { %v2402_v19 = vpop.f32.mrb[36].mxu1  ;;  %v2875_v17 = vadd.f32 %v2874_v4, %v2873_v41 }
 0x202   :  { %vm2263_vm10 = vcmp.ge.f32.partialorder %v2262_v18, 0.0  ;;  %v2264_v24 = vmul.f32 0.05, %v2262_v18  ;;  %v2403_v26 = vadd.f32 %v2402_v19, %v7563_v16  ;;  %v5609_v27 = vpop.f32.mrb[37].mxu1  ;;  %v2883_v35 = vadd.f32 %v2882_v15, %v2881_v55 }
 0x203   :  { %v2852_v27 = vrot.slane %v2851_v53, 1 }
 0x204   :  { %v7601_v37 = vsel %vm2263_vm10, %v2262_v18, %v2264_v24  ;;  %v2476_v40 = vadd.f32 %v2472_v23, %v2403_v26  ;;  %v2867_v23 = vadd.f32 %v2866_v42, %v2865_v21  ;;  %v2890_v24 = vrot.slane %v2889_v5, 2 }
 0x205   :  { %v2895_v43 = vsel %vm2846_vm6, %v7601_v37, 0.0  ;;  %v2546_v44 = vpop.f32.mrb[38].mxu1  ;;  %v2853_v41 = vadd.f32 %v2852_v27, %v2851_v53 }
 0x206   :  { %v2550_v52 = vadd.f32 %v2546_v44, %v2476_v40  ;;  %v5623_v54 = vpop.f32.mrb[39].mxu1  ;;  %v2896_v57 = vrot.slane %v2895_v43, 4  ;;  %v2868_v63 = vrot.slane %v2867_v23, 1  ;;  %v2891_v45 = vadd.f32 %v2890_v24, %v2889_v5 }
 0x208   :  { %v2551_v16 = vadd.f32 %v7552_v3, %v2550_v52  ;;  %v2897_v0 = vadd.f32 %v2896_v57, %v2895_v43  ;;  %v2861_v43 = vadd.f32 %v2860_v22, %v2859_v62  ;;  %v2869_v52 = vadd.f32 %v2868_v63, %v2867_v23 }
 0x209   :  { %v2691_v6 = vpop.f32.mrb[40].mxu1  ;;  %v2884_v57 = vrot.slane %v2883_v35, 1 }
 0x20a   :  { %vm2552_vm11 = vcmp.ge.f32.partialorder %v2551_v16, 0.0  ;;  %v2553_v9 = vmul.f32 0.05, %v2551_v16  ;;  %v5637_v12 = vpop.f32.mrb[41].mxu1  ;;  %v2692_v18 = vadd.f32 %v2691_v6, %v7577_v31  ;;  %v2898_v40 = vrot.slane %v2897_v0, 2 }
 0x20b   :  { %v2876_v31 = vrot.slane %v2875_v17, 1  ;;  %v2862_v4 = vadd.f32 %v2861_v43, %v2853_v41  ;;  %v2885_v5 = vadd.f32 %v2884_v57, %v2883_v35 }
 0x20c   :  { %v7607_v19 = vsel %vm2552_vm11, %v2551_v16, %v2553_v9  ;;  %v2765_v26 = vadd.f32 %v2761_v59, %v2692_v18  ;;  %v2899_v16 = vadd.f32 %v2898_v40, %v2897_v0  ;;  %v2892_v9 = vrot.slane %v2891_v45, 1 }
 0x20d   :  { %v2903_v51 = vsel %vm2846_vm6, %v7607_v19, 0.0  ;;  %v2835_v11 = vpop.f32.mrb[42].mxu1  ;;  %v2877_v6 = vadd.f32 %v2876_v31, %v2875_v17  ;;  %v2870_v15 = vadd.f32 %v2869_v52, %v2862_v4 }
 0x20e   :  { %v2904_v21 = vrot.slane %v2903_v51, 4  ;;  %v5651_v28 = vpop.f32.mrb[43].mxu1  ;;  %v2839_v33 = vadd.f32 %v2835_v11, %v2765_v26  ;;  %v2900_v18 = vrot.slane %v2899_v16, 1  ;;  %v2893_v23 = vadd.f32 %v2892_v9, %v2891_v45 }
 0x20f   :  { %v2878_v53 = vadd.f32 %v2877_v6, %v2870_v15 }
 0x210   :  { %v2905_v44 = vadd.f32 %v2904_v21, %v2903_v51  ;;  %v2840_v42 = vadd.f32 %v7552_v3, %v2839_v33  ;;  %v2901_v51 = vadd.f32 %v2900_v18, %v2899_v16 }
 0x211   :  { %v2886_v0 = vadd.f32 %v2885_v5, %v2878_v53 }
 0x212   :  { %v2906_v54 = vrot.slane %v2905_v44, 2  ;;  %vm2841_vm12 = vcmp.ge.f32.partialorder %v2840_v42, 0.0  ;;  %v2842_v59 = vmul.f32 0.05, %v2840_v42 }
 0x213   :  { %v2894_v11 = vadd.f32 %v2893_v23, %v2886_v0 }
 0x214   :  { %v2907_v12 = vadd.f32 %v2906_v54, %v2905_v44  ;;  %v7612_v55 = vsel %vm2841_vm12, %v2840_v42, %v2842_v59 }
 0x215   :  { %v2911_v62 = vsel %vm2846_vm6, %v7612_v55, 0.0  ;;  %v2902_v63 = vadd.f32 %v2901_v51, %v2894_v11 }
 0x216   :  { %v2912_v3 = vrot.slane %v2911_v62, 4  ;;  %v2908_v22 = vrot.slane %v2907_v12, 1 }
 0x218   :  { %v2913_v24 = vadd.f32 %v2912_v3, %v2911_v62  ;;  %v2909_v17 = vadd.f32 %v2908_v22, %v2907_v12 }
 0x21a   :  { %v2914_v26 = vrot.slane %v2913_v24, 2  ;;  %v2910_v28 = vadd.f32 %v2909_v17, %v2902_v63 }
 0x21c   :  { %v2915_v27 = vadd.f32 %v2914_v26, %v2913_v24 }
 0x21e   :  { %v2916_v21 = vrot.slane %v2915_v27, 1 }
 0x220   :  { %v2917_v40 = vadd.f32 %v2916_v21, %v2915_v27 }
 0x222   :  { %v2918_v33 = vadd.f32 %v2917_v40, %v2910_v28 }
 0x224   :  { %v7616_v43 = vmul.f32 0.055555556, %v2918_v33 }
 0x226   :  { %v2921_v35 = vsub.f32 %v7573_v38, %v7616_v43  ;;  %v2931_v44 = vsub.f32 %v7571_v30, %v7616_v43  ;;  %v2941_v31 = vsub.f32 %v7575_v13, %v7616_v43  ;;  %v2951_v45 = vsub.f32 %v7587_v56, %v7616_v43 }
 0x227   :  { %v2961_v42 = vsub.f32 %v7589_v8, %v7616_v43  ;;  %v2971_v41 = vsub.f32 %v7593_v48, %v7616_v43  ;;  %v2981_v52 = vsub.f32 %v7601_v37, %v7616_v43  ;;  %v2991_v54 = vsub.f32 %v7607_v19, %v7616_v43 }
 0x228   :  { %v2922_v57 = vmul.f32 %v2921_v35, %v2921_v35  ;;  %v2932_v16 = vmul.f32 %v2931_v44, %v2931_v44  ;;  %v2942_v59 = vmul.f32 %v2941_v31, %v2941_v31  ;;  %v2952_v4 = vmul.f32 %v2951_v45, %v2951_v45 }
 0x229   :  { %v2962_v6 = vmul.f32 %v2961_v42, %v2961_v42  ;;  %v2972_v9 = vmul.f32 %v2971_v41, %v2971_v41  ;;  %v2982_v12 = vmul.f32 %v2981_v52, %v2981_v52  ;;  %v2992_v62 = vmul.f32 %v2991_v54, %v2991_v54 }
 0x22a   :  { %v2923_v15 = vsel %vm2846_vm6, %v2922_v57, 0.0  ;;  %v2933_v5 = vsel %vm2846_vm6, %v2932_v16, 0.0  ;;  %v2943_v18 = vsel %vm2846_vm6, %v2942_v59, 0.0  ;;  %v2953_v3 = vsel %vm2846_vm6, %v2952_v4, 0.0 }
 0x22b   :  { %v2924_v53 = vrot.slane %v2923_v15, 4  ;;  %v2934_v23 = vrot.slane %v2933_v5, 4  ;;  %v2944_v22 = vrot.slane %v2943_v18, 4  ;;  %v2954_v24 = vrot.slane %v2953_v3, 4 }
 0x22c   :  { %v2963_v0 = vsel %vm2846_vm6, %v2962_v6, 0.0  ;;  %v2973_v51 = vsel %vm2846_vm6, %v2972_v9, 0.0  ;;  %v2983_v26 = vsel %vm2846_vm6, %v2982_v12, 0.0  ;;  %v2993_v11 = vsel %vm2846_vm6, %v2992_v62, 0.0 }
 0x22d   :  { %v2925_v17 = vadd.f32 %v2924_v53, %v2923_v15  ;;  %v2935_v27 = vadd.f32 %v2934_v23, %v2933_v5  ;;  %v2945_v63 = vadd.f32 %v2944_v22, %v2943_v18  ;;  %v2955_v21 = vadd.f32 %v2954_v24, %v2953_v3 }
 0x22e   :  { %v2964_v28 = vrot.slane %v2963_v0, 4  ;;  %v2974_v40 = vrot.slane %v2973_v51, 4  ;;  %v2984_v33 = vrot.slane %v2983_v26, 4  ;;  %v2994_v35 = vrot.slane %v2993_v11, 4 }
 0x22f   :  { %v2926_v44 = vrot.slane %v2925_v17, 2  ;;  %v2936_v31 = vrot.slane %v2935_v27, 2  ;;  %v2946_v45 = vrot.slane %v2945_v63, 2  ;;  %v2956_v42 = vrot.slane %v2955_v21, 2 }
 0x230   :  { %v2965_v41 = vadd.f32 %v2964_v28, %v2963_v0  ;;  %v2975_v52 = vadd.f32 %v2974_v40, %v2973_v51  ;;  %v2985_v54 = vadd.f32 %v2984_v33, %v2983_v26  ;;  %v2995_v62 = vadd.f32 %v2994_v35, %v2993_v11 }
 0x231   :  { %v2927_v57 = vadd.f32 %v2926_v44, %v2925_v17  ;;  %v2937_v16 = vadd.f32 %v2936_v31, %v2935_v27  ;;  %v2947_v59 = vadd.f32 %v2946_v45, %v2945_v63  ;;  %v2957_v4 = vadd.f32 %v2956_v42, %v2955_v21 }
 0x232   :  { %v2966_v6 = vrot.slane %v2965_v41, 2  ;;  %v2976_v9 = vrot.slane %v2975_v52, 2  ;;  %v2986_v12 = vrot.slane %v2985_v54, 2  ;;  %v2996_v0 = vrot.slane %v2995_v62, 2 }
 0x233   :  { %v2928_v15 = vrot.slane %v2927_v57, 1  ;;  %v2938_v5 = vrot.slane %v2937_v16, 1  ;;  %v2948_v18 = vrot.slane %v2947_v59, 1  ;;  %v2958_v22 = vrot.slane %v2957_v4, 1 }
 0x234   :  { %v2967_v3 = vadd.f32 %v2966_v6, %v2965_v41  ;;  %v2977_v24 = vadd.f32 %v2976_v9, %v2975_v52  ;;  %v2987_v14 = vadd.f32 %v2986_v12, %v2985_v54  ;;  %v3001_v27 = vsub.f32 %v7612_v55, %v7616_v43 }
 0x235   :  { %v2929_v53 = vadd.f32 %v2928_v15, %v2927_v57  ;;  %v2939_v23 = vadd.f32 %v2938_v5, %v2937_v16  ;;  %v2949_v26 = vadd.f32 %v2948_v18, %v2947_v59  ;;  %v2959_v21 = vadd.f32 %v2958_v22, %v2957_v4 }
 0x236   :  { %v2968_v17 = vrot.slane %v2967_v3, 1  ;;  %v2978_v28 = vrot.slane %v2977_v24, 1  ;;  %v3002_v11 = vmul.f32 %v3001_v27, %v3001_v27  ;;  %v2997_v40 = vadd.f32 %v2996_v0, %v2995_v62  ;;  %v2845_v0 = vld [vmem:[%s8102_s4] sm:$0x1] }
 0x237   :  { %v2940_v51 = vadd.f32 %v2939_v23, %v2929_v53  ;;  %v2988_v44 = vrot.slane %v2987_v14, 1  ;;  %v7646_v53 = vshrl.u32 %v108_v29, 7  ;;  %v2844_v23 = vld [vmem:[%s8101_s3] sm:$0x1]  ;;  %v3047_v29 = vld [vmem:[#allocation5] sm:$0xff] }
 0x238   :  { %v2969_v35 = vadd.f32 %v2968_v17, %v2967_v3  ;;  %v3003_v31 = vsel %vm2846_vm6, %v3002_v11, 0.0  ;;  %v2979_v41 = vadd.f32 %v2978_v28, %v2977_v24  ;;  %v2998_v52 = vrot.slane %v2997_v40, 1  ;;  %v3048_v17 = vld [vmem:[#allocation5 + $0x8] sm:$0xff] }
 0x239   :  { %v2950_v63 = vadd.f32 %v2949_v26, %v2940_v51  ;;  %v3004_v45 = vrot.slane %v3003_v31, 4  ;;  %v2989_v16 = vadd.f32 %v2988_v44, %v2987_v14  ;;  %v7652_v14 = vsub.s32 0, %v7646_v53 }
 0x23a   :  { %v2999_v9 = vadd.f32 %v2998_v52, %v2997_v40  ;;  %v7666_v28 = vpack.c.bf16 %v3048_v17, %v3047_v29  ;;  %v3052_v52 = vld [vmem:[#allocation5 + $0x28] sm:$0xff] }
 0x23b   :  { %v2960_v33 = vadd.f32 %v2959_v21, %v2950_v63  ;;  %v3005_v54 = vadd.f32 %v3004_v45, %v3003_v31  ;;  %v3049_v31 = vld [vmem:[#allocation5 + $0x10] sm:$0xff]  ;;  %v3096_v29 = vld [vmem:[#allocation5 + $0x188] sm:$0xff] }
 0x23d   :  { %v2970_v42 = vadd.f32 %v2969_v35, %v2960_v33  ;;  %v3006_v59 = vrot.slane %v3005_v54, 2 }
 0x23f   :  { %v2980_v57 = vadd.f32 %v2979_v41, %v2970_v42  ;;  %v3007_v12 = vadd.f32 %v3006_v59, %v3005_v54  ;;  %v3051_v41 = vld [vmem:[#allocation5 + $0x20] sm:$0xff]  ;;  %v8114_v54 = vmov 0.0   ;;  %v3054_v59 = vld [vmem:[#allocation5 + $0x38] sm:$0xff] }
 0x241   :  { %v2990_v6 = vadd.f32 %v2989_v16, %v2980_v57  ;;  %v3008_v15 = vrot.slane %v3007_v12, 1  ;;  %v7715_v57 = vpack.c.bf16 %v3052_v52, %v3051_v41  ;;  %v3053_v16 = vld [vmem:[#allocation5 + $0x30] sm:$0xff]  ;;  %v3104_v41 = vld [vmem:[#allocation5 + $0x1c8] sm:$0xff] }
 0x243   :  { %v3000_v4 = vadd.f32 %v2999_v9, %v2990_v6  ;;  %v3009_v5 = vadd.f32 %v3008_v15, %v3007_v12  ;;  %v7721_v6 = vpack.c.bf16 %v3054_v59, %v3053_v16  ;;  %v3055_v9 = vld [vmem:[#allocation5 + $0x40] sm:$0xff]  ;;  %v3056_v12 = vld [vmem:[#allocation5 + $0x48] sm:$0xff]  ;;  %v3057_v15 = vld [vmem:[#allocation5 + $0x50] sm:$0xff] }
 0x244   :  { %v3105_v16 = vld [vmem:[#allocation5 + $0x1d0] sm:$0xff]  ;;  %v3106_v59 = vld [vmem:[#allocation5 + $0x1d8] sm:$0xff] }
 0x245   :  { %v3010_v62 = vadd.f32 %v3009_v5, %v3000_v4  ;;  %v7727_v4 = vpack.c.bf16 %v3056_v12, %v3055_v9  ;;  %v3058_v5 = vld [vmem:[#allocation5 + $0x58] sm:$0xff]  ;;  %v7791_v9 = vpack.c.bf16 %v3106_v59, %v3105_v16  ;;  %v3107_v12 = vld [vmem:[#allocation5 + $0x1e0] sm:$0xff] }
 0x246   :  { %v4408_v59 = vld [vmem:[#allocation7 + $0x160] sm:$0xff] }
 0x247   :  { %v3011_v18 = vmul.f32 0.055555556, %v3010_v62  ;;  %v7733_v62 = vpack.c.bf16 %v3058_v5, %v3057_v15  ;;  %v3108_v15 = vld [vmem:[#allocation5 + $0x1e8] sm:$0xff] }
 0x248   :  { %v7797_v5 = vpack.c.bf16 %v3108_v15, %v3107_v12 }
 0x249   :  { %v3012_v3 = vadd.f32 1e-05, %v3011_v18  ;;  %v3059_v18 = vld [vmem:[#allocation5 + $0x60] sm:$0xff] }
 0x24b   :  { %6919 = vrsqrt.f32 %v3012_v3  ;;  %v3060_v3 = vld [vmem:[#allocation5 + $0x68] sm:$0xff] }
 0x255   :  { %v6920_v22 = vpop.eup %6919 }
 0x256   :  { %v3014_v24 = vmul.f32 %v6920_v22, %v2844_v23  ;;  %v7739_v23 = vpack.c.bf16 %v3060_v3, %v3059_v18  ;;  %v3061_v22 = vld [vmem:[#allocation5 + $0x70] sm:$0xff]  ;;  %v3110_v3 = vld [vmem:[#allocation5 + $0x1f8] sm:$0xff] }
 0x257   :  { %v3109_v18 = vld [vmem:[#allocation5 + $0x1f0] sm:$0xff] }
 0x258   :  { %v3015_v51 = vmul.f32 %v3014_v24, %v7616_v43  ;;  %v7659_v26 = vrot.slane %v3014_v24, %v7652_v14  ;;  %v3062_v24 = vld [vmem:[#allocation5 + $0x78] sm:$0xff] }
 0x25a   :  { %v3016_v27 = vsub.f32 %v2845_v0, %v3015_v51  ;;  %v3031_v21 = vmul.f32 %v7659_v26, %v7571_v30  ;;  %v3035_v11 = vmul.f32 %v7659_v26, %v7587_v56  ;;  %v3037_v43 = vmul.f32 %v7659_v26, %v7589_v8  ;;  %v3050_v8 = vld [vmem:[#allocation5 + $0x18] sm:$0xff]  ;;  %v3095_v51 = vld [vmem:[#allocation5 + $0x180] sm:$0xff] }
 0x25b   :  { %v3039_v40 = vmul.f32 %v7659_v26, %v7593_v48  ;;  %v3041_v33 = vmul.f32 %v7659_v26, %v7601_v37  ;;  %v3043_v35 = vmul.f32 %v7659_v26, %v7607_v19  ;;  %v3045_v30 = vmul.f32 %v7659_v26, %v7612_v55 }
 0x25c   :  { %v7662_v63 = vrot.slane %v3016_v27, %v7652_v14  ;;  %v7705_v42 = vpack.c.bf16 %v3050_v8, %v3049_v31  ;;  %v7745_v0 = vpack.c.bf16 %v3062_v24, %v3061_v22  ;;  %v3023_v17 = vmul.f32 %v7659_v26, %v7573_v38  ;;  %v3103_v8 = vld [vmem:[#allocation5 + $0x1c0] sm:$0xff] }
 0x25d   :  { %v3033_v27 = vmul.f32 %v7659_v26, %v7575_v13  ;;  %v3099_v13 = vld [vmem:[#allocation5 + $0x1a0] sm:$0xff]  ;;  %v3100_v26 = vld [vmem:[#allocation5 + $0x1a8] sm:$0xff]  ;;  %v7785_v52 = vpack.c.bf16 %v3104_v41, %v3103_v8  ;;  %v7803_v22 = vpack.c.bf16 %v3110_v3, %v3109_v18 }
 0x25e   :  { %v7681_v44 = vadd.f32 %v3031_v21, %v7662_v63  ;;  %v7684_v56 = vadd.f32 %v3035_v11, %v7662_v63  ;;  %v7687_v45 = vadd.f32 %v3037_v43, %v7662_v63  ;;  %v7690_v48 = vadd.f32 %v3039_v40, %v7662_v63  ;;  %v3097_v40 = vld [vmem:[#allocation5 + $0x190] sm:$0xff]  ;;  %v4409_v41 = vld [vmem:[#allocation7 + $0x168] sm:$0xff] }
 0x25f   :  { %v7693_v37 = vadd.f32 %v3041_v33, %v7662_v63  ;;  %v7696_v19 = vadd.f32 %v3043_v35, %v7662_v63  ;;  %v7701_v55 = vadd.f32 %v3045_v30, %v7662_v63  ;;  %v7755_v21 = vpack.c.bf16 %v3096_v29, %v3095_v51  ;;  %v3098_v33 = vld [vmem:[#allocation5 + $0x198] sm:$0xff]  ;;  %v3101_v35 = vld [vmem:[#allocation5 + $0x1b0] sm:$0xff] }
 0x260   :  { %5685 = vmatmul.mubr.f32.vlgmr.msra.gmra.mrb[44].mxu1 %v7681_v44  ;;  %5755 = vmatmul.mubr.f32.vlgmr.msra.gmra.mrb[28].mxu0 %v7684_v56  ;;  %v3030_v11 = vadd.f32 %v7662_v63, %v3023_v17  ;;  %v3034_v43 = vadd.f32 %v3033_v27, %v7662_v63  ;;  %v7763_v38 = vpack.c.bf16 %v3098_v33, %v3097_v40  ;;  %v3102_v30 = vld [vmem:[#allocation5 + $0x1b8] sm:$0xff]  ;;  %v4396_v17 = vld [vmem:[#allocation7 + $0x100] sm:$0xff]  ;;  %v4398_v27 = vld [vmem:[#allocation7 + $0x110] sm:$0xff] }
 0x261   :  { %6346 = vmatpush3.bf16.msra.mxu1 %v7666_v28  ;;  %6418 = vmatpush3.bf16.msra.mxu0 %v7473_v36  ;;  %v7773_v63 = vpack.c.bf16 %v3100_v26, %v3099_v13  ;;  %v7779_v31 = vpack.c.bf16 %v3102_v30, %v3101_v35  ;;  %v4399_v51 = vld [vmem:[#allocation7 + $0x118] sm:$0xff]  ;;  %v4400_v33 = vld [vmem:[#allocation7 + $0x120] sm:$0xff]  ;;  %v4405_v26 = vld [vmem:[#allocation7 + $0x148] sm:$0xff] }
 0x262   :  { %6347 = vmatprep.subr.bf16.mxu1 %v7053_v2  ;;  %6419 = vmatprep.subr.bf16.mxu0 %v7053_v2  ;;  %v4404_v30 = vld [vmem:[#allocation7 + $0x140] sm:$0xff] }
 0x263   :  { %5719 = vmatprep.mubr.msk.f32.mxu1 %vm7054_vm0, %v8114_v54  ;;  %5824 = vmatprep.mubr.msk.f32.mxu0 %vm7054_vm0, %v8114_v54 }
 0x265   :  { %6349 = vmatpush3.bf16.msra.mxu1 %v7705_v42  ;;  %6421 = vmatpush3.bf16.msra.mxu0 %v7483_v47 }
 0x266   :  { %6350 = vmatprep.subr.bf16.mxu1 %v7053_v2  ;;  %6422 = vmatprep.subr.bf16.mxu0 %v7053_v2 }
 0x269   :  { %6352 = vmatpush3.bf16.msra.mxu1 %v7715_v57  ;;  %6424 = vmatpush3.bf16.msra.mxu0 %v7495_v58 }
 0x26a   :  { %6353 = vmatprep.subr.bf16.mxu1 %v7053_v2  ;;  %6425 = vmatprep.subr.bf16.mxu0 %v7053_v2 }
 0x26d   :  { %6355 = vmatpush3.bf16.msra.mxu1 %v7721_v6  ;;  %6427 = vmatpush3.bf16.msra.mxu0 %v7505_v7 }
 0x26e   :  { %6356 = vmatprep.subr.bf16.mxu1 %v7053_v2  ;;  %6428 = vmatprep.subr.bf16.mxu0 %v7053_v2 }
 0x271   :  { %6358 = vmatpush3.bf16.msra.mxu1 %v7727_v4  ;;  %6430 = vmatpush3.bf16.msra.mxu0 %v7517_v20 }
 0x272   :  { %6359 = vmatprep.subr.bf16.mxu1 %v7053_v2  ;;  %6431 = vmatprep.subr.bf16.mxu0 %v7053_v2 }
 0x275   :  { %6361 = vmatpush3.bf16.msra.mxu1 %v7733_v62  ;;  %6433 = vmatpush3.bf16.msra.mxu0 %v7523_v32 }
 0x276   :  { %6362 = vmatprep.subr.bf16.mxu1 %v7053_v2  ;;  %6434 = vmatprep.subr.bf16.mxu0 %v7053_v2 }
 0x279   :  { %6364 = vmatpush3.bf16.msra.mxu1 %v7739_v23  ;;  %6436 = vmatpush3.bf16.msra.mxu0 %v7532_v46 }
 0x27a   :  { %6365 = vmatprep.subr.bf16.mxu1 %v7053_v2  ;;  %6437 = vmatprep.subr.bf16.mxu0 %v7053_v2 }
 0x27d   :  { %6367 = vmatpush3.bf16.msra.mxu1 %v7745_v0  ;;  %6439 = vmatpush3.bf16.msra.mxu0 %v7542_v60 }
 0x27e   :  { %6392 = vmatprep.subr.bf16.mxu1 %v7053_v2  ;;  %6464 = vmatprep.subr.bf16.mxu0 %v7053_v2 }
 0x280   :  { %5720 = vmatmul.mubr.f32.vlgmr.msra.gmra.mrb[46].mxu1 %v3030_v11  ;;  %5825 = vmatmul.mubr.f32.vlgmr.msra.gmra.mrb[30].mxu0 %v3034_v43  ;;  %v4401_v11 = vld [vmem:[#allocation7 + $0x128] sm:$0xff]  ;;  %v4403_v43 = vld [vmem:[#allocation7 + $0x138] sm:$0xff] }
 0x281   :  { %6394 = vmatpush3.bf16.msra.mxu1 %v7755_v21  ;;  %6466 = vmatpush3.bf16.msra.mxu0 %v7475_v39  ;;  %v6708_v40 = vpack.c.bf16 %v4403_v43, %v4401_v11 }
 0x282   :  { %6395 = vmatprep.subr.bf16.mxu1 %v7053_v2  ;;  %6467 = vmatprep.subr.bf16.mxu0 %v7053_v2 }
 0x283   :  { %5789 = vmatprep.mubr.msk.f32.mxu1 %vm7054_vm0, %v8114_v54  ;;  %5894 = vmatprep.mubr.msk.f32.mxu0 %vm7054_vm0, %v8114_v54 }
 0x285   :  { %6397 = vmatpush3.bf16.msra.mxu1 %v7763_v38  ;;  %6469 = vmatpush3.bf16.msra.mxu0 %v7485_v50 }
 0x286   :  { %6398 = vmatprep.subr.bf16.mxu1 %v7053_v2  ;;  %6470 = vmatprep.subr.bf16.mxu0 %v7053_v2 }
 0x289   :  { %6400 = vmatpush3.bf16.msra.mxu1 %v7773_v63  ;;  %6472 = vmatpush3.bf16.msra.mxu0 %v7497_v61 }
 0x28a   :  { %6401 = vmatprep.subr.bf16.mxu1 %v7053_v2  ;;  %6473 = vmatprep.subr.bf16.mxu0 %v7053_v2 }
 0x28d   :  { %6403 = vmatpush3.bf16.msra.mxu1 %v7779_v31  ;;  %6475 = vmatpush3.bf16.msra.mxu0 %v7507_v10 }
 0x28e   :  { %6404 = vmatprep.subr.bf16.mxu1 %v7053_v2  ;;  %6476 = vmatprep.subr.bf16.mxu0 %v7053_v2 }
 0x291   :  { %6406 = vmatpush3.bf16.msra.mxu1 %v7785_v52  ;;  %6478 = vmatpush3.bf16.msra.mxu0 %v7519_v25 }
 0x292   :  { %6407 = vmatprep.subr.bf16.mxu1 %v7053_v2  ;;  %6479 = vmatprep.subr.bf16.mxu0 %v7053_v2 }
 0x295   :  { %6409 = vmatpush3.bf16.msra.mxu1 %v7791_v9  ;;  %6481 = vmatpush3.bf16.msra.mxu0 %v7527_v34 }
 0x296   :  { %6410 = vmatprep.subr.bf16.mxu1 %v7053_v2  ;;  %6482 = vmatprep.subr.bf16.mxu0 %v7053_v2 }
 0x299   :  { %6412 = vmatpush3.bf16.msra.mxu1 %v7797_v5  ;;  %6484 = vmatpush3.bf16.msra.mxu0 %v7538_v49 }
 0x29a   :  { %6413 = vmatprep.subr.bf16.mxu1 %v7053_v2  ;;  %6485 = vmatprep.subr.bf16.mxu0 %v7053_v2 }
 0x29d   :  { %6415 = vmatpush3.bf16.msra.mxu1 %v7803_v22  ;;  %6487 = vmatpush3.bf16.msra.mxu0 %v7547_v1 }
 0x29e   :  { %6440 = vmatprep.subr.bf16.mxu1 %v7053_v2  ;;  %6512 = vmatprep.subr.bf16.mxu0 %v7053_v2 }
 0x2a0   :  { %5790 = vmatmul.mubr.f32.vlgmr.msra.gmra.mrb[48].mxu1 %v7687_v45  ;;  %5895 = vmatmul.mubr.f32.vlgmr.msra.gmra.mrb[32].mxu0 %v7687_v45 }
 0x2a1   :  { %6442 = vmatpush3.bf16.msra.mxu1 %v7666_v28  ;;  %6514 = vmatpush3.bf16.msra.mxu0 %v7473_v36 }
 0x2a2   :  { %6443 = vmatprep.subr.bf16.mxu1 %v7053_v2  ;;  %6515 = vmatprep.subr.bf16.mxu0 %v7053_v2 }
 0x2a3   :  { %5859 = vmatprep.mubr.msk.f32.mxu1 %vm7054_vm0, %v8114_v54  ;;  %5964 = vmatprep.mubr.msk.f32.mxu0 %vm7054_vm0, %v8114_v54 }
 0x2a5   :  { %6445 = vmatpush3.bf16.msra.mxu1 %v7705_v42  ;;  %6517 = vmatpush3.bf16.msra.mxu0 %v7483_v47 }
 0x2a6   :  { %6446 = vmatprep.subr.bf16.mxu1 %v7053_v2  ;;  %6518 = vmatprep.subr.bf16.mxu0 %v7053_v2 }
 0x2a9   :  { %6448 = vmatpush3.bf16.msra.mxu1 %v7715_v57  ;;  %6520 = vmatpush3.bf16.msra.mxu0 %v7495_v58 }
 0x2aa   :  { %6449 = vmatprep.subr.bf16.mxu1 %v7053_v2  ;;  %6521 = vmatprep.subr.bf16.mxu0 %v7053_v2 }
 0x2ad   :  { %6451 = vmatpush3.bf16.msra.mxu1 %v7721_v6  ;;  %6523 = vmatpush3.bf16.msra.mxu0 %v7505_v7 }
 0x2ae   :  { %6452 = vmatprep.subr.bf16.mxu1 %v7053_v2  ;;  %6524 = vmatprep.subr.bf16.mxu0 %v7053_v2 }
 0x2b1   :  { %6454 = vmatpush3.bf16.msra.mxu1 %v7727_v4  ;;  %6526 = vmatpush3.bf16.msra.mxu0 %v7517_v20 }
 0x2b2   :  { %6455 = vmatprep.subr.bf16.mxu1 %v7053_v2  ;;  %6527 = vmatprep.subr.bf16.mxu0 %v7053_v2 }
 0x2b5   :  { %6457 = vmatpush3.bf16.msra.mxu1 %v7733_v62  ;;  %6529 = vmatpush3.bf16.msra.mxu0 %v7523_v32 }
 0x2b6   :  { %6458 = vmatprep.subr.bf16.mxu1 %v7053_v2  ;;  %6530 = vmatprep.subr.bf16.mxu0 %v7053_v2 }
 0x2b9   :  { %6460 = vmatpush3.bf16.msra.mxu1 %v7739_v23  ;;  %6532 = vmatpush3.bf16.msra.mxu0 %v7532_v46 }
 0x2ba   :  { %6461 = vmatprep.subr.bf16.mxu1 %v7053_v2  ;;  %6533 = vmatprep.subr.bf16.mxu0 %v7053_v2 }
 0x2bd   :  { %6463 = vmatpush3.bf16.msra.mxu1 %v7745_v0  ;;  %6535 = vmatpush3.bf16.msra.mxu0 %v7542_v60 }
 0x2be   :  { %6488 = vmatprep.subr.bf16.mxu1 %v7053_v2  ;;  %6560 = vmatprep.subr.bf16.mxu0 %v7053_v2 }
 0x2c0   :  { %5860 = vmatmul.mubr.f32.vlgmr.msra.gmra.mrb[50].mxu1 %v7681_v44  ;;  %5965 = vmatmul.mubr.f32.vlgmr.msra.gmra.mrb[34].mxu0 %v7687_v45 }
 0x2c1   :  { %6490 = vmatpush3.bf16.msra.mxu1 %v7755_v21  ;;  %6562 = vmatpush3.bf16.msra.mxu0 %v7475_v39 }
 0x2c2   :  { %6491 = vmatprep.subr.bf16.mxu1 %v7053_v2  ;;  %6563 = vmatprep.subr.bf16.mxu0 %v7053_v2 }
 0x2c3   :  { %5929 = vmatprep.mubr.msk.f32.mxu1 %vm7054_vm0, %v8114_v54  ;;  %6034 = vmatprep.mubr.msk.f32.mxu0 %vm7054_vm0, %v8114_v54 }
 0x2c5   :  { %6493 = vmatpush3.bf16.msra.mxu1 %v7763_v38  ;;  %6565 = vmatpush3.bf16.msra.mxu0 %v7485_v50 }
 0x2c6   :  { %6494 = vmatprep.subr.bf16.mxu1 %v7053_v2  ;;  %6566 = vmatprep.subr.bf16.mxu0 %v7053_v2 }
 0x2c9   :  { %6496 = vmatpush3.bf16.msra.mxu1 %v7773_v63  ;;  %6568 = vmatpush3.bf16.msra.mxu0 %v7497_v61 }
 0x2ca   :  { %6497 = vmatprep.subr.bf16.mxu1 %v7053_v2  ;;  %6569 = vmatprep.subr.bf16.mxu0 %v7053_v2 }
 0x2cd   :  { %6499 = vmatpush3.bf16.msra.mxu1 %v7779_v31  ;;  %6571 = vmatpush3.bf16.msra.mxu0 %v7507_v10 }
 0x2ce   :  { %6500 = vmatprep.subr.bf16.mxu1 %v7053_v2  ;;  %6572 = vmatprep.subr.bf16.mxu0 %v7053_v2 }
 0x2d1   :  { %6502 = vmatpush3.bf16.msra.mxu1 %v7785_v52  ;;  %6574 = vmatpush3.bf16.msra.mxu0 %v7519_v25 }
 0x2d2   :  { %6503 = vmatprep.subr.bf16.mxu1 %v7053_v2  ;;  %6575 = vmatprep.subr.bf16.mxu0 %v7053_v2 }
 0x2d5   :  { %6505 = vmatpush3.bf16.msra.mxu1 %v7791_v9  ;;  %6577 = vmatpush3.bf16.msra.mxu0 %v7527_v34 }
 0x2d6   :  { %6506 = vmatprep.subr.bf16.mxu1 %v7053_v2  ;;  %6578 = vmatprep.subr.bf16.mxu0 %v7053_v2 }
 0x2d9   :  { %6508 = vmatpush3.bf16.msra.mxu1 %v7797_v5  ;;  %6580 = vmatpush3.bf16.msra.mxu0 %v7538_v49 }
 0x2da   :  { %6509 = vmatprep.subr.bf16.mxu1 %v7053_v2  ;;  %6581 = vmatprep.subr.bf16.mxu0 %v7053_v2 }
 0x2dd   :  { %6511 = vmatpush3.bf16.msra.mxu1 %v7803_v22  ;;  %6583 = vmatpush3.bf16.msra.mxu0 %v7547_v1 }
 0x2de   :  { %6536 = vmatprep.subr.bf16.mxu1 %v7053_v2  ;;  %6608 = vmatprep.subr.bf16.mxu0 %v7053_v2 }
 0x2e0   :  { %5930 = vmatmul.mubr.f32.vlgmr.msra.gmra.mrb[52].mxu1 %v7690_v48  ;;  %6035 = vmatmul.mubr.f32.vlgmr.msra.gmra.mrb[36].mxu0 %v7693_v37 }
 0x2e1   :  { %6538 = vmatpush3.bf16.msra.mxu1 %v7666_v28  ;;  %6610 = vmatpush3.bf16.msra.mxu0 %v7473_v36 }
 0x2e2   :  { %6539 = vmatprep.subr.bf16.mxu1 %v7053_v2  ;;  %6611 = vmatprep.subr.bf16.mxu0 %v7053_v2 }
 0x2e3   :  { %5999 = vmatprep.mubr.msk.f32.mxu1 %vm7054_vm0, %v8114_v54  ;;  %6104 = vmatprep.mubr.msk.f32.mxu0 %vm7054_vm0, %v8114_v54 }
 0x2e5   :  { %6541 = vmatpush3.bf16.msra.mxu1 %v7705_v42  ;;  %6613 = vmatpush3.bf16.msra.mxu0 %v7483_v47 }
 0x2e6   :  { %6542 = vmatprep.subr.bf16.mxu1 %v7053_v2  ;;  %6614 = vmatprep.subr.bf16.mxu0 %v7053_v2 }
 0x2e9   :  { %6544 = vmatpush3.bf16.msra.mxu1 %v7715_v57  ;;  %6616 = vmatpush3.bf16.msra.mxu0 %v7495_v58 }
 0x2ea   :  { %6545 = vmatprep.subr.bf16.mxu1 %v7053_v2  ;;  %6617 = vmatprep.subr.bf16.mxu0 %v7053_v2 }
 0x2ed   :  { %6547 = vmatpush3.bf16.msra.mxu1 %v7721_v6  ;;  %6619 = vmatpush3.bf16.msra.mxu0 %v7505_v7 }
 0x2ee   :  { %6548 = vmatprep.subr.bf16.mxu1 %v7053_v2  ;;  %6620 = vmatprep.subr.bf16.mxu0 %v7053_v2 }
 0x2f1   :  { %6550 = vmatpush3.bf16.msra.mxu1 %v7727_v4  ;;  %6622 = vmatpush3.bf16.msra.mxu0 %v7517_v20 }
 0x2f2   :  { %6551 = vmatprep.subr.bf16.mxu1 %v7053_v2  ;;  %6623 = vmatprep.subr.bf16.mxu0 %v7053_v2 }
 0x2f5   :  { %6553 = vmatpush3.bf16.msra.mxu1 %v7733_v62  ;;  %6625 = vmatpush3.bf16.msra.mxu0 %v7523_v32 }
 0x2f6   :  { %6554 = vmatprep.subr.bf16.mxu1 %v7053_v2  ;;  %6626 = vmatprep.subr.bf16.mxu0 %v7053_v2 }
 0x2f9   :  { %6556 = vmatpush3.bf16.msra.mxu1 %v7739_v23  ;;  %6628 = vmatpush3.bf16.msra.mxu0 %v7532_v46 }
 0x2fa   :  { %6557 = vmatprep.subr.bf16.mxu1 %v7053_v2  ;;  %6629 = vmatprep.subr.bf16.mxu0 %v7053_v2 }
 0x2fd   :  { %6559 = vmatpush3.bf16.msra.mxu1 %v7745_v0  ;;  %6631 = vmatpush3.bf16.msra.mxu0 %v7542_v60 }
 0x2fe   :  { %6584 = vmatprep.subr.bf16.mxu1 %v7053_v2  ;;  %6656 = vmatprep.subr.bf16.mxu0 %v7053_v2 }
 0x300   :  { %6000 = vmatmul.mubr.f32.vlgmr.msra.gmra.mrb[54].mxu1 %v7684_v56  ;;  %6105 = vmatmul.mubr.f32.vlgmr.msra.gmra.mrb[38].mxu0 %v7690_v48 }
 0x301   :  { %6586 = vmatpush3.bf16.msra.mxu1 %v7755_v21  ;;  %6658 = vmatpush3.bf16.msra.mxu0 %v7475_v39 }
 0x302   :  { %6587 = vmatprep.subr.bf16.mxu1 %v7053_v2  ;;  %6659 = vmatprep.subr.bf16.mxu0 %v7053_v2 }
 0x303   :  { %6069 = vmatprep.mubr.msk.f32.mxu1 %vm7054_vm0, %v8114_v54  ;;  %6174 = vmatprep.mubr.msk.f32.mxu0 %vm7054_vm0, %v8114_v54 }
 0x305   :  { %6589 = vmatpush3.bf16.msra.mxu1 %v7763_v38  ;;  %6661 = vmatpush3.bf16.msra.mxu0 %v7485_v50 }
 0x306   :  { %6590 = vmatprep.subr.bf16.mxu1 %v7053_v2  ;;  %6662 = vmatprep.subr.bf16.mxu0 %v7053_v2 }
 0x309   :  { %6592 = vmatpush3.bf16.msra.mxu1 %v7773_v63  ;;  %6664 = vmatpush3.bf16.msra.mxu0 %v7497_v61 }
 0x30a   :  { %6593 = vmatprep.subr.bf16.mxu1 %v7053_v2  ;;  %6665 = vmatprep.subr.bf16.mxu0 %v7053_v2 }
 0x30d   :  { %6595 = vmatpush3.bf16.msra.mxu1 %v7779_v31  ;;  %6667 = vmatpush3.bf16.msra.mxu0 %v7507_v10 }
 0x30e   :  { %6596 = vmatprep.subr.bf16.mxu1 %v7053_v2  ;;  %6668 = vmatprep.subr.bf16.mxu0 %v7053_v2 }
 0x311   :  { %6598 = vmatpush3.bf16.msra.mxu1 %v7785_v52  ;;  %6670 = vmatpush3.bf16.msra.mxu0 %v7519_v25 }
 0x312   :  { %6599 = vmatprep.subr.bf16.mxu1 %v7053_v2  ;;  %6671 = vmatprep.subr.bf16.mxu0 %v7053_v2 }
 0x315   :  { %6601 = vmatpush3.bf16.msra.mxu1 %v7791_v9  ;;  %6673 = vmatpush3.bf16.msra.mxu0 %v7527_v34 }
 0x316   :  { %6602 = vmatprep.subr.bf16.mxu1 %v7053_v2  ;;  %6674 = vmatprep.subr.bf16.mxu0 %v7053_v2 }
 0x319   :  { %6604 = vmatpush3.bf16.msra.mxu1 %v7797_v5  ;;  %6676 = vmatpush3.bf16.msra.mxu0 %v7538_v49 }
 0x31a   :  { %6605 = vmatprep.subr.bf16.mxu1 %v7053_v2  ;;  %6677 = vmatprep.subr.bf16.mxu0 %v7053_v2 }
 0x31d   :  { %6607 = vmatpush3.bf16.msra.mxu1 %v7803_v22  ;;  %6679 = vmatpush3.bf16.msra.mxu0 %v7547_v1 }
 0x31e   :  { %6632 = vmatprep.subr.bf16.mxu1 %v7053_v2 }
 0x320   :  { %6070 = vmatmul.mubr.f32.vlgmr.msra.gmra.mrb[56].mxu1 %v7696_v19  ;;  %6175 = vmatmul.mubr.f32.vlgmr.msra.gmra.mrb[40].mxu0 %v7696_v19 }
 0x321   :  { %6634 = vmatpush3.bf16.msra.mxu1 %v7666_v28  ;;  %6139 = vmatprep.mubr.msk.f32.mxu1 %vm7054_vm0, %v8114_v54 }
 0x322   :  { %6635 = vmatprep.subr.bf16.mxu1 %v7053_v2  ;;  %4557 = vmatprep.mubr.f32.mxu0 %v8114_v54 }
 0x325   :  { %6637 = vmatpush3.bf16.msra.mxu1 %v7705_v42 }
 0x326   :  { %6638 = vmatprep.subr.bf16.mxu1 %v7053_v2 }
 0x329   :  { %6640 = vmatpush3.bf16.msra.mxu1 %v7715_v57 }
 0x32a   :  { %6641 = vmatprep.subr.bf16.mxu1 %v7053_v2 }
 0x32d   :  { %6643 = vmatpush3.bf16.msra.mxu1 %v7721_v6 }
 0x32e   :  { %6644 = vmatprep.subr.bf16.mxu1 %v7053_v2 }
 0x331   :  { %6646 = vmatpush3.bf16.msra.mxu1 %v7727_v4 }
 0x332   :  { %6647 = vmatprep.subr.bf16.mxu1 %v7053_v2 }
 0x333   :  { %v3178_v36 = vpop.f32.mrb[44].mxu1  ;;  %v3318_v39 = vpop.f32.mrb[28].mxu0 }
 0x334   :  { %v5686_v47 = vpop.f32.mrb[45].mxu1  ;;  %v5756_v50 = vpop.f32.mrb[29].mxu0 }
 0x335   :  { %6649 = vmatpush3.bf16.msra.mxu1 %v7733_v62  ;;  %v4412_v50 = vld [vmem:[#allocation7 + $0x180] sm:$0xff] }
 0x336   :  { %6650 = vmatprep.subr.bf16.mxu1 %v7053_v2 }
 0x339   :  { %6652 = vmatpush3.bf16.msra.mxu1 %v7739_v23 }
 0x33a   :  { %6653 = vmatprep.subr.bf16.mxu1 %v7053_v2 }
 0x33d   :  { %6655 = vmatpush3.bf16.msra.mxu1 %v7745_v0  ;;  %v4397_v0 = vld [vmem:[#allocation7 + $0x108] sm:$0xff] }
 0x33e   :  { %6680 = vmatprep.subr.bf16.mxu1 %v7053_v2  ;;  %v6704_v29 = vpack.c.bf16 %v4399_v51, %v4397_v0 }
 0x340   :  { %6140 = vmatmul.mubr.f32.vlgmr.msra.gmra.mrb[58].mxu1 %v7687_v45  ;;  %6705 = vmatprep.subr.bf16.mxu0 %v6704_v29  ;;  %v4982_v29 = vld [vmem:[%s8104_s6] ss:$0 sm:$0xff] }
 0x341   :  { %6682 = vmatpush3.bf16.msra.mxu1 %v7755_v21  ;;  %6209 = vmatprep.mubr.msk.f32.mxu1 %vm7054_vm0, %v8114_v54  ;;  %v6706_v21 = vpack.c.bf16 %v4398_v27, %v4396_v17 }
 0x342   :  { %6683 = vmatprep.subr.bf16.mxu1 %v7053_v2 }
 0x343   :  { %6707 = vmatpush1.bf16.msra.mxu0 %v6706_v21 }
 0x344   :  { %6709 = vmatprep.subr.bf16.mxu0 %v6708_v40 }
 0x345   :  { %6685 = vmatpush3.bf16.msra.mxu1 %v7763_v38  ;;  %v4402_v38 = vld [vmem:[#allocation7 + $0x130] sm:$0xff] }
 0x346   :  { %6686 = vmatprep.subr.bf16.mxu1 %v7053_v2  ;;  %v6710_v13 = vpack.c.bf16 %v4402_v38, %v4400_v33 }
 0x348   :  { %6711 = vmatpush1.bf16.msra.mxu0 %v6710_v13 }
 0x349   :  { %6688 = vmatpush3.bf16.msra.mxu1 %v7773_v63  ;;  %v4407_v63 = vld [vmem:[#allocation7 + $0x158] sm:$0xff] }
 0x34a   :  { %6689 = vmatprep.subr.bf16.mxu1 %v7053_v2  ;;  %v6712_v35 = vpack.c.bf16 %v4407_v63, %v4405_v26 }
 0x34c   :  { %6713 = vmatprep.subr.bf16.mxu0 %v6712_v35 }
 0x34d   :  { %6691 = vmatpush3.bf16.msra.mxu1 %v7779_v31  ;;  %v4406_v31 = vld [vmem:[#allocation7 + $0x150] sm:$0xff] }
 0x34e   :  { %6692 = vmatprep.subr.bf16.mxu1 %v7053_v2  ;;  %v6714_v8 = vpack.c.bf16 %v4406_v31, %v4404_v30 }
 0x350   :  { %6715 = vmatpush1.bf16.msra.mxu0 %v6714_v8 }
 0x351   :  { %6694 = vmatpush3.bf16.msra.mxu1 %v7785_v52  ;;  %v4411_v52 = vld [vmem:[#allocation7 + $0x178] sm:$0xff] }
 0x352   :  { %6695 = vmatprep.subr.bf16.mxu1 %v7053_v2  ;;  %v6716_v16 = vpack.c.bf16 %v4411_v52, %v4409_v41 }
 0x353   :  { %v3248_v58 = vpop.f32.mrb[46].mxu1  ;;  %v3470_v61 = vpop.f32.mrb[30].mxu0 }
 0x354   :  { %v3249_v7 = vadd.f32 %v3248_v58, %v3178_v36  ;;  %v5721_v10 = vpop.f32.mrb[47].mxu1  ;;  %v5826_v20 = vpop.f32.mrb[31].mxu0  ;;  %6717 = vmatprep.subr.bf16.mxu0 %v6716_v16  ;;  %v4413_v36 = vld [vmem:[#allocation7 + $0x188] sm:$0xff]  ;;  %v4414_v58 = vld [vmem:[#allocation7 + $0x190] sm:$0xff] }
 0x355   :  { %6697 = vmatpush3.bf16.msra.mxu1 %v7791_v9  ;;  %v4410_v9 = vld [vmem:[#allocation7 + $0x170] sm:$0xff]  ;;  %v4419_v10 = vld [vmem:[#allocation7 + $0x1b8] sm:$0xff]  ;;  %v4416_v20 = vld [vmem:[#allocation7 + $0x1a0] sm:$0xff] }
 0x356   :  { %6698 = vmatprep.subr.bf16.mxu1 %v7053_v2  ;;  %v3322_v25 = vadd.f32 %v3318_v39, %v3249_v7  ;;  %v4415_v39 = vld [vmem:[#allocation7 + $0x198] sm:$0xff]  ;;  %v6722_v7 = vpack.c.bf16 %v4414_v58, %v4412_v50 }
 0x357   :  { %v6720_v47 = vpack.c.bf16 %v4415_v39, %v4413_v36 }
 0x359   :  { %6700 = vmatpush3.bf16.msra.mxu1 %v7797_v5  ;;  %v6718_v5 = vpack.c.bf16 %v4410_v9, %v4408_v59 }
 0x35a   :  { %6701 = vmatprep.subr.bf16.mxu1 %v7053_v2 }
 0x35b   :  { %6719 = vmatpush1.bf16.msra.mxu0 %v6718_v5 }
 0x35c   :  { %6721 = vmatprep.subr.bf16.mxu0 %v6720_v47 }
 0x35d   :  { %6703 = vmatpush3.bf16.msra.mxu1 %v7803_v22 }
 0x35f   :  { %6723 = vmatpush1.bf16.msra.mxu0 %v6722_v7 }
 0x360   :  { %6210 = vmatmul.mubr.f32.vlgmr.msra.gmra.mrb[60].mxu1 %v7701_v55 }
 0x373   :  { %v3389_v32 = vpop.f32.mrb[48].mxu1  ;;  %v3610_v34 = vpop.f32.mrb[32].mxu0 }
 0x374   :  { %v8002_v46 = vadd.f32 %v3389_v32, %v3322_v25  ;;  %v5791_v49 = vpop.f32.mrb[49].mxu1  ;;  %v5896_v60 = vpop.f32.mrb[33].mxu0  ;;  %v4418_v25 = vld [vmem:[#allocation7 + $0x1b0] sm:$0xff] }
 0x375   :  { %v4423_v49 = vld [vmem:[#allocation7 + $0x1d8] sm:$0xff]  ;;  %v6726_v60 = vpack.c.bf16 %v4418_v25, %v4416_v20 }
 0x376   :  { %v3400_v27 = vadd.f32 %v4982_v29, %v8002_v46 }
 0x378   :  { %v3402_v43 = vmul.f32 0.05, %v3400_v27  ;;  %vm3401_vm13 = vcmp.ge.f32.partialorder %v3400_v27, 0.0 }
 0x393   :  { %v3540_v1 = vpop.f32.mrb[50].mxu1  ;;  %v3756_v28 = vpop.f32.mrb[34].mxu0 }
 0x394   :  { %v3541_v44 = vadd.f32 %v3540_v1, %v3470_v61  ;;  %v5861_v56 = vpop.f32.mrb[51].mxu1  ;;  %v5966_v45 = vpop.f32.mrb[35].mxu0  ;;  %v4417_v61 = vld [vmem:[#allocation7 + $0x1a8] sm:$0xff] }
 0x395   :  { %v6724_v32 = vpack.c.bf16 %v4419_v10, %v4417_v61  ;;  %v4425_v56 = vld [vmem:[#allocation7 + $0x1e8] sm:$0xff]  ;;  %v4427_v45 = vld [vmem:[#allocation7 + $0x1f8] sm:$0xff] }
 0x396   :  { %v3614_v48 = vadd.f32 %v3610_v34, %v3541_v44  ;;  %v4421_v34 = vld [vmem:[#allocation7 + $0x1c8] sm:$0xff]  ;;  %v4422_v44 = vld [vmem:[#allocation7 + $0x1d0] sm:$0xff] }
 0x397   :  { %6725 = vmatprep.subr.bf16.mxu0 %v6724_v32  ;;  %v6728_v1 = vpack.c.bf16 %v4423_v49, %v4421_v34 }
 0x398   :  { %6727 = vmatpush1.bf16.msra.mxu0 %v6726_v60 }
 0x399   :  { %6729 = vmatprep.subr.bf16.mxu0 %v6728_v1 }
 0x3b3   :  { %v3681_v37 = vpop.f32.mrb[52].mxu1  ;;  %v3896_v19 = vpop.f32.mrb[36].mxu0 }
 0x3b4   :  { %v8004_v42 = vadd.f32 %v3681_v37, %v3614_v48  ;;  %v5931_v2 = vpop.f32.mrb[53].mxu1  ;;  %v6036_v57 = vpop.f32.mrb[37].mxu0  ;;  %v6732_v37 = vpack.c.bf16 %v4427_v45, %v4425_v56 }
 0x3b5   :  { %v4426_v2 = vld [vmem:[#allocation7 + $0x1f0] sm:$0xff]  ;;  %v4365_v57 = vld [vmem:[#allocation7 + $0x8] sm:$0xff] }
 0x3b6   :  { %v3686_v17 = vadd.f32 %v4982_v29, %v8004_v42 }
 0x3b8   :  { %v3688_v11 = vmul.f32 0.05, %v3686_v17  ;;  %vm3687_vm0 = vcmp.ge.f32.partialorder %v3686_v17, 0.0 }
 0x3ba   :  { %v8014_v33 = vsel %vm3687_vm0, %v3686_v17, %v3688_v11 }
 0x3bb   :  { %v4272_v13 = vsel %vm2846_vm6, %v8014_v33, 0.0 }
 0x3bc   :  { %v4273_v26 = vrot.slane %v4272_v13, 4 }
 0x3be   :  { %v4274_v30 = vadd.f32 %v4273_v26, %v4272_v13 }
 0x3c0   :  { %v4275_v52 = vrot.slane %v4274_v30, 2 }
 0x3c2   :  { %v4276_v5 = vadd.f32 %v4275_v52, %v4274_v30 }
 0x3c4   :  { %v4277_v47 = vrot.slane %v4276_v5, 1 }
 0x3c6   :  { %v4278_v10 = vadd.f32 %v4277_v47, %v4276_v5  ;;  %v4800_v5 = vld [vmem:[#allocation8] sm:$0xff]  ;;  %v4818_v47 = vld [vmem:[#allocation8 + $0x90] sm:$0xff] }
 0x3d3   :  { %v3826_v6 = vpop.f32.mrb[54].mxu1  ;;  %v8006_v55 = vpop.f32.mrb[38].mxu0 }
 0x3d4   :  { %v3827_v4 = vadd.f32 %v3826_v6, %v3756_v28  ;;  %v6001_v62 = vpop.f32.mrb[55].mxu1  ;;  %v6106_v23 = vpop.f32.mrb[39].mxu0  ;;  %v4420_v28 = vld [vmem:[#allocation7 + $0x1c0] sm:$0xff]  ;;  %v4367_v6 = vld [vmem:[#allocation7 + $0x18] sm:$0xff] }
 0x3d5   :  { %v6730_v48 = vpack.c.bf16 %v4422_v44, %v4420_v28  ;;  %v6736_v62 = vpack.c.bf16 %v4367_v6, %v4365_v57 }
 0x3d6   :  { %v3900_v24 = vadd.f32 %v3896_v19, %v3827_v4  ;;  %v4424_v19 = vld [vmem:[#allocation7 + $0x1e0] sm:$0xff] }
 0x3d7   :  { %6731 = vmatpush1.bf16.msra.mxu0 %v6730_v48  ;;  %v6734_v4 = vpack.c.bf16 %v4426_v2, %v4424_v19 }
 0x3d8   :  { %6733 = vmatprep.subr.bf16.mxu0 %v6732_v37 }
 0x3db   :  { %6735 = vmatpush1.bf16.msra.mxu0 %v6734_v4 }
 0x3dc   :  { %6737 = vmatprep.subr.bf16.mxu0 %v6736_v62 }
 0x3f3   :  { %v3967_v12 = vpop.f32.mrb[56].mxu1  ;;  %v4182_v15 = vpop.f32.mrb[40].mxu0 }
 0x3f4   :  { %v3971_v18 = vadd.f32 %v3967_v12, %v3900_v24  ;;  %v6071_v3 = vpop.f32.mrb[57].mxu1  ;;  %v6176_v22 = vpop.f32.mrb[41].mxu0 }
 0x3f6   :  { %v3972_v21 = vadd.f32 %v4982_v29, %v3971_v18 }
 0x3f8   :  { %v3974_v40 = vmul.f32 0.05, %v3972_v21  ;;  %vm3973_vm14 = vcmp.ge.f32.partialorder %v3972_v21, 0.0 }
 0x3fa   :  { %v8018_v38 = vsel %vm3973_vm14, %v3972_v21, %v3974_v40 }
 0x3fb   :  { %v4280_v46 = vsel %vm2846_vm6, %v8018_v38, 0.0 }
 0x3fc   :  { %v4281_v35 = vrot.slane %v4280_v46, 4 }
 0x3fe   :  { %v4282_v8 = vadd.f32 %v4281_v35, %v4280_v46 }
 0x400   :  { %v4283_v12 = vrot.slane %v4282_v8, 2 }
 0x402   :  { %v4284_v22 = vadd.f32 %v4283_v12, %v4282_v8  ;;  %v4816_v12 = vld [vmem:[#allocation8 + $0x80] sm:$0xff] }
 0x404   :  { %v4285_v61 = vrot.slane %v4284_v22, 1 }
 0x406   :  { %v4286_v32 = vadd.f32 %v4285_v61, %v4284_v22 }
 0x413   :  { %v4112_v23 = vpop.f32.mrb[58].mxu1 }
 0x414   :  { %v4113_v24 = vadd.f32 %v4112_v23, %v8006_v55  ;;  %v6141_v0 = vpop.f32.mrb[59].mxu1  ;;  %v8016_v55 = vsel %vm3401_vm13, %v3400_v27, %v3402_v43 }
 0x415   :  { %v4264_v42 = vsel %vm2846_vm6, %v8016_v55, 0.0 }
 0x416   :  { %v4186_v51 = vadd.f32 %v4182_v15, %v4113_v24  ;;  %v4265_v63 = vrot.slane %v4264_v42, 4 }
 0x418   :  { %v4266_v31 = vadd.f32 %v4265_v63, %v4264_v42 }
 0x41a   :  { %v4267_v9 = vrot.slane %v4266_v31, 2 }
 0x41c   :  { %v4268_v3 = vadd.f32 %v4267_v9, %v4266_v31 }
 0x41e   :  { %v4269_v58 = vrot.slane %v4268_v3, 1 }
 0x420   :  { %v4270_v25 = vadd.f32 %v4269_v58, %v4268_v3 }
 0x422   :  { %v4279_v49 = vadd.f32 %v4278_v10, %v4270_v25  ;;  %v4803_v10 = vld [vmem:[#allocation8 + $0x18] sm:$0xff] }
 0x424   :  { %v4287_v1 = vadd.f32 %v4286_v32, %v4279_v49 }
 0x433   :  { %v4253_v41 = vpop.f32.mrb[60].mxu1 }
 0x434   :  { %v4257_v16 = vadd.f32 %v4253_v41, %v4186_v51  ;;  %v6211_v59 = vpop.f32.mrb[61].mxu1 }
 0x436   :  { %v4258_v15 = vadd.f32 %v4982_v29, %v4257_v16 }
 0x438   :  { %vm4259_vm15 = vcmp.ge.f32.partialorder %v4258_v15, 0.0  ;;  %v4260_v18 = vmul.f32 0.05, %v4258_v15 }
 0x43a   :  { %v8026_v36 = vsel %vm4259_vm15, %v4258_v15, %v4260_v18  ;;  %v4817_v15 = vld [vmem:[#allocation8 + $0x88] sm:$0xff] }
 0x43b   :  { %v4288_v39 = vsel %vm2846_vm6, %v8026_v36, 0.0  ;;  %v6832_v22 = vpack.c.bf16 %v4817_v15, %v4816_v12 }
 0x43c   :  { %v4289_v50 = vrot.slane %v4288_v39, 4 }
 0x43d   :  { %6833 = vmatprep.subr.bf16.mxu1 %v6832_v22 }
 0x43e   :  { %v4290_v7 = vadd.f32 %v4289_v50, %v4288_v39  ;;  %v4801_v39 = vld [vmem:[#allocation8 + $0x8] sm:$0xff]  ;;  %v4819_v50 = vld [vmem:[#allocation8 + $0x98] sm:$0xff] }
 0x43f   :  { %v6834_v58 = vpack.c.bf16 %v4801_v39, %v4800_v5  ;;  %v6836_v61 = vpack.c.bf16 %v4819_v50, %v4818_v47  ;;  %v4373_v47 = vld [vmem:[#allocation7 + $0x48] sm:$0xff]  ;;  %v4375_v50 = vld [vmem:[#allocation7 + $0x58] sm:$0xff] }
 0x440   :  { %v4291_v20 = vrot.slane %v4290_v7, 2 }
 0x441   :  { %6835 = vmatpush3.bf16.msra.mxu1 %v6834_v58  ;;  %v4372_v58 = vld [vmem:[#allocation7 + $0x40] sm:$0xff] }
 0x442   :  { %v4292_v34 = vadd.f32 %v4291_v20, %v4290_v7  ;;  %v4802_v7 = vld [vmem:[#allocation8 + $0x10] sm:$0xff]  ;;  %v4820_v20 = vld [vmem:[#allocation8 + $0xa0] sm:$0xff]  ;;  %6837 = vmatprep.subr.bf16.mxu1 %v6836_v61 }
 0x443   :  { %v6838_v49 = vpack.c.bf16 %v4803_v10, %v4802_v7  ;;  %v4374_v61 = vld [vmem:[#allocation7 + $0x50] sm:$0xff]  ;;  %v4377_v7 = vld [vmem:[#allocation7 + $0x68] sm:$0xff]  ;;  %v4379_v10 = vld [vmem:[#allocation7 + $0x78] sm:$0xff] }
 0x444   :  { %v4293_v60 = vrot.slane %v4292_v34, 1 }
 0x445   :  { %6839 = vmatpush3.bf16.msra.mxu1 %v6838_v49  ;;  %v4381_v49 = vld [vmem:[#allocation7 + $0x88] sm:$0xff] }
 0x446   :  { %v4294_v28 = vadd.f32 %v4293_v60, %v4292_v34  ;;  %v4821_v34 = vld [vmem:[#allocation8 + $0xa8] sm:$0xff] }
 0x448   :  { %v4295_v44 = vadd.f32 %v4294_v28, %v4287_v1  ;;  %v6840_v1 = vpack.c.bf16 %v4821_v34, %v4820_v20  ;;  %v4804_v28 = vld [vmem:[#allocation8 + $0x20] sm:$0xff]  ;;  %v6746_v20 = vpack.c.bf16 %v4374_v61, %v4372_v58  ;;  %v4378_v34 = vld [vmem:[#allocation7 + $0x70] sm:$0xff]  ;;  %v4447_v58 = vld [vmem:[#allocation7 + $0x298] sm:$0xff] }
 0x44a   :  { %v8030_v56 = vmul.f32 0.125, %v4295_v44  ;;  %v4805_v44 = vld [vmem:[#allocation8 + $0x28] sm:$0xff]  ;;  %6841 = vmatprep.subr.bf16.mxu1 %v6840_v1 }
 0x44c   :  { %v4298_v45 = vsub.f32 %v8016_v55, %v8030_v56  ;;  %v4308_v48 = vsub.f32 %v8014_v33, %v8030_v56  ;;  %v4318_v37 = vsub.f32 %v8018_v38, %v8030_v56  ;;  %v4328_v19 = vsub.f32 %v8026_v36, %v8030_v56 }
 0x44e   :  { %v4299_v2 = vmul.f32 %v4298_v45, %v4298_v45  ;;  %v4309_v57 = vmul.f32 %v4308_v48, %v4308_v48  ;;  %v4319_v6 = vmul.f32 %v4318_v37, %v4318_v37  ;;  %v4329_v4 = vmul.f32 %v4328_v19, %v4328_v19  ;;  %v4822_v45 = vld [vmem:[#allocation8 + $0xb0] sm:$0xff]  ;;  %v4823_v48 = vld [vmem:[#allocation8 + $0xb8] sm:$0xff] }
 0x44f   :  { %v6842_v19 = vpack.c.bf16 %v4805_v44, %v4804_v28  ;;  %v4380_v44 = vld [vmem:[#allocation7 + $0x80] sm:$0xff] }
 0x450   :  { %v4300_v62 = vsel %vm2846_vm6, %v4299_v2, 0.0  ;;  %v4310_v23 = vsel %vm2846_vm6, %v4309_v57, 0.0  ;;  %v4320_v24 = vsel %vm2846_vm6, %v4319_v6, 0.0  ;;  %v4330_v0 = vsel %vm2846_vm6, %v4329_v4, 0.0  ;;  %v4806_v6 = vld [vmem:[#allocation8 + $0x30] sm:$0xff]  ;;  %v4807_v4 = vld [vmem:[#allocation8 + $0x38] sm:$0xff] }
 0x451   :  { %v4301_v51 = vrot.slane %v4300_v62, 4  ;;  %v4311_v29 = vrot.slane %v4310_v23, 4  ;;  %v4321_v17 = vrot.slane %v4320_v24, 4  ;;  %v4331_v27 = vrot.slane %v4330_v0, 4  ;;  %6843 = vmatpush3.bf16.msra.mxu1 %v6842_v19 }
 0x452   :  { %v6844_v57 = vpack.c.bf16 %v4823_v48, %v4822_v45  ;;  %v4382_v45 = vld [vmem:[#allocation7 + $0x90] sm:$0xff]  ;;  %v4385_v48 = vld [vmem:[#allocation7 + $0xa8] sm:$0xff] }
 0x453   :  { %v4302_v21 = vadd.f32 %v4301_v51, %v4300_v62  ;;  %v4312_v11 = vadd.f32 %v4311_v29, %v4310_v23  ;;  %v4322_v43 = vadd.f32 %v4321_v17, %v4320_v24  ;;  %v4332_v40 = vadd.f32 %v4331_v27, %v4330_v0  ;;  %v4824_v62 = vld [vmem:[#allocation8 + $0xc0] sm:$0xff]  ;;  %v4825_v23 = vld [vmem:[#allocation8 + $0xc8] sm:$0xff]  ;;  %v4826_v17 = vld [vmem:[#allocation8 + $0xd0] sm:$0xff] }
 0x454   :  { %v6846_v24 = vpack.c.bf16 %v4807_v4, %v4806_v6  ;;  %6845 = vmatprep.subr.bf16.mxu1 %v6844_v57  ;;  %v6848_v0 = vpack.c.bf16 %v4825_v23, %v4824_v62  ;;  %v4808_v51 = vld [vmem:[#allocation8 + $0x40] sm:$0xff]  ;;  %v4809_v29 = vld [vmem:[#allocation8 + $0x48] sm:$0xff]  ;;  %v4827_v27 = vld [vmem:[#allocation8 + $0xd8] sm:$0xff]  ;;  %v6754_v19 = vpack.c.bf16 %v4382_v45, %v4380_v44 }
 0x455   :  { %v4303_v13 = vrot.slane %v4302_v21, 2  ;;  %v4313_v42 = vrot.slane %v4312_v11, 2  ;;  %v4323_v46 = vrot.slane %v4322_v43, 2  ;;  %v4333_v26 = vrot.slane %v4332_v40, 2  ;;  %v4384_v57 = vld [vmem:[#allocation7 + $0xa0] sm:$0xff]  ;;  %v4386_v6 = vld [vmem:[#allocation7 + $0xb0] sm:$0xff] }
 0x456   :  { %6847 = vmatpush3.bf16.msra.mxu1 %v6846_v24  ;;  %v4389_v4 = vld [vmem:[#allocation7 + $0xc8] sm:$0xff]  ;;  %v4391_v62 = vld [vmem:[#allocation7 + $0xd8] sm:$0xff]  ;;  %v6758_v23 = vpack.c.bf16 %v4386_v6, %v4384_v57 }
 0x457   :  { %v4304_v63 = vadd.f32 %v4303_v13, %v4302_v21  ;;  %v4314_v35 = vadd.f32 %v4313_v42, %v4312_v11  ;;  %v4324_v30 = vadd.f32 %v4323_v46, %v4322_v43  ;;  %v4334_v31 = vadd.f32 %v4333_v26, %v4332_v40  ;;  %6849 = vmatprep.subr.bf16.mxu1 %v6848_v0  ;;  %v4810_v43 = vld [vmem:[#allocation8 + $0x50] sm:$0xff]  ;;  %v4811_v40 = vld [vmem:[#allocation8 + $0x58] sm:$0xff]  ;;  %v4388_v0 = vld [vmem:[#allocation7 + $0xc0] sm:$0xff] }
 0x458   :  { %v6850_v21 = vpack.c.bf16 %v4809_v29, %v4808_v51  ;;  %v6852_v11 = vpack.c.bf16 %v4827_v27, %v4826_v17  ;;  %v4262_v13 = vld [vmem:[%s8105_s7] sm:$0x1]  ;;  %v6854_v42 = vpack.c.bf16 %v4811_v40, %v4810_v43  ;;  %v6760_v24 = vpack.c.bf16 %v4391_v62, %v4389_v4  ;;  %v4390_v51 = vld [vmem:[#allocation7 + $0xd0] sm:$0xff]  ;;  %v4393_v29 = vld [vmem:[#allocation7 + $0xe8] sm:$0xff] }
 0x459   :  { %v4305_v8 = vrot.slane %v4304_v63, 1  ;;  %v4315_v41 = vrot.slane %v4314_v35, 1  ;;  %v4325_v52 = vrot.slane %v4324_v30, 1  ;;  %v4335_v9 = vrot.slane %v4334_v31, 1  ;;  %v4395_v17 = vld [vmem:[#allocation7 + $0xf8] sm:$0xff]  ;;  %v4394_v43 = vld [vmem:[#allocation7 + $0xf0] sm:$0xff] }
 0x45a   :  { %6851 = vmatpush3.bf16.msra.mxu1 %v6850_v21  ;;  %v6762_v27 = vpack.c.bf16 %v4390_v51, %v4388_v0  ;;  %v6764_v21 = vpack.c.bf16 %v4395_v17, %v4393_v29  ;;  %v4429_v40 = vld [vmem:[#allocation7 + $0x208] sm:$0xff]  ;;  %v4455_v44 = vld [vmem:[#allocation7 + $0x2d8] sm:$0xff]  ;;  %v4456_v62 = vld [vmem:[#allocation7 + $0x2e0] sm:$0xff] }
 0x45b   :  { %v4306_v16 = vadd.f32 %v4305_v8, %v4304_v63  ;;  %v4316_v59 = vadd.f32 %v4315_v41, %v4314_v35  ;;  %v4326_v3 = vadd.f32 %v4325_v52, %v4324_v30  ;;  %v4336_v32 = vadd.f32 %v4335_v9, %v4334_v31  ;;  %6853 = vmatprep.subr.bf16.mxu1 %v6852_v11  ;;  %v4263_v63 = vld [vmem:[%s8106_s8] sm:$0x1]  ;;  %v4364_v41 = vld [vmem:[#allocation7] sm:$0xff]  ;;  %v4366_v52 = vld [vmem:[#allocation7 + $0x10] sm:$0xff] }
 0x45c   :  { %v6738_v5 = vpack.c.bf16 %v4366_v52, %v4364_v41  ;;  %v4392_v11 = vld [vmem:[#allocation7 + $0xe0] sm:$0xff]  ;;  %v4459_v57 = vld [vmem:[#allocation7 + $0x2f8] sm:$0xff] }
 0x45d   :  { %v4317_v18 = vadd.f32 %v4316_v59, %v4306_v16  ;;  %v4369_v16 = vld [vmem:[#allocation7 + $0x28] sm:$0xff]  ;;  %v4371_v59 = vld [vmem:[#allocation7 + $0x38] sm:$0xff]  ;;  %v4460_v17 = vld [vmem:[#allocation7 + $0x300] sm:$0xff] }
 0x45e   :  { %6855 = vmatpush3.bf16.msra.mxu1 %v6854_v42  ;;  %v6766_v42 = vpack.c.bf16 %v4394_v43, %v4392_v11  ;;  %v4463_v0 = vld [vmem:[#allocation7 + $0x318] sm:$0xff] }
 0x45f   :  { %v4327_v25 = vadd.f32 %v4326_v3, %v4317_v18  ;;  %v6740_v18 = vpack.c.bf16 %v4371_v59, %v4369_v16  ;;  %v4368_v3 = vld [vmem:[#allocation7 + $0x20] sm:$0xff]  ;;  %v4467_v11 = vld [vmem:[#allocation7 + $0x338] sm:$0xff] }
 0x460   :  { %v4432_v59 = vld [vmem:[#allocation7 + $0x220] sm:$0xff] }
 0x461   :  { %v4337_v60 = vadd.f32 %v4336_v32, %v4327_v25  ;;  %v6748_v25 = vpack.c.bf16 %v4379_v10, %v4377_v7  ;;  %v4376_v32 = vld [vmem:[#allocation7 + $0x60] sm:$0xff] }
 0x462   :  { %v6750_v1 = vpack.c.bf16 %v4378_v34, %v4376_v32  ;;  %v4444_v10 = vld [vmem:[#allocation7 + $0x280] sm:$0xff]  ;;  %v4451_v32 = vld [vmem:[#allocation7 + $0x2b8] sm:$0xff] }
 0x463   :  { %v4338_v37 = vmul.f32 0.125, %v4337_v60  ;;  %v4383_v60 = vld [vmem:[#allocation7 + $0x98] sm:$0xff] }
 0x464   :  { %v6752_v28 = vpack.c.bf16 %v4383_v60, %v4381_v49  ;;  %v4448_v60 = vld [vmem:[#allocation7 + $0x2a0] sm:$0xff] }
 0x465   :  { %v4339_v2 = vadd.f32 1e-05, %v4338_v37  ;;  %v4387_v37 = vld [vmem:[#allocation7 + $0xb8] sm:$0xff] }
 0x467   :  { %6921 = vrsqrt.f32 %v4339_v2  ;;  %v6756_v2 = vpack.c.bf16 %v4387_v37, %v4385_v48  ;;  %v4452_v37 = vld [vmem:[#allocation7 + $0x2c0] sm:$0xff] }
 0x471   :  { %v6922_v46 = vpop.eup %6921 }
 0x472   :  { %v4341_v26 = vmul.f32 %v6922_v46, %v4262_v13  ;;  %v4431_v13 = vld [vmem:[#allocation7 + $0x218] sm:$0xff] }
 0x473   :  { %v6768_v46 = vpack.c.bf16 %v4431_v13, %v4429_v40  ;;  %v4464_v13 = vld [vmem:[#allocation7 + $0x320] sm:$0xff] }
 0x474   :  { %v8051_v35 = vrot.slane %v4341_v26, %v7652_v14  ;;  %v4342_v30 = vmul.f32 %v4341_v26, %v8030_v56  ;;  %v4428_v26 = vld [vmem:[#allocation7 + $0x200] sm:$0xff] }
 0x476   :  { %v4362_v31 = vmul.f32 %v8051_v35, %v8026_v36  ;;  %v4343_v8 = vsub.f32 %v4263_v63, %v4342_v30  ;;  %v4358_v12 = vmul.f32 %v8051_v35, %v8014_v33  ;;  %v4360_v15 = vmul.f32 %v8051_v35, %v8018_v38  ;;  %v4370_v36 = vld [vmem:[#allocation7 + $0x30] sm:$0xff]  ;;  %v4433_v30 = vld [vmem:[#allocation7 + $0x228] sm:$0xff] }
 0x477   :  { %v6742_v33 = vpack.c.bf16 %v4370_v36, %v4368_v3  ;;  %v6744_v38 = vpack.c.bf16 %v4375_v50, %v4373_v47  ;;  %v4430_v63 = vld [vmem:[#allocation7 + $0x210] sm:$0xff]  ;;  %v4436_v3 = vld [vmem:[#allocation7 + $0x240] sm:$0xff] }
 0x478   :  { %v8057_v9 = vrot.slane %v4343_v8, %v7652_v14  ;;  %v4350_v8 = vmul.f32 %v8051_v35, %v8016_v55  ;;  %v6770_v41 = vpack.c.bf16 %v4430_v63, %v4428_v26  ;;  %v4438_v36 = vld [vmem:[#allocation7 + $0x250] sm:$0xff]  ;;  %v4441_v55 = vld [vmem:[#allocation7 + $0x268] sm:$0xff]  ;;  %v4443_v35 = vld [vmem:[#allocation7 + $0x278] sm:$0xff] }
 0x479   :  { %v6778_v47 = vpack.c.bf16 %v4438_v36, %v4436_v3  ;;  %v4440_v50 = vld [vmem:[#allocation7 + $0x260] sm:$0xff]  ;;  %v4471_v26 = vld [vmem:[#allocation7 + $0x358] sm:$0xff]  ;;  %v4481_v36 = vld [vmem:[#allocation7 + $0x3a8] sm:$0xff] }
 0x47a   :  { %v4359_v56 = vadd.f32 %v4358_v12, %v8057_v9  ;;  %v8065_v22 = vadd.f32 %v4360_v15, %v8057_v9  ;;  %v8068_v39 = vadd.f32 %v4362_v31, %v8057_v9  ;;  %v4435_v31 = vld [vmem:[#allocation7 + $0x238] sm:$0xff]  ;;  %v4357_v52 = vadd.f32 %v8057_v9, %v4350_v8  ;;  %v4434_v12 = vld [vmem:[#allocation7 + $0x230] sm:$0xff]  ;;  %v4437_v15 = vld [vmem:[#allocation7 + $0x248] sm:$0xff] }
 0x47b   :  { %v6772_v16 = vpack.c.bf16 %v4435_v31, %v4433_v30  ;;  %v6780_v9 = vpack.c.bf16 %v4443_v35, %v4441_v55  ;;  %v4468_v31 = vld [vmem:[#allocation7 + $0x340] sm:$0xff]  ;;  %v4470_v8 = vld [vmem:[#allocation7 + $0x350] sm:$0xff]  ;;  %v4483_v55 = vld [vmem:[#allocation7 + $0x3b8] sm:$0xff] }
 0x47c   :  { %4558 = vmatmul.mubr.f32.vlgmr.msra.gmra.mrb[42].mxu0 %v4359_v56  ;;  %v6774_v56 = vpack.c.bf16 %v4434_v12, %v4432_v59  ;;  %v4472_v12 = vld [vmem:[#allocation7 + $0x360] sm:$0xff] }
 0x47d   :  { %6739 = vmatpush1.bf16.msra.mxu0 %v6738_v5  ;;  %4628 = vmatprep.mubr.f32.mxu0 %v8114_v54  ;;  %v4439_v5 = vld [vmem:[#allocation7 + $0x258] sm:$0xff]  ;;  %v4476_v3 = vld [vmem:[#allocation7 + $0x380] sm:$0xff] }
 0x47e   :  { %6741 = vmatprep.subr.bf16.mxu0 %v6740_v18  ;;  %v6776_v18 = vpack.c.bf16 %v4439_v5, %v4437_v15  ;;  %v4474_v15 = vld [vmem:[#allocation7 + $0x370] sm:$0xff]  ;;  %v4477_v5 = vld [vmem:[#allocation7 + $0x388] sm:$0xff] }
 0x481   :  { %6743 = vmatpush1.bf16.msra.mxu0 %v6742_v33  ;;  %v4442_v33 = vld [vmem:[#allocation7 + $0x270] sm:$0xff] }
 0x482   :  { %6745 = vmatprep.subr.bf16.mxu0 %v6744_v38  ;;  %v4445_v38 = vld [vmem:[#allocation7 + $0x288] sm:$0xff]  ;;  %v6782_v61 = vpack.c.bf16 %v4442_v33, %v4440_v50  ;;  %v4482_v50 = vld [vmem:[#allocation7 + $0x3b0] sm:$0xff] }
 0x483   :  { %v6784_v7 = vpack.c.bf16 %v4447_v58, %v4445_v38  ;;  %v4485_v33 = vld [vmem:[#allocation7 + $0x3c8] sm:$0xff]  ;;  %v4487_v38 = vld [vmem:[#allocation7 + $0x3d8] sm:$0xff] }
 0x485   :  { %6747 = vmatpush1.bf16.msra.mxu0 %v6746_v20  ;;  %v4446_v20 = vld [vmem:[#allocation7 + $0x290] sm:$0xff] }
 0x486   :  { %6749 = vmatprep.subr.bf16.mxu0 %v6748_v25  ;;  %v4449_v25 = vld [vmem:[#allocation7 + $0x2a8] sm:$0xff]  ;;  %v6786_v34 = vpack.c.bf16 %v4446_v20, %v4444_v10  ;;  %v4486_v10 = vld [vmem:[#allocation7 + $0x3d0] sm:$0xff] }
 0x487   :  { %v6788_v49 = vpack.c.bf16 %v4451_v32, %v4449_v25  ;;  %v4489_v20 = vld [vmem:[#allocation7 + $0x3e8] sm:$0xff]  ;;  %v4491_v25 = vld [vmem:[#allocation7 + $0x3f8] sm:$0xff] }
 0x489   :  { %6751 = vmatpush1.bf16.msra.mxu0 %v6750_v1  ;;  %v4450_v1 = vld [vmem:[#allocation7 + $0x2b0] sm:$0xff] }
 0x48a   :  { %6753 = vmatprep.subr.bf16.mxu0 %v6752_v28  ;;  %v4453_v28 = vld [vmem:[#allocation7 + $0x2c8] sm:$0xff]  ;;  %v6790_v45 = vpack.c.bf16 %v4450_v1, %v4448_v60  ;;  %v4490_v60 = vld [vmem:[#allocation7 + $0x3f0] sm:$0xff] }
 0x48b   :  { %v6792_v48 = vpack.c.bf16 %v4455_v44, %v4453_v28  ;;  %v4828_v28 = vld [vmem:[#allocation8 + $0xe0] sm:$0xff]  ;;  %v4829_v44 = vld [vmem:[#allocation8 + $0xe8] sm:$0xff] }
 0x48d   :  { %6755 = vmatpush1.bf16.msra.mxu0 %v6754_v19  ;;  %v4454_v19 = vld [vmem:[#allocation7 + $0x2d0] sm:$0xff] }
 0x48e   :  { %6757 = vmatprep.subr.bf16.mxu0 %v6756_v2  ;;  %v4457_v2 = vld [vmem:[#allocation7 + $0x2e8] sm:$0xff]  ;;  %v6794_v6 = vpack.c.bf16 %v4454_v19, %v4452_v37  ;;  %v4830_v19 = vld [vmem:[#allocation8 + $0xf0] sm:$0xff] }
 0x48f   :  { %v6796_v4 = vpack.c.bf16 %v4459_v57, %v4457_v2  ;;  %v4813_v37 = vld [vmem:[#allocation8 + $0x68] sm:$0xff]  ;;  %v4831_v57 = vld [vmem:[#allocation8 + $0xf8] sm:$0xff] }
 0x491   :  { %6759 = vmatpush1.bf16.msra.mxu0 %v6758_v23  ;;  %v4458_v23 = vld [vmem:[#allocation7 + $0x2f0] sm:$0xff] }
 0x492   :  { %6761 = vmatprep.subr.bf16.mxu0 %v6760_v24  ;;  %v4461_v24 = vld [vmem:[#allocation7 + $0x308] sm:$0xff]  ;;  %v6798_v51 = vpack.c.bf16 %v4458_v23, %v4456_v62  ;;  %v6860_v62 = vpack.c.bf16 %v4831_v57, %v4830_v19 }
 0x493   :  { %v6800_v29 = vpack.c.bf16 %v4463_v0, %v4461_v24  ;;  %v4788_v24 = vsub.s32 1, %v7646_v53  ;;  %v4983_v53 = vld [vmem:[%s8110_s12] ss:$0 sm:$0xff] }
 0x495   :  { %6763 = vmatpush1.bf16.msra.mxu0 %v6762_v27  ;;  %v4462_v27 = vld [vmem:[#allocation7 + $0x310] sm:$0xff] }
 0x496   :  { %6765 = vmatprep.subr.bf16.mxu0 %v6764_v21  ;;  %v4465_v21 = vld [vmem:[#allocation7 + $0x328] sm:$0xff]  ;;  %v6802_v43 = vpack.c.bf16 %v4462_v27, %v4460_v17 }
 0x497   :  { %v6804_v40 = vpack.c.bf16 %v4467_v11, %v4465_v21 }
 0x499   :  { %6767 = vmatpush1.bf16.msra.mxu0 %v6766_v42  ;;  %v4466_v42 = vld [vmem:[#allocation7 + $0x330] sm:$0xff] }
 0x49a   :  { %6769 = vmatprep.subr.bf16.mxu0 %v6768_v46  ;;  %v4469_v46 = vld [vmem:[#allocation7 + $0x348] sm:$0xff]  ;;  %v6806_v63 = vpack.c.bf16 %v4466_v42, %v4464_v13 }
 0x49b   :  { %v6808_v30 = vpack.c.bf16 %v4471_v26, %v4469_v46 }
 0x49c   :  { %4629 = vmatmul.mubr.f32.vlgmr.msra.gmra.mrb[42].mxu0 %v4357_v52  ;;  %v4475_v52 = vld [vmem:[#allocation7 + $0x378] sm:$0xff] }
 0x49d   :  { %6771 = vmatpush1.bf16.msra.mxu0 %v6770_v41  ;;  %4699 = vmatprep.mubr.f32.mxu0 %v8114_v54  ;;  %v4473_v41 = vld [vmem:[#allocation7 + $0x368] sm:$0xff] }
 0x49e   :  { %6773 = vmatprep.subr.bf16.mxu0 %v6772_v16  ;;  %v6810_v16 = vpack.c.bf16 %v4470_v8, %v4468_v31  ;;  %v6812_v59 = vpack.c.bf16 %v4475_v52, %v4473_v41 }
 0x4a1   :  { %6775 = vmatpush1.bf16.msra.mxu0 %v6774_v56  ;;  %v4479_v56 = vld [vmem:[#allocation7 + $0x398] sm:$0xff] }
 0x4a2   :  { %6777 = vmatprep.subr.bf16.mxu0 %v6776_v18  ;;  %v6816_v18 = vpack.c.bf16 %v4479_v56, %v4477_v5 }
 0x4a5   :  { %6779 = vmatpush1.bf16.msra.mxu0 %v6778_v47  ;;  %v6820_v47 = vpack.c.bf16 %v4483_v55, %v4481_v36 }
 0x4a6   :  { %6781 = vmatprep.subr.bf16.mxu0 %v6780_v9  ;;  %v4480_v9 = vld [vmem:[#allocation7 + $0x3a0] sm:$0xff] }
 0x4a7   :  { %v6822_v58 = vpack.c.bf16 %v4482_v50, %v4480_v9 }
 0x4a9   :  { %6783 = vmatpush1.bf16.msra.mxu0 %v6782_v61  ;;  %v6824_v61 = vpack.c.bf16 %v4487_v38, %v4485_v33 }
 0x4aa   :  { %6785 = vmatprep.subr.bf16.mxu0 %v6784_v7  ;;  %v4484_v7 = vld [vmem:[#allocation7 + $0x3c0] sm:$0xff] }
 0x4ab   :  { %v6826_v32 = vpack.c.bf16 %v4486_v10, %v4484_v7 }
 0x4ad   :  { %6787 = vmatpush1.bf16.msra.mxu0 %v6786_v34  ;;  %v6828_v34 = vpack.c.bf16 %v4491_v25, %v4489_v20 }
 0x4ae   :  { %6789 = vmatprep.subr.bf16.mxu0 %v6788_v49  ;;  %v4488_v49 = vld [vmem:[#allocation7 + $0x3e0] sm:$0xff] }
 0x4af   :  { %v6830_v1 = vpack.c.bf16 %v4490_v60, %v4488_v49 }
 0x4b1   :  { %6791 = vmatpush1.bf16.msra.mxu0 %v6790_v45  ;;  %v6856_v45 = vpack.c.bf16 %v4829_v44, %v4828_v28 }
 0x4b2   :  { %6793 = vmatprep.subr.bf16.mxu0 %v6792_v48  ;;  %v4812_v48 = vld [vmem:[#allocation8 + $0x60] sm:$0xff] }
 0x4b3   :  { %v6858_v2 = vpack.c.bf16 %v4813_v37, %v4812_v48  ;;  %6857 = vmatprep.subr.bf16.mxu1 %v6856_v45 }
 0x4b5   :  { %6795 = vmatpush1.bf16.msra.mxu0 %v6794_v6  ;;  %v4814_v6 = vld [vmem:[#allocation8 + $0x70] sm:$0xff]  ;;  %6859 = vmatpush3.bf16.msra.mxu1 %v6858_v2 }
 0x4b6   :  { %6797 = vmatprep.subr.bf16.mxu0 %v6796_v4  ;;  %v4815_v4 = vld [vmem:[#allocation8 + $0x78] sm:$0xff]  ;;  %6861 = vmatprep.subr.bf16.mxu1 %v6860_v62 }
 0x4b7   :  { %v6862_v23 = vpack.c.bf16 %v4815_v4, %v4814_v6 }
 0x4b9   :  { %6799 = vmatpush1.bf16.msra.mxu0 %v6798_v51  ;;  %6863 = vmatpush3.bf16.msra.mxu1 %v6862_v23 }
 0x4ba   :  { %6801 = vmatprep.subr.bf16.mxu0 %v6800_v29 }
 0x4bc   :  { %4700 = vmatmul.mubr.f32.vlgmr.msra.gmra.mrb[42].mxu0 %v8065_v22  ;;  %v6814_v22 = vpack.c.bf16 %v4474_v15, %v4472_v12 }
 0x4bd   :  { %6803 = vmatpush1.bf16.msra.mxu0 %v6802_v43  ;;  %4772 = vmatprep.mubr.f32.mxu0 %v8114_v54  ;;  %v4478_v54 = vld [vmem:[#allocation7 + $0x390] sm:$0xff] }
 0x4be   :  { %6805 = vmatprep.subr.bf16.mxu0 %v6804_v40  ;;  %v6818_v35 = vpack.c.bf16 %v4478_v54, %v4476_v3 }
 0x4c1   :  { %6807 = vmatpush1.bf16.msra.mxu0 %v6806_v63 }
 0x4c2   :  { %6809 = vmatprep.subr.bf16.mxu0 %v6808_v30 }
 0x4c5   :  { %6811 = vmatpush1.bf16.msra.mxu0 %v6810_v16 }
 0x4c6   :  { %6813 = vmatprep.subr.bf16.mxu0 %v6812_v59 }
 0x4c9   :  { %6815 = vmatpush1.bf16.msra.mxu0 %v6814_v22 }
 0x4ca   :  { %6817 = vmatprep.subr.bf16.mxu0 %v6816_v18 }
 0x4cd   :  { %6819 = vmatpush1.bf16.msra.mxu0 %v6818_v35 }
 0x4ce   :  { %6821 = vmatprep.subr.bf16.mxu0 %v6820_v47 }
 0x4d1   :  { %6823 = vmatpush1.bf16.msra.mxu0 %v6822_v58 }
 0x4d2   :  { %6825 = vmatprep.subr.bf16.mxu0 %v6824_v61 }
 0x4d5   :  { %6827 = vmatpush1.bf16.msra.mxu0 %v6826_v32 }
 0x4d6   :  { %6829 = vmatprep.subr.bf16.mxu0 %v6828_v34 }
 0x4d9   :  { %6831 = vmatpush1.bf16.msra.mxu0 %v6830_v1 }
 0x4dc   :  { %4773 = vmatmul.mubr.f32.vlgmr.msra.gmra.mrb[42].mxu0 %v8068_v39  ;;  %v4492_v39 = vld [vmem:[%s8108_s10] sm:$0x3] }
 0x4dd   :  { %v4785_v0 = vrot.slane %v4492_v39, %v7652_v14  ;;  %v4789_v51 = vrot.slane %v4492_v39, %v4788_v24 }
 0x5af   :  { %v4774_v29 = vpop.f32.mrb[42].mxu0 }
 0x5b0   :  { %v4792_v17 = vadd.f32 %v4785_v0, %v4774_v29  ;;  %v4776_v27 = vpop.f32.mrb[43].mxu0 }
 0x5b1   :  { %v4793_v21 = vadd.f32 %v4789_v51, %v4776_v27 }
 0x5b2   :  { %v4796_v11 = vmul.f32 0.05, %v4792_v17  ;;  %vm4794_vm2 = vcmp.ge.f32.partialorder %v4792_v17, 0.0 }
 0x5b3   :  { %v4797_v43 = vmul.f32 0.05, %v4793_v21  ;;  %vm4795_vm3 = vcmp.ge.f32.partialorder %v4793_v21, 0.0 }
 0x5b4   :  { %v4798_v13 = vsel %vm4794_vm2, %v4792_v17, %v4796_v11 }
 0x5b5   :  { %v4799_v40 = vsel %vm4795_vm3, %v4793_v21, %v4797_v43 }
 0x5b6   :  { %4903 = vmatprep.mubr.f32.mxu1 %v4799_v40 }
 0x5b7   :  { %4904 = vmatmul.mubr.f32.vlgmr.msra.gmra.mrb[62].mxu1 %v4798_v13 }
 0x68a   :  { %v5397_v42 = vpop.f32.mrb[62].mxu1 }
 0x68b   :  { %v5398_v46 = vpop.f32.mrb[63].mxu1 }
 0x68c   :  { %v5399_v14 = vadd.f32 %v5398_v46, %v5397_v42 }
 0x68e   :  { %v4906_v26 = vadd.f32 %v5399_v14, %v4983_v53 }
 0x690   :  { %6923 = vpow2.f32 %v4906_v26 }
 0x69a   :  { %v6924_v63 = vpop.eup %6923 }
 0x69b   :  { %v4984_v30 = vadd.f32 -1.0, %v6924_v63 }
 0x69d   :  { %4911 = vst [vmem:[#allocation10] sm:$0x3] %v4984_v30 }
 0x69e   :  { %7024 = shalt.err (!%p7021_p8)
}
 0x69f   :  { %s7025_s12 = scalar_lea.hbm %s8111_s13, 32 }
 0x6a0   :  { %p7026_p9 = scmp.ne.s32.totalorder %s8111_s13, %s7025_s12  ;;  %p7029_p10 = scmp.lt.u32.totalorder %s7025_s12, %s8111_s13 }
 0x6a2   :  { %p7031_p11 = pnand %p7029_p10, %p7026_p9 }
 0x6a4   :  { %7034 = shalt.err (!%p7031_p11)
}
 0x6a5   :  { %4921 = dma.vmem_to_hbm [thread:$0]  %s4919_s26, 32, %s8111_s13, [#allocation4]  }
 0x6a6   :  { %7041 = dma.done.wait [#allocation4], 32  }
 0x6a7   :  { %7042 = vsyncadd [#allocation4], 4294967264 }
 0x6a8   :  { %4925 = vsyncpa [#allocation3], 1 }
 0x6a9   :  { %4926 = vsyncpa [#allocation6], 1 }
 0x6aa   :  { %4927 = vsyncpa [#allocation9], 1 }
 0x6ab   :  { %4928 = vsyncpa [#allocation4], 1 }

</bundles_post_ra>
